<compile_context>
chip_gen: v7x
topology: tpu7x:2x2x1
jax: 0.10.0
libtpu: 0.0.40
codegen_flags: <defaults>
</compile_context>

<pallas_src>
import jax
import jax.numpy as jnp
from jax import lax
from jax.experimental import pallas as pl
from jax.experimental.pallas import tpu as pltpu

# ---------------- config (small synthetic shapes) ----------------------------
D_MODEL = 32
N_HEADS = 4
D_HEAD = D_MODEL // N_HEADS
D_FF = 64
LAYERS = 2
EPS = 1e-5                       # nn.LayerNorm default
NEG_INF = -1e9                   # stand-in for masked_fill(-inf); avoids NaN on fully-masked rows
ATT_SCALE = 1.0 / (float(D_HEAD) ** 0.5)


def _layer_norm(x, gamma, beta):
    mu = jnp.mean(x, axis=-1, keepdims=True)
    var = jnp.mean((x - mu) ** 2, axis=-1, keepdims=True)
    return (x - mu) * lax.rsqrt(var + EPS) * gamma + beta


def _mha_self(x, kbias, qkeep, wqkv, bqkv, wo, bo, gamma, beta):
    """MultiHeadAttention sub-layer: LN(x + fc_o(attention)) with padded query rows zeroed."""
    # fused q|k|v projection: one (N, D) x (D, 3D) MXU push
    qkv = jnp.dot(x, wqkv, preferred_element_type=jnp.float32) + bqkv          # (N, 3D)

    def heads(base):
        return jnp.stack([qkv[:, base + h * D_HEAD: base + (h + 1) * D_HEAD]
                          for h in range(N_HEADS)], axis=0)                    # (H, N, Dh)

    q3, k3, v3 = heads(0), heads(D_MODEL), heads(2 * D_MODEL)

    # batched attention across heads (single einsum each, vectorized softmax)
    scores = jnp.einsum('hqd,hkd->hqk', q3, k3,
                        preferred_element_type=jnp.float32) * ATT_SCALE        # (H, Nq, Nk)
    scores = scores + kbias                        # additive -1e9 bias, broadcast (1, Nk)
    m = jnp.max(scores, axis=-1, keepdims=True)
    p = jnp.exp(scores - m)
    att = p * pl.reciprocal(jnp.sum(p, axis=-1, keepdims=True), approx=True)
    ctx3 = jnp.einsum('hqk,hkd->hqd', att, v3,
                      preferred_element_type=jnp.float32)                      # (H, Nq, Dh)

    # reassemble heads along the lane axis, then a single output projection
    ctx = jnp.concatenate([ctx3[h] for h in range(N_HEADS)], axis=-1)          # (Nq, D)
    mha = jnp.dot(ctx, wo, preferred_element_type=jnp.float32) + bo

    out = _layer_norm(x + mha, gamma, beta)        # residual + LayerNorm (dropout = identity)
    return out * qkeep                             # masked_fill(query padding, 0) as a multiply


def _pff(x, w1, b1, w2, b2, gamma, beta):
    """PositionWiseFeedForward: LN(x + W2 relu(W1 x))."""
    h = jnp.maximum(jnp.dot(x, w1, preferred_element_type=jnp.float32) + b1, 0.0)
    y = jnp.dot(h, w2, preferred_element_type=jnp.float32) + b2
    return _layer_norm(x + y, gamma, beta)


# ================== fused kernel: whole CrossModalityEncoder forward =========
def cross_modality_kernel(v_ref, l_ref, v_kbias_ref, v_qkeep_ref, l_kbias_ref, l_qkeep_ref,
                          ing_ref, inb_ref, posv_ref, posl_ref,
                          wqkv_ref, bqkv_ref, wo_ref, bo_ref, gm_ref, bm_ref,
                          w1_ref, b1_ref, w2_ref, b2_ref, gf_ref, bf_ref,
                          vo_ref, lo_ref):
    # input LayerNorm + sinusoid positional embedding (both modalities)
    v = _layer_norm(v_ref[0], ing_ref[0], inb_ref[0]) + posv_ref[...]          # (Nv, D)
    l = _layer_norm(l_ref[0], ing_ref[1], inb_ref[1]) + posl_ref[...]          # (Nl, D)

    v_kbias, v_qkeep = v_kbias_ref[0], v_qkeep_ref[0]                          # (1,Nv), (Nv,1)
    l_kbias, l_qkeep = l_kbias_ref[0], l_qkeep_ref[0]                          # (1,Nl), (Nl,1)

    def sublayer(x, kbias, qkeep, s, i):
        x = _mha_self(x, kbias, qkeep,
                      wqkv_ref[s, i], bqkv_ref[s, i], wo_ref[s, i], bo_ref[s, i],
                      gm_ref[s, i], bm_ref[s, i])
        x = _pff(x, w1_ref[s, i], b1_ref[s, i], w2_ref[s, i], b2_ref[s, i],
                 gf_ref[s, i], bf_ref[s, i])
        return x

    # In the reference CrossModalityEncoderLayer.forward the cross-modal attention
    # outputs are overwritten before use (dead code), so only the per-modality
    # self-attention + PFF path contributes; the dead cross branches are skipped.
    for i in range(LAYERS):
        v = sublayer(v, v_kbias, v_qkeep, 0, i)    # vision self-attn + vision PFF
        l = sublayer(l, l_kbias, l_qkeep, 1, i)    # language self-attn + language PFF

    # single (masked) store per modality per batch element
    vo_ref[0] = v
    lo_ref[0] = l


# ================== glue: positional embedding, params, forward ==============
def sinusoid_pos_embedding(n, d):
    # TODO(synk): verify interleaved sin/cos (DETR-style, positions 1..n) against the
    # exact SinusoidPositionalEmbedding of the source repo (some variants concat halves).
    pos = jnp.arange(1, n + 1, dtype=jnp.float32)[:, None]            # (n, 1)
    dim_t = jnp.arange(d, dtype=jnp.float32)
    dim_t = 10000.0 ** (2.0 * jnp.floor(dim_t / 2.0) / d)             # (d,)
    ang = pos / dim_t                                                 # (n, d)
    return jnp.where(jnp.arange(d) % 2 == 0, jnp.sin(ang), jnp.cos(ang)).astype(jnp.float32)


def init_params(key):
    s = 0.05

    def lin(k, fi, fo):
        return jax.random.normal(k, (fi, fo), jnp.float32) * s

    def vec(k, fo):
        return jax.random.normal(k, (1, fo), jnp.float32) * s

    def layer(k):
        ks = jax.random.split(k, 12)
        wqkv = jnp.concatenate([lin(ks[0], D_MODEL, D_MODEL),
                                lin(ks[1], D_MODEL, D_MODEL),
                                lin(ks[2], D_MODEL, D_MODEL)], axis=1)         # fc_q|fc_k|fc_v
        bqkv = jnp.concatenate([vec(ks[3], D_MODEL), vec(ks[4], D_MODEL),
                                vec(ks[5], D_MODEL)], axis=1)
        return dict(
            wqkv=wqkv, bqkv=bqkv,
            wo=lin(ks[6], D_MODEL, D_MODEL), bo=vec(ks[7], D_MODEL),
            gm=jnp.ones((1, D_MODEL), jnp.float32), bm=jnp.zeros((1, D_MODEL), jnp.float32),
            w1=lin(ks[8], D_MODEL, D_FF), b1=vec(ks[9], D_FF),
            w2=lin(ks[10], D_FF, D_MODEL), b2=vec(ks[11], D_MODEL),
            gf=jnp.ones((1, D_MODEL), jnp.float32), bf=jnp.zeros((1, D_MODEL), jnp.float32),
        )

    # deterministic keys (no hash()): stream 0 = vision modules, stream 1 = language modules
    per = [[layer(jax.random.fold_in(jax.random.fold_in(key, st), i))
            for i in range(LAYERS)] for st in range(2)]
    names = ("wqkv", "bqkv", "wo", "bo", "gm", "bm", "w1", "b1", "w2", "b2", "gf", "bf")
    params = {n: jnp.stack([jnp.stack([per[st][i][n] for i in range(LAYERS)])
                            for st in range(2)]) for n in names}               # (2, LAYERS, ...)
    params["in_g"] = jnp.ones((2, 1, D_MODEL), jnp.float32)   # vision / language input LayerNorm
    params["in_b"] = jnp.zeros((2, 1, D_MODEL), jnp.float32)
    return params


def cross_modality_encoder(vision_features, boxes, vision_padding_mask,
                           language_features, language_padding_mask, params):
    # TODO(synk): `boxes` is forwarded via **kwargs in the reference but unused by the
    # base MultiHeadAttention (no box-relational bias), so it is accepted and ignored.
    del boxes
    B, Nv, D = vision_features.shape
    Nl = language_features.shape[1]

    pos_v = sinusoid_pos_embedding(Nv, D)
    pos_l = sinusoid_pos_embedding(Nl, D)

    # precompute additive key-mask bias and multiplicative query-keep mask (1.0 == padded)
    v_kbias = (vision_padding_mask * NEG_INF)[:, None, :]      # (B, 1, Nv)
    v_qkeep = (1.0 - vision_padding_mask)[:, :, None]          # (B, Nv, 1)
    l_kbias = (language_padding_mask * NEG_INF)[:, None, :]    # (B, 1, Nl)
    l_qkeep = (1.0 - language_padding_mask)[:, :, None]        # (B, Nl, 1)

    weight_names = ("wqkv", "bqkv", "wo", "bo", "gm", "bm", "w1", "b1", "w2", "b2", "gf", "bf")
    weights = [params[n] for n in weight_names]

    def full_spec(a):
        nd = a.ndim
        return pl.BlockSpec(a.shape, lambda b, _nd=nd: (0,) * _nd)

    in_specs = [
        pl.BlockSpec((1, Nv, D), lambda b: (b, 0, 0)),         # vision features
        pl.BlockSpec((1, Nl, D), lambda b: (b, 0, 0)),         # language features
        pl.BlockSpec((1, 1, Nv), lambda b: (b, 0, 0)),         # vision key bias
        pl.BlockSpec((1, Nv, 1), lambda b: (b, 0, 0)),         # vision query keep
        pl.BlockSpec((1, 1, Nl), lambda b: (b, 0, 0)),         # language key bias
        pl.BlockSpec((1, Nl, 1), lambda b: (b, 0, 0)),         # language query keep
        full_spec(params["in_g"]), full_spec(params["in_b"]),
        full_spec(pos_v), full_spec(pos_l),
    ] + [full_spec(a) for a in weights]

    out_shape = (jax.ShapeDtypeStruct((B, Nv, D), jnp.float32),
                 jax.ShapeDtypeStruct((B, Nl, D), jnp.float32))
    out_specs = (pl.BlockSpec((1, Nv, D), lambda b: (b, 0, 0)),
                 pl.BlockSpec((1, Nl, D), lambda b: (b, 0, 0)))

    return pl.pallas_call(
        cross_modality_kernel,
        out_shape=out_shape,
        grid=(B,),
        in_specs=in_specs,
        out_specs=out_specs,
        compiler_params=pltpu.CompilerParams(dimension_semantics=("parallel",)),
    )(vision_features, language_features, v_kbias, v_qkeep, l_kbias, l_qkeep,
      params["in_g"], params["in_b"], pos_v, pos_l, *weights)


if __name__ == "__main__":
    key = jax.random.PRNGKey(0)
    k1, k2, k3, kp = jax.random.split(key, 4)

    B, Nv, Nl = 2, 16, 8
    vision_features = jax.random.normal(k1, (B, Nv, D_MODEL), jnp.float32)
    language_features = jax.random.normal(k2, (B, Nl, D_MODEL), jnp.float32)
    boxes = jax.random.uniform(k3, (B, Nv, 4), jnp.float32)

    # padding masks: 1.0 == padded token
    v_valid = jnp.array([16, 12], jnp.int32)
    l_valid = jnp.array([8, 5], jnp.int32)
    vision_padding_mask = (jnp.arange(Nv)[None, :] >= v_valid[:, None]).astype(jnp.float32)
    language_padding_mask = (jnp.arange(Nl)[None, :] >= l_valid[:, None]).astype(jnp.float32)

    params = init_params(kp)

    fwd = jax.jit(cross_modality_encoder)
    v_out, l_out = fwd(vision_features, boxes, vision_padding_mask,
                       language_features, language_padding_mask, params)
    v_out = jax.block_until_ready(v_out)
    l_out = jax.block_until_ready(l_out)

    assert v_out.shape == (B, Nv, D_MODEL) and l_out.shape == (B, Nl, D_MODEL)
    assert bool(jnp.all(jnp.isfinite(v_out))) and bool(jnp.all(jnp.isfinite(l_out)))
    print("KERNEL_OK")
</pallas_src>

<mosaic_0001>
module attributes {stable_mosaic.version = 11 : i64} {
  func.func @cross_modality_kernel(%arg0: i32, %arg1: memref<1x16x32xf32, #tpu.memory_space<vmem>>, %arg2: memref<1x8x32xf32, #tpu.memory_space<vmem>>, %arg3: memref<1x1x16xf32, #tpu.memory_space<vmem>>, %arg4: memref<1x16x1xf32, #tpu.memory_space<vmem>>, %arg5: memref<1x1x8xf32, #tpu.memory_space<vmem>>, %arg6: memref<1x8x1xf32, #tpu.memory_space<vmem>>, %arg7: memref<2x1x32xf32, #tpu.memory_space<vmem>>, %arg8: memref<2x1x32xf32, #tpu.memory_space<vmem>>, %arg9: memref<16x32xf32, #tpu.memory_space<vmem>>, %arg10: memref<8x32xf32, #tpu.memory_space<vmem>>, %arg11: memref<2x2x32x96xf32, #tpu.memory_space<vmem>>, %arg12: memref<2x2x1x96xf32, #tpu.memory_space<vmem>>, %arg13: memref<2x2x32x32xf32, #tpu.memory_space<vmem>>, %arg14: memref<2x2x1x32xf32, #tpu.memory_space<vmem>>, %arg15: memref<2x2x1x32xf32, #tpu.memory_space<vmem>>, %arg16: memref<2x2x1x32xf32, #tpu.memory_space<vmem>>, %arg17: memref<2x2x32x64xf32, #tpu.memory_space<vmem>>, %arg18: memref<2x2x1x64xf32, #tpu.memory_space<vmem>>, %arg19: memref<2x2x64x32xf32, #tpu.memory_space<vmem>>, %arg20: memref<2x2x1x32xf32, #tpu.memory_space<vmem>>, %arg21: memref<2x2x1x32xf32, #tpu.memory_space<vmem>>, %arg22: memref<2x2x1x32xf32, #tpu.memory_space<vmem>>, %arg23: memref<1x16x32xf32, #tpu.memory_space<vmem>>, %arg24: memref<1x8x32xf32, #tpu.memory_space<vmem>>) attributes {dimension_semantics = [#tpu.dimension_semantics<parallel>], iteration_bounds = array<i64: 2>, scalar_prefetch = 0 : i64, scratch_operands = 0 : i64, tpu.core_type = #tpu.core_type<tc>, window_params = [{transform_indices = @transform_0, window_bounds = array<i64: 1, 16, 32>}, {transform_indices = @transform_1, window_bounds = array<i64: 1, 8, 32>}, {transform_indices = @transform_2, window_bounds = array<i64: 1, 1, 16>}, {transform_indices = @transform_3, window_bounds = array<i64: 1, 16, 1>}, {transform_indices = @transform_4, window_bounds = array<i64: 1, 1, 8>}, {transform_indices = @transform_5, window_bounds = array<i64: 1, 8, 1>}, {pipeline_mode = #tpu.pipeline_mode<synchronous>, transform_indices = @transform_6, window_bounds = array<i64: 2, 1, 32>}, {pipeline_mode = #tpu.pipeline_mode<synchronous>, transform_indices = @transform_7, window_bounds = array<i64: 2, 1, 32>}, {pipeline_mode = #tpu.pipeline_mode<synchronous>, transform_indices = @transform_8, window_bounds = array<i64: 16, 32>}, {pipeline_mode = #tpu.pipeline_mode<synchronous>, transform_indices = @transform_9, window_bounds = array<i64: 8, 32>}, {pipeline_mode = #tpu.pipeline_mode<synchronous>, transform_indices = @transform_10, window_bounds = array<i64: 2, 2, 32, 96>}, {pipeline_mode = #tpu.pipeline_mode<synchronous>, transform_indices = @transform_11, window_bounds = array<i64: 2, 2, 1, 96>}, {pipeline_mode = #tpu.pipeline_mode<synchronous>, transform_indices = @transform_12, window_bounds = array<i64: 2, 2, 32, 32>}, {pipeline_mode = #tpu.pipeline_mode<synchronous>, transform_indices = @transform_13, window_bounds = array<i64: 2, 2, 1, 32>}, {pipeline_mode = #tpu.pipeline_mode<synchronous>, transform_indices = @transform_14, window_bounds = array<i64: 2, 2, 1, 32>}, {pipeline_mode = #tpu.pipeline_mode<synchronous>, transform_indices = @transform_15, window_bounds = array<i64: 2, 2, 1, 32>}, {pipeline_mode = #tpu.pipeline_mode<synchronous>, transform_indices = @transform_16, window_bounds = array<i64: 2, 2, 32, 64>}, {pipeline_mode = #tpu.pipeline_mode<synchronous>, transform_indices = @transform_17, window_bounds = array<i64: 2, 2, 1, 64>}, {pipeline_mode = #tpu.pipeline_mode<synchronous>, transform_indices = @transform_18, window_bounds = array<i64: 2, 2, 64, 32>}, {pipeline_mode = #tpu.pipeline_mode<synchronous>, transform_indices = @transform_19, window_bounds = array<i64: 2, 2, 1, 32>}, {pipeline_mode = #tpu.pipeline_mode<synchronous>, transform_indices = @transform_20, window_bounds = array<i64: 2, 2, 1, 32>}, {pipeline_mode = #tpu.pipeline_mode<synchronous>, transform_indices = @transform_21, window_bounds = array<i64: 2, 2, 1, 32>}, {transform_indices = @transform_22, window_bounds = array<i64: 1, 16, 32>}, {transform_indices = @transform_23, window_bounds = array<i64: 1, 8, 32>}]} {
    %c0 = arith.constant 0 : index
    %c0_0 = arith.constant 0 : index
    %c0_1 = arith.constant 0 : index
    %0 = vector.load %arg1[%c0, %c0_0, %c0_1] : memref<1x16x32xf32, #tpu.memory_space<vmem>>, vector<1x16x32xf32>
    %1 = vector.shape_cast %0 : vector<1x16x32xf32> to vector<16x32xf32>
    %c0_2 = arith.constant 0 : index
    %c0_3 = arith.constant 0 : index
    %c0_4 = arith.constant 0 : index
    %2 = vector.load %arg7[%c0_2, %c0_3, %c0_4] : memref<2x1x32xf32, #tpu.memory_space<vmem>>, vector<1x1x32xf32>
    %3 = vector.shape_cast %2 : vector<1x1x32xf32> to vector<1x32xf32>
    %c0_5 = arith.constant 0 : index
    %c0_6 = arith.constant 0 : index
    %c0_7 = arith.constant 0 : index
    %4 = vector.load %arg8[%c0_5, %c0_6, %c0_7] : memref<2x1x32xf32, #tpu.memory_space<vmem>>, vector<1x1x32xf32>
    %5 = vector.shape_cast %4 : vector<1x1x32xf32> to vector<1x32xf32>
    %cst = arith.constant dense<0.000000e+00> : vector<16xf32>
    %6 = vector.multi_reduction <add>, %1, %cst [1] : vector<16x32xf32> to vector<16xf32>
    %7 = vector.shape_cast %6 : vector<16xf32> to vector<16x1xf32>
    %cst_8 = arith.constant 3.200000e+01 : f32
    %8 = vector.broadcast %cst_8 : f32 to vector<16x1xf32>
    %9 = arith.divf %7, %8 : vector<16x1xf32>
    %10 = vector.broadcast %9 : vector<16x1xf32> to vector<16x32xf32>
    %11 = arith.subf %1, %10 : vector<16x32xf32>
    %12 = arith.mulf %11, %11 : vector<16x32xf32>
    %cst_9 = arith.constant dense<0.000000e+00> : vector<16xf32>
    %13 = vector.multi_reduction <add>, %12, %cst_9 [1] : vector<16x32xf32> to vector<16xf32>
    %14 = vector.shape_cast %13 : vector<16xf32> to vector<16x1xf32>
    %cst_10 = arith.constant 3.200000e+01 : f32
    %15 = vector.broadcast %cst_10 : f32 to vector<16x1xf32>
    %16 = arith.divf %14, %15 : vector<16x1xf32>
    %17 = vector.broadcast %9 : vector<16x1xf32> to vector<16x32xf32>
    %18 = arith.subf %1, %17 : vector<16x32xf32>
    %cst_11 = arith.constant 9.99999974E-6 : f32
    %19 = vector.broadcast %cst_11 : f32 to vector<16x1xf32>
    %20 = arith.addf %16, %19 : vector<16x1xf32>
    %21 = math.rsqrt %20 : vector<16x1xf32>
    %22 = vector.broadcast %21 : vector<16x1xf32> to vector<16x32xf32>
    %23 = arith.mulf %18, %22 : vector<16x32xf32>
    %24 = vector.broadcast %3 : vector<1x32xf32> to vector<16x32xf32>
    %25 = arith.mulf %23, %24 : vector<16x32xf32>
    %26 = vector.broadcast %5 : vector<1x32xf32> to vector<16x32xf32>
    %27 = arith.addf %25, %26 : vector<16x32xf32>
    %c0_12 = arith.constant 0 : index
    %c0_13 = arith.constant 0 : index
    %28 = vector.load %arg9[%c0_12, %c0_13] : memref<16x32xf32, #tpu.memory_space<vmem>>, vector<16x32xf32>
    %29 = arith.addf %27, %28 : vector<16x32xf32>
    %c0_14 = arith.constant 0 : index
    %c0_15 = arith.constant 0 : index
    %c0_16 = arith.constant 0 : index
    %30 = vector.load %arg2[%c0_14, %c0_15, %c0_16] : memref<1x8x32xf32, #tpu.memory_space<vmem>>, vector<1x8x32xf32>
    %31 = vector.shape_cast %30 : vector<1x8x32xf32> to vector<8x32xf32>
    %c1 = arith.constant 1 : index
    %c0_17 = arith.constant 0 : index
    %c0_18 = arith.constant 0 : index
    %32 = vector.load %arg7[%c1, %c0_17, %c0_18] : memref<2x1x32xf32, #tpu.memory_space<vmem>>, vector<1x1x32xf32>
    %33 = vector.shape_cast %32 : vector<1x1x32xf32> to vector<1x32xf32>
    %c1_19 = arith.constant 1 : index
    %c0_20 = arith.constant 0 : index
    %c0_21 = arith.constant 0 : index
    %34 = vector.load %arg8[%c1_19, %c0_20, %c0_21] : memref<2x1x32xf32, #tpu.memory_space<vmem>>, vector<1x1x32xf32>
    %35 = vector.shape_cast %34 : vector<1x1x32xf32> to vector<1x32xf32>
    %cst_22 = arith.constant dense<0.000000e+00> : vector<8xf32>
    %36 = vector.multi_reduction <add>, %31, %cst_22 [1] : vector<8x32xf32> to vector<8xf32>
    %37 = vector.shape_cast %36 : vector<8xf32> to vector<8x1xf32>
    %cst_23 = arith.constant 3.200000e+01 : f32
    %38 = vector.broadcast %cst_23 : f32 to vector<8x1xf32>
    %39 = arith.divf %37, %38 : vector<8x1xf32>
    %40 = vector.broadcast %39 : vector<8x1xf32> to vector<8x32xf32>
    %41 = arith.subf %31, %40 : vector<8x32xf32>
    %42 = arith.mulf %41, %41 : vector<8x32xf32>
    %cst_24 = arith.constant dense<0.000000e+00> : vector<8xf32>
    %43 = vector.multi_reduction <add>, %42, %cst_24 [1] : vector<8x32xf32> to vector<8xf32>
    %44 = vector.shape_cast %43 : vector<8xf32> to vector<8x1xf32>
    %cst_25 = arith.constant 3.200000e+01 : f32
    %45 = vector.broadcast %cst_25 : f32 to vector<8x1xf32>
    %46 = arith.divf %44, %45 : vector<8x1xf32>
    %47 = vector.broadcast %39 : vector<8x1xf32> to vector<8x32xf32>
    %48 = arith.subf %31, %47 : vector<8x32xf32>
    %cst_26 = arith.constant 9.99999974E-6 : f32
    %49 = vector.broadcast %cst_26 : f32 to vector<8x1xf32>
    %50 = arith.addf %46, %49 : vector<8x1xf32>
    %51 = math.rsqrt %50 : vector<8x1xf32>
    %52 = vector.broadcast %51 : vector<8x1xf32> to vector<8x32xf32>
    %53 = arith.mulf %48, %52 : vector<8x32xf32>
    %54 = vector.broadcast %33 : vector<1x32xf32> to vector<8x32xf32>
    %55 = arith.mulf %53, %54 : vector<8x32xf32>
    %56 = vector.broadcast %35 : vector<1x32xf32> to vector<8x32xf32>
    %57 = arith.addf %55, %56 : vector<8x32xf32>
    %c0_27 = arith.constant 0 : index
    %c0_28 = arith.constant 0 : index
    %58 = vector.load %arg10[%c0_27, %c0_28] : memref<8x32xf32, #tpu.memory_space<vmem>>, vector<8x32xf32>
    %59 = arith.addf %57, %58 : vector<8x32xf32>
    %c0_29 = arith.constant 0 : index
    %c0_30 = arith.constant 0 : index
    %c0_31 = arith.constant 0 : index
    %60 = vector.load %arg3[%c0_29, %c0_30, %c0_31] : memref<1x1x16xf32, #tpu.memory_space<vmem>>, vector<1x1x16xf32>
    %61 = vector.shape_cast %60 : vector<1x1x16xf32> to vector<1x16xf32>
    %c0_32 = arith.constant 0 : index
    %c0_33 = arith.constant 0 : index
    %c0_34 = arith.constant 0 : index
    %62 = vector.load %arg4[%c0_32, %c0_33, %c0_34] : memref<1x16x1xf32, #tpu.memory_space<vmem>>, vector<1x16x1xf32>
    %63 = vector.shape_cast %62 : vector<1x16x1xf32> to vector<16x1xf32>
    %c0_35 = arith.constant 0 : index
    %c0_36 = arith.constant 0 : index
    %c0_37 = arith.constant 0 : index
    %64 = vector.load %arg5[%c0_35, %c0_36, %c0_37] : memref<1x1x8xf32, #tpu.memory_space<vmem>>, vector<1x1x8xf32>
    %65 = vector.shape_cast %64 : vector<1x1x8xf32> to vector<1x8xf32>
    %c0_38 = arith.constant 0 : index
    %c0_39 = arith.constant 0 : index
    %c0_40 = arith.constant 0 : index
    %66 = vector.load %arg6[%c0_38, %c0_39, %c0_40] : memref<1x8x1xf32, #tpu.memory_space<vmem>>, vector<1x8x1xf32>
    %67 = vector.shape_cast %66 : vector<1x8x1xf32> to vector<8x1xf32>
    %c0_41 = arith.constant 0 : index
    %c0_42 = arith.constant 0 : index
    %c0_43 = arith.constant 0 : index
    %c0_44 = arith.constant 0 : index
    %68 = vector.load %arg11[%c0_41, %c0_42, %c0_43, %c0_44] : memref<2x2x32x96xf32, #tpu.memory_space<vmem>>, vector<1x1x32x96xf32>
    %69 = vector.shape_cast %68 : vector<1x1x32x96xf32> to vector<32x96xf32>
    %c0_45 = arith.constant 0 : index
    %c0_46 = arith.constant 0 : index
    %c0_47 = arith.constant 0 : index
    %c0_48 = arith.constant 0 : index
    %70 = vector.load %arg12[%c0_45, %c0_46, %c0_47, %c0_48] : memref<2x2x1x96xf32, #tpu.memory_space<vmem>>, vector<1x1x1x96xf32>
    %71 = vector.shape_cast %70 : vector<1x1x1x96xf32> to vector<1x96xf32>
    %c0_49 = arith.constant 0 : index
    %c0_50 = arith.constant 0 : index
    %c0_51 = arith.constant 0 : index
    %c0_52 = arith.constant 0 : index
    %72 = vector.load %arg13[%c0_49, %c0_50, %c0_51, %c0_52] : memref<2x2x32x32xf32, #tpu.memory_space<vmem>>, vector<1x1x32x32xf32>
    %73 = vector.shape_cast %72 : vector<1x1x32x32xf32> to vector<32x32xf32>
    %c0_53 = arith.constant 0 : index
    %c0_54 = arith.constant 0 : index
    %c0_55 = arith.constant 0 : index
    %c0_56 = arith.constant 0 : index
    %74 = vector.load %arg14[%c0_53, %c0_54, %c0_55, %c0_56] : memref<2x2x1x32xf32, #tpu.memory_space<vmem>>, vector<1x1x1x32xf32>
    %75 = vector.shape_cast %74 : vector<1x1x1x32xf32> to vector<1x32xf32>
    %c0_57 = arith.constant 0 : index
    %c0_58 = arith.constant 0 : index
    %c0_59 = arith.constant 0 : index
    %c0_60 = arith.constant 0 : index
    %76 = vector.load %arg15[%c0_57, %c0_58, %c0_59, %c0_60] : memref<2x2x1x32xf32, #tpu.memory_space<vmem>>, vector<1x1x1x32xf32>
    %77 = vector.shape_cast %76 : vector<1x1x1x32xf32> to vector<1x32xf32>
    %c0_61 = arith.constant 0 : index
    %c0_62 = arith.constant 0 : index
    %c0_63 = arith.constant 0 : index
    %c0_64 = arith.constant 0 : index
    %78 = vector.load %arg16[%c0_61, %c0_62, %c0_63, %c0_64] : memref<2x2x1x32xf32, #tpu.memory_space<vmem>>, vector<1x1x1x32xf32>
    %79 = vector.shape_cast %78 : vector<1x1x1x32xf32> to vector<1x32xf32>
    %cst_65 = arith.constant dense<0.000000e+00> : vector<16x96xf32>
    %80 = tpu.matmul %29, %69, %cst_65 {dimension_numbers = #tpu.dot_dimension_numbers<[1], [0], [0], [1], [0, 0, 1, 1], [], []>} : vector<16x32xf32>, vector<32x96xf32>, vector<16x96xf32> -> vector<16x96xf32>
    %81 = vector.broadcast %71 : vector<1x96xf32> to vector<16x96xf32>
    %82 = arith.addf %80, %81 : vector<16x96xf32>
    %83 = vector.extract_strided_slice %82 {offsets = [0, 0], sizes = [16, 8], strides = [1, 1]} : vector<16x96xf32> to vector<16x8xf32>
    %84 = vector.extract_strided_slice %82 {offsets = [0, 8], sizes = [16, 8], strides = [1, 1]} : vector<16x96xf32> to vector<16x8xf32>
    %85 = vector.extract_strided_slice %82 {offsets = [0, 16], sizes = [16, 8], strides = [1, 1]} : vector<16x96xf32> to vector<16x8xf32>
    %86 = vector.extract_strided_slice %82 {offsets = [0, 24], sizes = [16, 8], strides = [1, 1]} : vector<16x96xf32> to vector<16x8xf32>
    %87 = vector.shape_cast %83 : vector<16x8xf32> to vector<1x16x8xf32>
    %88 = vector.shape_cast %84 : vector<16x8xf32> to vector<1x16x8xf32>
    %89 = vector.shape_cast %85 : vector<16x8xf32> to vector<1x16x8xf32>
    %90 = vector.shape_cast %86 : vector<16x8xf32> to vector<1x16x8xf32>
    %91 = tpu.concatenate %87, %88, %89, %90 in 0 : vector<1x16x8xf32>, vector<1x16x8xf32>, vector<1x16x8xf32>, vector<1x16x8xf32> -> vector<4x16x8xf32>
    %92 = vector.extract_strided_slice %82 {offsets = [0, 32], sizes = [16, 8], strides = [1, 1]} : vector<16x96xf32> to vector<16x8xf32>
    %93 = vector.extract_strided_slice %82 {offsets = [0, 40], sizes = [16, 8], strides = [1, 1]} : vector<16x96xf32> to vector<16x8xf32>
    %94 = vector.extract_strided_slice %82 {offsets = [0, 48], sizes = [16, 8], strides = [1, 1]} : vector<16x96xf32> to vector<16x8xf32>
    %95 = vector.extract_strided_slice %82 {offsets = [0, 56], sizes = [16, 8], strides = [1, 1]} : vector<16x96xf32> to vector<16x8xf32>
    %96 = vector.shape_cast %92 : vector<16x8xf32> to vector<1x16x8xf32>
    %97 = vector.shape_cast %93 : vector<16x8xf32> to vector<1x16x8xf32>
    %98 = vector.shape_cast %94 : vector<16x8xf32> to vector<1x16x8xf32>
    %99 = vector.shape_cast %95 : vector<16x8xf32> to vector<1x16x8xf32>
    %100 = tpu.concatenate %96, %97, %98, %99 in 0 : vector<1x16x8xf32>, vector<1x16x8xf32>, vector<1x16x8xf32>, vector<1x16x8xf32> -> vector<4x16x8xf32>
    %101 = vector.extract_strided_slice %82 {offsets = [0, 64], sizes = [16, 8], strides = [1, 1]} : vector<16x96xf32> to vector<16x8xf32>
    %102 = vector.extract_strided_slice %82 {offsets = [0, 72], sizes = [16, 8], strides = [1, 1]} : vector<16x96xf32> to vector<16x8xf32>
    %103 = vector.extract_strided_slice %82 {offsets = [0, 80], sizes = [16, 8], strides = [1, 1]} : vector<16x96xf32> to vector<16x8xf32>
    %104 = vector.extract_strided_slice %82 {offsets = [0, 88], sizes = [16, 8], strides = [1, 1]} : vector<16x96xf32> to vector<16x8xf32>
    %105 = vector.shape_cast %101 : vector<16x8xf32> to vector<1x16x8xf32>
    %106 = vector.shape_cast %102 : vector<16x8xf32> to vector<1x16x8xf32>
    %107 = vector.shape_cast %103 : vector<16x8xf32> to vector<1x16x8xf32>
    %108 = vector.shape_cast %104 : vector<16x8xf32> to vector<1x16x8xf32>
    %109 = tpu.concatenate %105, %106, %107, %108 in 0 : vector<1x16x8xf32>, vector<1x16x8xf32>, vector<1x16x8xf32>, vector<1x16x8xf32> -> vector<4x16x8xf32>
    "tpu.trace_start"() <{level = 10 : i32, message = "hqd,hkd->hqk"}> : () -> ()
    %cst_66 = arith.constant dense<0.000000e+00> : vector<4x16x16xf32>
    %110 = tpu.matmul %91, %100, %cst_66 {dimension_numbers = #tpu.dot_dimension_numbers<[2], [2], [1], [1], [0, 0, 0, 1, 1, 1], [0], [0]>} : vector<4x16x8xf32>, vector<4x16x8xf32>, vector<4x16x16xf32> -> vector<4x16x16xf32>
    "tpu.trace_stop"() : () -> ()
    %cst_67 = arith.constant 0.353553385 : f32
    %111 = vector.broadcast %cst_67 : f32 to vector<4x16x16xf32>
    %112 = arith.mulf %110, %111 : vector<4x16x16xf32>
    %113 = vector.shape_cast %61 : vector<1x16xf32> to vector<1x1x16xf32>
    %114 = vector.broadcast %113 : vector<1x1x16xf32> to vector<4x16x16xf32>
    %115 = arith.addf %112, %114 : vector<4x16x16xf32>
    %cst_68 = arith.constant dense<0xFF800000> : vector<4x16xf32>
    %116 = vector.multi_reduction <maximumf>, %115, %cst_68 [2] : vector<4x16x16xf32> to vector<4x16xf32>
    %117 = vector.shape_cast %116 : vector<4x16xf32> to vector<4x16x1xf32>
    %118 = vector.broadcast %117 : vector<4x16x1xf32> to vector<4x16x16xf32>
    %119 = arith.subf %115, %118 : vector<4x16x16xf32>
    %120 = math.exp %119 : vector<4x16x16xf32>
    %cst_69 = arith.constant dense<0.000000e+00> : vector<4x16xf32>
    %121 = vector.multi_reduction <add>, %120, %cst_69 [2] : vector<4x16x16xf32> to vector<4x16xf32>
    %122 = vector.shape_cast %121 : vector<4x16xf32> to vector<4x16x1xf32>
    %123 = tpu.reciprocal %122 {approx = true} : vector<4x16x1xf32> -> vector<4x16x1xf32>
    %124 = vector.broadcast %123 : vector<4x16x1xf32> to vector<4x16x16xf32>
    %125 = arith.mulf %120, %124 : vector<4x16x16xf32>
    "tpu.trace_start"() <{level = 10 : i32, message = "hqk,hkd->hqd"}> : () -> ()
    %cst_70 = arith.constant dense<0.000000e+00> : vector<4x16x8xf32>
    %126 = tpu.matmul %125, %109, %cst_70 {dimension_numbers = #tpu.dot_dimension_numbers<[2], [1], [1], [2], [0, 0, 0, 1, 1, 2], [0], [0]>} : vector<4x16x16xf32>, vector<4x16x8xf32>, vector<4x16x8xf32> -> vector<4x16x8xf32>
    "tpu.trace_stop"() : () -> ()
    %127 = vector.extract_strided_slice %126 {offsets = [0, 0, 0], sizes = [1, 16, 8], strides = [1, 1, 1]} : vector<4x16x8xf32> to vector<1x16x8xf32>
    %128 = vector.shape_cast %127 : vector<1x16x8xf32> to vector<16x8xf32>
    %129 = vector.extract_strided_slice %126 {offsets = [1, 0, 0], sizes = [1, 16, 8], strides = [1, 1, 1]} : vector<4x16x8xf32> to vector<1x16x8xf32>
    %130 = vector.shape_cast %129 : vector<1x16x8xf32> to vector<16x8xf32>
    %131 = vector.extract_strided_slice %126 {offsets = [2, 0, 0], sizes = [1, 16, 8], strides = [1, 1, 1]} : vector<4x16x8xf32> to vector<1x16x8xf32>
    %132 = vector.shape_cast %131 : vector<1x16x8xf32> to vector<16x8xf32>
    %133 = vector.extract_strided_slice %126 {offsets = [3, 0, 0], sizes = [1, 16, 8], strides = [1, 1, 1]} : vector<4x16x8xf32> to vector<1x16x8xf32>
    %134 = vector.shape_cast %133 : vector<1x16x8xf32> to vector<16x8xf32>
    %135 = tpu.concatenate %128, %130, %132, %134 in 1 : vector<16x8xf32>, vector<16x8xf32>, vector<16x8xf32>, vector<16x8xf32> -> vector<16x32xf32>
    %cst_71 = arith.constant dense<0.000000e+00> : vector<16x32xf32>
    %136 = tpu.matmul %135, %73, %cst_71 {dimension_numbers = #tpu.dot_dimension_numbers<[1], [0], [0], [1], [0, 0, 1, 1], [], []>} : vector<16x32xf32>, vector<32x32xf32>, vector<16x32xf32> -> vector<16x32xf32>
    %137 = vector.broadcast %75 : vector<1x32xf32> to vector<16x32xf32>
    %138 = arith.addf %136, %137 : vector<16x32xf32>
    %139 = arith.addf %29, %138 : vector<16x32xf32>
    %cst_72 = arith.constant dense<0.000000e+00> : vector<16xf32>
    %140 = vector.multi_reduction <add>, %139, %cst_72 [1] : vector<16x32xf32> to vector<16xf32>
    %141 = vector.shape_cast %140 : vector<16xf32> to vector<16x1xf32>
    %cst_73 = arith.constant 3.200000e+01 : f32
    %142 = vector.broadcast %cst_73 : f32 to vector<16x1xf32>
    %143 = arith.divf %141, %142 : vector<16x1xf32>
    %144 = vector.broadcast %143 : vector<16x1xf32> to vector<16x32xf32>
    %145 = arith.subf %139, %144 : vector<16x32xf32>
    %146 = arith.mulf %145, %145 : vector<16x32xf32>
    %cst_74 = arith.constant dense<0.000000e+00> : vector<16xf32>
    %147 = vector.multi_reduction <add>, %146, %cst_74 [1] : vector<16x32xf32> to vector<16xf32>
    %148 = vector.shape_cast %147 : vector<16xf32> to vector<16x1xf32>
    %cst_75 = arith.constant 3.200000e+01 : f32
    %149 = vector.broadcast %cst_75 : f32 to vector<16x1xf32>
    %150 = arith.divf %148, %149 : vector<16x1xf32>
    %151 = vector.broadcast %143 : vector<16x1xf32> to vector<16x32xf32>
    %152 = arith.subf %139, %151 : vector<16x32xf32>
    %cst_76 = arith.constant 9.99999974E-6 : f32
    %153 = vector.broadcast %cst_76 : f32 to vector<16x1xf32>
    %154 = arith.addf %150, %153 : vector<16x1xf32>
    %155 = math.rsqrt %154 : vector<16x1xf32>
    %156 = vector.broadcast %155 : vector<16x1xf32> to vector<16x32xf32>
    %157 = arith.mulf %152, %156 : vector<16x32xf32>
    %158 = vector.broadcast %77 : vector<1x32xf32> to vector<16x32xf32>
    %159 = arith.mulf %157, %158 : vector<16x32xf32>
    %160 = vector.broadcast %79 : vector<1x32xf32> to vector<16x32xf32>
    %161 = arith.addf %159, %160 : vector<16x32xf32>
    %162 = vector.broadcast %63 : vector<16x1xf32> to vector<16x32xf32>
    %163 = arith.mulf %161, %162 : vector<16x32xf32>
    %c0_77 = arith.constant 0 : index
    %c0_78 = arith.constant 0 : index
    %c0_79 = arith.constant 0 : index
    %c0_80 = arith.constant 0 : index
    %164 = vector.load %arg17[%c0_77, %c0_78, %c0_79, %c0_80] : memref<2x2x32x64xf32, #tpu.memory_space<vmem>>, vector<1x1x32x64xf32>
    %165 = vector.shape_cast %164 : vector<1x1x32x64xf32> to vector<32x64xf32>
    %c0_81 = arith.constant 0 : index
    %c0_82 = arith.constant 0 : index
    %c0_83 = arith.constant 0 : index
    %c0_84 = arith.constant 0 : index
    %166 = vector.load %arg18[%c0_81, %c0_82, %c0_83, %c0_84] : memref<2x2x1x64xf32, #tpu.memory_space<vmem>>, vector<1x1x1x64xf32>
    %167 = vector.shape_cast %166 : vector<1x1x1x64xf32> to vector<1x64xf32>
    %c0_85 = arith.constant 0 : index
    %c0_86 = arith.constant 0 : index
    %c0_87 = arith.constant 0 : index
    %c0_88 = arith.constant 0 : index
    %168 = vector.load %arg19[%c0_85, %c0_86, %c0_87, %c0_88] : memref<2x2x64x32xf32, #tpu.memory_space<vmem>>, vector<1x1x64x32xf32>
    %169 = vector.shape_cast %168 : vector<1x1x64x32xf32> to vector<64x32xf32>
    %c0_89 = arith.constant 0 : index
    %c0_90 = arith.constant 0 : index
    %c0_91 = arith.constant 0 : index
    %c0_92 = arith.constant 0 : index
    %170 = vector.load %arg20[%c0_89, %c0_90, %c0_91, %c0_92] : memref<2x2x1x32xf32, #tpu.memory_space<vmem>>, vector<1x1x1x32xf32>
    %171 = vector.shape_cast %170 : vector<1x1x1x32xf32> to vector<1x32xf32>
    %c0_93 = arith.constant 0 : index
    %c0_94 = arith.constant 0 : index
    %c0_95 = arith.constant 0 : index
    %c0_96 = arith.constant 0 : index
    %172 = vector.load %arg21[%c0_93, %c0_94, %c0_95, %c0_96] : memref<2x2x1x32xf32, #tpu.memory_space<vmem>>, vector<1x1x1x32xf32>
    %173 = vector.shape_cast %172 : vector<1x1x1x32xf32> to vector<1x32xf32>
    %c0_97 = arith.constant 0 : index
    %c0_98 = arith.constant 0 : index
    %c0_99 = arith.constant 0 : index
    %c0_100 = arith.constant 0 : index
    %174 = vector.load %arg22[%c0_97, %c0_98, %c0_99, %c0_100] : memref<2x2x1x32xf32, #tpu.memory_space<vmem>>, vector<1x1x1x32xf32>
    %175 = vector.shape_cast %174 : vector<1x1x1x32xf32> to vector<1x32xf32>
    %cst_101 = arith.constant dense<0.000000e+00> : vector<16x64xf32>
    %176 = tpu.matmul %163, %165, %cst_101 {dimension_numbers = #tpu.dot_dimension_numbers<[1], [0], [0], [1], [0, 0, 1, 1], [], []>} : vector<16x32xf32>, vector<32x64xf32>, vector<16x64xf32> -> vector<16x64xf32>
    %177 = vector.broadcast %167 : vector<1x64xf32> to vector<16x64xf32>
    %178 = arith.addf %176, %177 : vector<16x64xf32>
    %cst_102 = arith.constant 0.000000e+00 : f32
    %179 = vector.broadcast %cst_102 : f32 to vector<16x64xf32>
    %180 = arith.maximumf %178, %179 : vector<16x64xf32>
    %cst_103 = arith.constant dense<0.000000e+00> : vector<16x32xf32>
    %181 = tpu.matmul %180, %169, %cst_103 {dimension_numbers = #tpu.dot_dimension_numbers<[1], [0], [0], [1], [0, 0, 1, 1], [], []>} : vector<16x64xf32>, vector<64x32xf32>, vector<16x32xf32> -> vector<16x32xf32>
    %182 = vector.broadcast %171 : vector<1x32xf32> to vector<16x32xf32>
    %183 = arith.addf %181, %182 : vector<16x32xf32>
    %184 = arith.addf %163, %183 : vector<16x32xf32>
    %cst_104 = arith.constant dense<0.000000e+00> : vector<16xf32>
    %185 = vector.multi_reduction <add>, %184, %cst_104 [1] : vector<16x32xf32> to vector<16xf32>
    %186 = vector.shape_cast %185 : vector<16xf32> to vector<16x1xf32>
    %cst_105 = arith.constant 3.200000e+01 : f32
    %187 = vector.broadcast %cst_105 : f32 to vector<16x1xf32>
    %188 = arith.divf %186, %187 : vector<16x1xf32>
    %189 = vector.broadcast %188 : vector<16x1xf32> to vector<16x32xf32>
    %190 = arith.subf %184, %189 : vector<16x32xf32>
    %191 = arith.mulf %190, %190 : vector<16x32xf32>
    %cst_106 = arith.constant dense<0.000000e+00> : vector<16xf32>
    %192 = vector.multi_reduction <add>, %191, %cst_106 [1] : vector<16x32xf32> to vector<16xf32>
    %193 = vector.shape_cast %192 : vector<16xf32> to vector<16x1xf32>
    %cst_107 = arith.constant 3.200000e+01 : f32
    %194 = vector.broadcast %cst_107 : f32 to vector<16x1xf32>
    %195 = arith.divf %193, %194 : vector<16x1xf32>
    %196 = vector.broadcast %188 : vector<16x1xf32> to vector<16x32xf32>
    %197 = arith.subf %184, %196 : vector<16x32xf32>
    %cst_108 = arith.constant 9.99999974E-6 : f32
    %198 = vector.broadcast %cst_108 : f32 to vector<16x1xf32>
    %199 = arith.addf %195, %198 : vector<16x1xf32>
    %200 = math.rsqrt %199 : vector<16x1xf32>
    %201 = vector.broadcast %200 : vector<16x1xf32> to vector<16x32xf32>
    %202 = arith.mulf %197, %201 : vector<16x32xf32>
    %203 = vector.broadcast %173 : vector<1x32xf32> to vector<16x32xf32>
    %204 = arith.mulf %202, %203 : vector<16x32xf32>
    %205 = vector.broadcast %175 : vector<1x32xf32> to vector<16x32xf32>
    %206 = arith.addf %204, %205 : vector<16x32xf32>
    %c1_109 = arith.constant 1 : index
    %c0_110 = arith.constant 0 : index
    %c0_111 = arith.constant 0 : index
    %c0_112 = arith.constant 0 : index
    %207 = vector.load %arg11[%c1_109, %c0_110, %c0_111, %c0_112] : memref<2x2x32x96xf32, #tpu.memory_space<vmem>>, vector<1x1x32x96xf32>
    %208 = vector.shape_cast %207 : vector<1x1x32x96xf32> to vector<32x96xf32>
    %c1_113 = arith.constant 1 : index
    %c0_114 = arith.constant 0 : index
    %c0_115 = arith.constant 0 : index
    %c0_116 = arith.constant 0 : index
    %209 = vector.load %arg12[%c1_113, %c0_114, %c0_115, %c0_116] : memref<2x2x1x96xf32, #tpu.memory_space<vmem>>, vector<1x1x1x96xf32>
    %210 = vector.shape_cast %209 : vector<1x1x1x96xf32> to vector<1x96xf32>
    %c1_117 = arith.constant 1 : index
    %c0_118 = arith.constant 0 : index
    %c0_119 = arith.constant 0 : index
    %c0_120 = arith.constant 0 : index
    %211 = vector.load %arg13[%c1_117, %c0_118, %c0_119, %c0_120] : memref<2x2x32x32xf32, #tpu.memory_space<vmem>>, vector<1x1x32x32xf32>
    %212 = vector.shape_cast %211 : vector<1x1x32x32xf32> to vector<32x32xf32>
    %c1_121 = arith.constant 1 : index
    %c0_122 = arith.constant 0 : index
    %c0_123 = arith.constant 0 : index
    %c0_124 = arith.constant 0 : index
    %213 = vector.load %arg14[%c1_121, %c0_122, %c0_123, %c0_124] : memref<2x2x1x32xf32, #tpu.memory_space<vmem>>, vector<1x1x1x32xf32>
    %214 = vector.shape_cast %213 : vector<1x1x1x32xf32> to vector<1x32xf32>
    %c1_125 = arith.constant 1 : index
    %c0_126 = arith.constant 0 : index
    %c0_127 = arith.constant 0 : index
    %c0_128 = arith.constant 0 : index
    %215 = vector.load %arg15[%c1_125, %c0_126, %c0_127, %c0_128] : memref<2x2x1x32xf32, #tpu.memory_space<vmem>>, vector<1x1x1x32xf32>
    %216 = vector.shape_cast %215 : vector<1x1x1x32xf32> to vector<1x32xf32>
    %c1_129 = arith.constant 1 : index
    %c0_130 = arith.constant 0 : index
    %c0_131 = arith.constant 0 : index
    %c0_132 = arith.constant 0 : index
    %217 = vector.load %arg16[%c1_129, %c0_130, %c0_131, %c0_132] : memref<2x2x1x32xf32, #tpu.memory_space<vmem>>, vector<1x1x1x32xf32>
    %218 = vector.shape_cast %217 : vector<1x1x1x32xf32> to vector<1x32xf32>
    %cst_133 = arith.constant dense<0.000000e+00> : vector<8x96xf32>
    %219 = tpu.matmul %59, %208, %cst_133 {dimension_numbers = #tpu.dot_dimension_numbers<[1], [0], [0], [1], [0, 0, 1, 1], [], []>} : vector<8x32xf32>, vector<32x96xf32>, vector<8x96xf32> -> vector<8x96xf32>
    %220 = vector.broadcast %210 : vector<1x96xf32> to vector<8x96xf32>
    %221 = arith.addf %219, %220 : vector<8x96xf32>
    %222 = vector.extract_strided_slice %221 {offsets = [0, 0], sizes = [8, 8], strides = [1, 1]} : vector<8x96xf32> to vector<8x8xf32>
    %223 = vector.extract_strided_slice %221 {offsets = [0, 8], sizes = [8, 8], strides = [1, 1]} : vector<8x96xf32> to vector<8x8xf32>
    %224 = vector.extract_strided_slice %221 {offsets = [0, 16], sizes = [8, 8], strides = [1, 1]} : vector<8x96xf32> to vector<8x8xf32>
    %225 = vector.extract_strided_slice %221 {offsets = [0, 24], sizes = [8, 8], strides = [1, 1]} : vector<8x96xf32> to vector<8x8xf32>
    %226 = vector.shape_cast %222 : vector<8x8xf32> to vector<1x8x8xf32>
    %227 = vector.shape_cast %223 : vector<8x8xf32> to vector<1x8x8xf32>
    %228 = vector.shape_cast %224 : vector<8x8xf32> to vector<1x8x8xf32>
    %229 = vector.shape_cast %225 : vector<8x8xf32> to vector<1x8x8xf32>
    %230 = tpu.concatenate %226, %227, %228, %229 in 0 : vector<1x8x8xf32>, vector<1x8x8xf32>, vector<1x8x8xf32>, vector<1x8x8xf32> -> vector<4x8x8xf32>
    %231 = vector.extract_strided_slice %221 {offsets = [0, 32], sizes = [8, 8], strides = [1, 1]} : vector<8x96xf32> to vector<8x8xf32>
    %232 = vector.extract_strided_slice %221 {offsets = [0, 40], sizes = [8, 8], strides = [1, 1]} : vector<8x96xf32> to vector<8x8xf32>
    %233 = vector.extract_strided_slice %221 {offsets = [0, 48], sizes = [8, 8], strides = [1, 1]} : vector<8x96xf32> to vector<8x8xf32>
    %234 = vector.extract_strided_slice %221 {offsets = [0, 56], sizes = [8, 8], strides = [1, 1]} : vector<8x96xf32> to vector<8x8xf32>
    %235 = vector.shape_cast %231 : vector<8x8xf32> to vector<1x8x8xf32>
    %236 = vector.shape_cast %232 : vector<8x8xf32> to vector<1x8x8xf32>
    %237 = vector.shape_cast %233 : vector<8x8xf32> to vector<1x8x8xf32>
    %238 = vector.shape_cast %234 : vector<8x8xf32> to vector<1x8x8xf32>
    %239 = tpu.concatenate %235, %236, %237, %238 in 0 : vector<1x8x8xf32>, vector<1x8x8xf32>, vector<1x8x8xf32>, vector<1x8x8xf32> -> vector<4x8x8xf32>
    %240 = vector.extract_strided_slice %221 {offsets = [0, 64], sizes = [8, 8], strides = [1, 1]} : vector<8x96xf32> to vector<8x8xf32>
    %241 = vector.extract_strided_slice %221 {offsets = [0, 72], sizes = [8, 8], strides = [1, 1]} : vector<8x96xf32> to vector<8x8xf32>
    %242 = vector.extract_strided_slice %221 {offsets = [0, 80], sizes = [8, 8], strides = [1, 1]} : vector<8x96xf32> to vector<8x8xf32>
    %243 = vector.extract_strided_slice %221 {offsets = [0, 88], sizes = [8, 8], strides = [1, 1]} : vector<8x96xf32> to vector<8x8xf32>
    %244 = vector.shape_cast %240 : vector<8x8xf32> to vector<1x8x8xf32>
    %245 = vector.shape_cast %241 : vector<8x8xf32> to vector<1x8x8xf32>
    %246 = vector.shape_cast %242 : vector<8x8xf32> to vector<1x8x8xf32>
    %247 = vector.shape_cast %243 : vector<8x8xf32> to vector<1x8x8xf32>
    %248 = tpu.concatenate %244, %245, %246, %247 in 0 : vector<1x8x8xf32>, vector<1x8x8xf32>, vector<1x8x8xf32>, vector<1x8x8xf32> -> vector<4x8x8xf32>
    "tpu.trace_start"() <{level = 10 : i32, message = "hqd,hkd->hqk"}> : () -> ()
    %cst_134 = arith.constant dense<0.000000e+00> : vector<4x8x8xf32>
    %249 = tpu.matmul %230, %239, %cst_134 {dimension_numbers = #tpu.dot_dimension_numbers<[2], [2], [1], [1], [0, 0, 0, 1, 1, 1], [0], [0]>} : vector<4x8x8xf32>, vector<4x8x8xf32>, vector<4x8x8xf32> -> vector<4x8x8xf32>
    "tpu.trace_stop"() : () -> ()
    %cst_135 = arith.constant 0.353553385 : f32
    %250 = vector.broadcast %cst_135 : f32 to vector<4x8x8xf32>
    %251 = arith.mulf %249, %250 : vector<4x8x8xf32>
    %252 = vector.shape_cast %65 : vector<1x8xf32> to vector<1x1x8xf32>
    %253 = vector.broadcast %252 : vector<1x1x8xf32> to vector<4x8x8xf32>
    %254 = arith.addf %251, %253 : vector<4x8x8xf32>
    %cst_136 = arith.constant dense<0xFF800000> : vector<4x8xf32>
    %255 = vector.multi_reduction <maximumf>, %254, %cst_136 [2] : vector<4x8x8xf32> to vector<4x8xf32>
    %256 = vector.shape_cast %255 : vector<4x8xf32> to vector<4x8x1xf32>
    %257 = vector.broadcast %256 : vector<4x8x1xf32> to vector<4x8x8xf32>
    %258 = arith.subf %254, %257 : vector<4x8x8xf32>
    %259 = math.exp %258 : vector<4x8x8xf32>
    %cst_137 = arith.constant dense<0.000000e+00> : vector<4x8xf32>
    %260 = vector.multi_reduction <add>, %259, %cst_137 [2] : vector<4x8x8xf32> to vector<4x8xf32>
    %261 = vector.shape_cast %260 : vector<4x8xf32> to vector<4x8x1xf32>
    %262 = tpu.reciprocal %261 {approx = true} : vector<4x8x1xf32> -> vector<4x8x1xf32>
    %263 = vector.broadcast %262 : vector<4x8x1xf32> to vector<4x8x8xf32>
    %264 = arith.mulf %259, %263 : vector<4x8x8xf32>
    "tpu.trace_start"() <{level = 10 : i32, message = "hqk,hkd->hqd"}> : () -> ()
    %cst_138 = arith.constant dense<0.000000e+00> : vector<4x8x8xf32>
    %265 = tpu.matmul %264, %248, %cst_138 {dimension_numbers = #tpu.dot_dimension_numbers<[2], [1], [1], [2], [0, 0, 0, 1, 1, 2], [0], [0]>} : vector<4x8x8xf32>, vector<4x8x8xf32>, vector<4x8x8xf32> -> vector<4x8x8xf32>
    "tpu.trace_stop"() : () -> ()
    %266 = vector.extract_strided_slice %265 {offsets = [0, 0, 0], sizes = [1, 8, 8], strides = [1, 1, 1]} : vector<4x8x8xf32> to vector<1x8x8xf32>
    %267 = vector.shape_cast %266 : vector<1x8x8xf32> to vector<8x8xf32>
    %268 = vector.extract_strided_slice %265 {offsets = [1, 0, 0], sizes = [1, 8, 8], strides = [1, 1, 1]} : vector<4x8x8xf32> to vector<1x8x8xf32>
    %269 = vector.shape_cast %268 : vector<1x8x8xf32> to vector<8x8xf32>
    %270 = vector.extract_strided_slice %265 {offsets = [2, 0, 0], sizes = [1, 8, 8], strides = [1, 1, 1]} : vector<4x8x8xf32> to vector<1x8x8xf32>
    %271 = vector.shape_cast %270 : vector<1x8x8xf32> to vector<8x8xf32>
    %272 = vector.extract_strided_slice %265 {offsets = [3, 0, 0], sizes = [1, 8, 8], strides = [1, 1, 1]} : vector<4x8x8xf32> to vector<1x8x8xf32>
    %273 = vector.shape_cast %272 : vector<1x8x8xf32> to vector<8x8xf32>
    %274 = tpu.concatenate %267, %269, %271, %273 in 1 : vector<8x8xf32>, vector<8x8xf32>, vector<8x8xf32>, vector<8x8xf32> -> vector<8x32xf32>
    %cst_139 = arith.constant dense<0.000000e+00> : vector<8x32xf32>
    %275 = tpu.matmul %274, %212, %cst_139 {dimension_numbers = #tpu.dot_dimension_numbers<[1], [0], [0], [1], [0, 0, 1, 1], [], []>} : vector<8x32xf32>, vector<32x32xf32>, vector<8x32xf32> -> vector<8x32xf32>
    %276 = vector.broadcast %214 : vector<1x32xf32> to vector<8x32xf32>
    %277 = arith.addf %275, %276 : vector<8x32xf32>
    %278 = arith.addf %59, %277 : vector<8x32xf32>
    %cst_140 = arith.constant dense<0.000000e+00> : vector<8xf32>
    %279 = vector.multi_reduction <add>, %278, %cst_140 [1] : vector<8x32xf32> to vector<8xf32>
    %280 = vector.shape_cast %279 : vector<8xf32> to vector<8x1xf32>
    %cst_141 = arith.constant 3.200000e+01 : f32
    %281 = vector.broadcast %cst_141 : f32 to vector<8x1xf32>
    %282 = arith.divf %280, %281 : vector<8x1xf32>
    %283 = vector.broadcast %282 : vector<8x1xf32> to vector<8x32xf32>
    %284 = arith.subf %278, %283 : vector<8x32xf32>
    %285 = arith.mulf %284, %284 : vector<8x32xf32>
    %cst_142 = arith.constant dense<0.000000e+00> : vector<8xf32>
    %286 = vector.multi_reduction <add>, %285, %cst_142 [1] : vector<8x32xf32> to vector<8xf32>
    %287 = vector.shape_cast %286 : vector<8xf32> to vector<8x1xf32>
    %cst_143 = arith.constant 3.200000e+01 : f32
    %288 = vector.broadcast %cst_143 : f32 to vector<8x1xf32>
    %289 = arith.divf %287, %288 : vector<8x1xf32>
    %290 = vector.broadcast %282 : vector<8x1xf32> to vector<8x32xf32>
    %291 = arith.subf %278, %290 : vector<8x32xf32>
    %cst_144 = arith.constant 9.99999974E-6 : f32
    %292 = vector.broadcast %cst_144 : f32 to vector<8x1xf32>
    %293 = arith.addf %289, %292 : vector<8x1xf32>
    %294 = math.rsqrt %293 : vector<8x1xf32>
    %295 = vector.broadcast %294 : vector<8x1xf32> to vector<8x32xf32>
    %296 = arith.mulf %291, %295 : vector<8x32xf32>
    %297 = vector.broadcast %216 : vector<1x32xf32> to vector<8x32xf32>
    %298 = arith.mulf %296, %297 : vector<8x32xf32>
    %299 = vector.broadcast %218 : vector<1x32xf32> to vector<8x32xf32>
    %300 = arith.addf %298, %299 : vector<8x32xf32>
    %301 = vector.broadcast %67 : vector<8x1xf32> to vector<8x32xf32>
    %302 = arith.mulf %300, %301 : vector<8x32xf32>
    %c1_145 = arith.constant 1 : index
    %c0_146 = arith.constant 0 : index
    %c0_147 = arith.constant 0 : index
    %c0_148 = arith.constant 0 : index
    %303 = vector.load %arg17[%c1_145, %c0_146, %c0_147, %c0_148] : memref<2x2x32x64xf32, #tpu.memory_space<vmem>>, vector<1x1x32x64xf32>
    %304 = vector.shape_cast %303 : vector<1x1x32x64xf32> to vector<32x64xf32>
    %c1_149 = arith.constant 1 : index
    %c0_150 = arith.constant 0 : index
    %c0_151 = arith.constant 0 : index
    %c0_152 = arith.constant 0 : index
    %305 = vector.load %arg18[%c1_149, %c0_150, %c0_151, %c0_152] : memref<2x2x1x64xf32, #tpu.memory_space<vmem>>, vector<1x1x1x64xf32>
    %306 = vector.shape_cast %305 : vector<1x1x1x64xf32> to vector<1x64xf32>
    %c1_153 = arith.constant 1 : index
    %c0_154 = arith.constant 0 : index
    %c0_155 = arith.constant 0 : index
    %c0_156 = arith.constant 0 : index
    %307 = vector.load %arg19[%c1_153, %c0_154, %c0_155, %c0_156] : memref<2x2x64x32xf32, #tpu.memory_space<vmem>>, vector<1x1x64x32xf32>
    %308 = vector.shape_cast %307 : vector<1x1x64x32xf32> to vector<64x32xf32>
    %c1_157 = arith.constant 1 : index
    %c0_158 = arith.constant 0 : index
    %c0_159 = arith.constant 0 : index
    %c0_160 = arith.constant 0 : index
    %309 = vector.load %arg20[%c1_157, %c0_158, %c0_159, %c0_160] : memref<2x2x1x32xf32, #tpu.memory_space<vmem>>, vector<1x1x1x32xf32>
    %310 = vector.shape_cast %309 : vector<1x1x1x32xf32> to vector<1x32xf32>
    %c1_161 = arith.constant 1 : index
    %c0_162 = arith.constant 0 : index
    %c0_163 = arith.constant 0 : index
    %c0_164 = arith.constant 0 : index
    %311 = vector.load %arg21[%c1_161, %c0_162, %c0_163, %c0_164] : memref<2x2x1x32xf32, #tpu.memory_space<vmem>>, vector<1x1x1x32xf32>
    %312 = vector.shape_cast %311 : vector<1x1x1x32xf32> to vector<1x32xf32>
    %c1_165 = arith.constant 1 : index
    %c0_166 = arith.constant 0 : index
    %c0_167 = arith.constant 0 : index
    %c0_168 = arith.constant 0 : index
    %313 = vector.load %arg22[%c1_165, %c0_166, %c0_167, %c0_168] : memref<2x2x1x32xf32, #tpu.memory_space<vmem>>, vector<1x1x1x32xf32>
    %314 = vector.shape_cast %313 : vector<1x1x1x32xf32> to vector<1x32xf32>
    %cst_169 = arith.constant dense<0.000000e+00> : vector<8x64xf32>
    %315 = tpu.matmul %302, %304, %cst_169 {dimension_numbers = #tpu.dot_dimension_numbers<[1], [0], [0], [1], [0, 0, 1, 1], [], []>} : vector<8x32xf32>, vector<32x64xf32>, vector<8x64xf32> -> vector<8x64xf32>
    %316 = vector.broadcast %306 : vector<1x64xf32> to vector<8x64xf32>
    %317 = arith.addf %315, %316 : vector<8x64xf32>
    %cst_170 = arith.constant 0.000000e+00 : f32
    %318 = vector.broadcast %cst_170 : f32 to vector<8x64xf32>
    %319 = arith.maximumf %317, %318 : vector<8x64xf32>
    %cst_171 = arith.constant dense<0.000000e+00> : vector<8x32xf32>
    %320 = tpu.matmul %319, %308, %cst_171 {dimension_numbers = #tpu.dot_dimension_numbers<[1], [0], [0], [1], [0, 0, 1, 1], [], []>} : vector<8x64xf32>, vector<64x32xf32>, vector<8x32xf32> -> vector<8x32xf32>
    %321 = vector.broadcast %310 : vector<1x32xf32> to vector<8x32xf32>
    %322 = arith.addf %320, %321 : vector<8x32xf32>
    %323 = arith.addf %302, %322 : vector<8x32xf32>
    %cst_172 = arith.constant dense<0.000000e+00> : vector<8xf32>
    %324 = vector.multi_reduction <add>, %323, %cst_172 [1] : vector<8x32xf32> to vector<8xf32>
    %325 = vector.shape_cast %324 : vector<8xf32> to vector<8x1xf32>
    %cst_173 = arith.constant 3.200000e+01 : f32
    %326 = vector.broadcast %cst_173 : f32 to vector<8x1xf32>
    %327 = arith.divf %325, %326 : vector<8x1xf32>
    %328 = vector.broadcast %327 : vector<8x1xf32> to vector<8x32xf32>
    %329 = arith.subf %323, %328 : vector<8x32xf32>
    %330 = arith.mulf %329, %329 : vector<8x32xf32>
    %cst_174 = arith.constant dense<0.000000e+00> : vector<8xf32>
    %331 = vector.multi_reduction <add>, %330, %cst_174 [1] : vector<8x32xf32> to vector<8xf32>
    %332 = vector.shape_cast %331 : vector<8xf32> to vector<8x1xf32>
    %cst_175 = arith.constant 3.200000e+01 : f32
    %333 = vector.broadcast %cst_175 : f32 to vector<8x1xf32>
    %334 = arith.divf %332, %333 : vector<8x1xf32>
    %335 = vector.broadcast %327 : vector<8x1xf32> to vector<8x32xf32>
    %336 = arith.subf %323, %335 : vector<8x32xf32>
    %cst_176 = arith.constant 9.99999974E-6 : f32
    %337 = vector.broadcast %cst_176 : f32 to vector<8x1xf32>
    %338 = arith.addf %334, %337 : vector<8x1xf32>
    %339 = math.rsqrt %338 : vector<8x1xf32>
    %340 = vector.broadcast %339 : vector<8x1xf32> to vector<8x32xf32>
    %341 = arith.mulf %336, %340 : vector<8x32xf32>
    %342 = vector.broadcast %312 : vector<1x32xf32> to vector<8x32xf32>
    %343 = arith.mulf %341, %342 : vector<8x32xf32>
    %344 = vector.broadcast %314 : vector<1x32xf32> to vector<8x32xf32>
    %345 = arith.addf %343, %344 : vector<8x32xf32>
    %c0_177 = arith.constant 0 : index
    %c1_178 = arith.constant 1 : index
    %c0_179 = arith.constant 0 : index
    %c0_180 = arith.constant 0 : index
    %346 = vector.load %arg11[%c0_177, %c1_178, %c0_179, %c0_180] : memref<2x2x32x96xf32, #tpu.memory_space<vmem>>, vector<1x1x32x96xf32>
    %347 = vector.shape_cast %346 : vector<1x1x32x96xf32> to vector<32x96xf32>
    %c0_181 = arith.constant 0 : index
    %c1_182 = arith.constant 1 : index
    %c0_183 = arith.constant 0 : index
    %c0_184 = arith.constant 0 : index
    %348 = vector.load %arg12[%c0_181, %c1_182, %c0_183, %c0_184] : memref<2x2x1x96xf32, #tpu.memory_space<vmem>>, vector<1x1x1x96xf32>
    %349 = vector.shape_cast %348 : vector<1x1x1x96xf32> to vector<1x96xf32>
    %c0_185 = arith.constant 0 : index
    %c1_186 = arith.constant 1 : index
    %c0_187 = arith.constant 0 : index
    %c0_188 = arith.constant 0 : index
    %350 = vector.load %arg13[%c0_185, %c1_186, %c0_187, %c0_188] : memref<2x2x32x32xf32, #tpu.memory_space<vmem>>, vector<1x1x32x32xf32>
    %351 = vector.shape_cast %350 : vector<1x1x32x32xf32> to vector<32x32xf32>
    %c0_189 = arith.constant 0 : index
    %c1_190 = arith.constant 1 : index
    %c0_191 = arith.constant 0 : index
    %c0_192 = arith.constant 0 : index
    %352 = vector.load %arg14[%c0_189, %c1_190, %c0_191, %c0_192] : memref<2x2x1x32xf32, #tpu.memory_space<vmem>>, vector<1x1x1x32xf32>
    %353 = vector.shape_cast %352 : vector<1x1x1x32xf32> to vector<1x32xf32>
    %c0_193 = arith.constant 0 : index
    %c1_194 = arith.constant 1 : index
    %c0_195 = arith.constant 0 : index
    %c0_196 = arith.constant 0 : index
    %354 = vector.load %arg15[%c0_193, %c1_194, %c0_195, %c0_196] : memref<2x2x1x32xf32, #tpu.memory_space<vmem>>, vector<1x1x1x32xf32>
    %355 = vector.shape_cast %354 : vector<1x1x1x32xf32> to vector<1x32xf32>
    %c0_197 = arith.constant 0 : index
    %c1_198 = arith.constant 1 : index
    %c0_199 = arith.constant 0 : index
    %c0_200 = arith.constant 0 : index
    %356 = vector.load %arg16[%c0_197, %c1_198, %c0_199, %c0_200] : memref<2x2x1x32xf32, #tpu.memory_space<vmem>>, vector<1x1x1x32xf32>
    %357 = vector.shape_cast %356 : vector<1x1x1x32xf32> to vector<1x32xf32>
    %cst_201 = arith.constant dense<0.000000e+00> : vector<16x96xf32>
    %358 = tpu.matmul %206, %347, %cst_201 {dimension_numbers = #tpu.dot_dimension_numbers<[1], [0], [0], [1], [0, 0, 1, 1], [], []>} : vector<16x32xf32>, vector<32x96xf32>, vector<16x96xf32> -> vector<16x96xf32>
    %359 = vector.broadcast %349 : vector<1x96xf32> to vector<16x96xf32>
    %360 = arith.addf %358, %359 : vector<16x96xf32>
    %361 = vector.extract_strided_slice %360 {offsets = [0, 0], sizes = [16, 8], strides = [1, 1]} : vector<16x96xf32> to vector<16x8xf32>
    %362 = vector.extract_strided_slice %360 {offsets = [0, 8], sizes = [16, 8], strides = [1, 1]} : vector<16x96xf32> to vector<16x8xf32>
    %363 = vector.extract_strided_slice %360 {offsets = [0, 16], sizes = [16, 8], strides = [1, 1]} : vector<16x96xf32> to vector<16x8xf32>
    %364 = vector.extract_strided_slice %360 {offsets = [0, 24], sizes = [16, 8], strides = [1, 1]} : vector<16x96xf32> to vector<16x8xf32>
    %365 = vector.shape_cast %361 : vector<16x8xf32> to vector<1x16x8xf32>
    %366 = vector.shape_cast %362 : vector<16x8xf32> to vector<1x16x8xf32>
    %367 = vector.shape_cast %363 : vector<16x8xf32> to vector<1x16x8xf32>
    %368 = vector.shape_cast %364 : vector<16x8xf32> to vector<1x16x8xf32>
    %369 = tpu.concatenate %365, %366, %367, %368 in 0 : vector<1x16x8xf32>, vector<1x16x8xf32>, vector<1x16x8xf32>, vector<1x16x8xf32> -> vector<4x16x8xf32>
    %370 = vector.extract_strided_slice %360 {offsets = [0, 32], sizes = [16, 8], strides = [1, 1]} : vector<16x96xf32> to vector<16x8xf32>
    %371 = vector.extract_strided_slice %360 {offsets = [0, 40], sizes = [16, 8], strides = [1, 1]} : vector<16x96xf32> to vector<16x8xf32>
    %372 = vector.extract_strided_slice %360 {offsets = [0, 48], sizes = [16, 8], strides = [1, 1]} : vector<16x96xf32> to vector<16x8xf32>
    %373 = vector.extract_strided_slice %360 {offsets = [0, 56], sizes = [16, 8], strides = [1, 1]} : vector<16x96xf32> to vector<16x8xf32>
    %374 = vector.shape_cast %370 : vector<16x8xf32> to vector<1x16x8xf32>
    %375 = vector.shape_cast %371 : vector<16x8xf32> to vector<1x16x8xf32>
    %376 = vector.shape_cast %372 : vector<16x8xf32> to vector<1x16x8xf32>
    %377 = vector.shape_cast %373 : vector<16x8xf32> to vector<1x16x8xf32>
    %378 = tpu.concatenate %374, %375, %376, %377 in 0 : vector<1x16x8xf32>, vector<1x16x8xf32>, vector<1x16x8xf32>, vector<1x16x8xf32> -> vector<4x16x8xf32>
    %379 = vector.extract_strided_slice %360 {offsets = [0, 64], sizes = [16, 8], strides = [1, 1]} : vector<16x96xf32> to vector<16x8xf32>
    %380 = vector.extract_strided_slice %360 {offsets = [0, 72], sizes = [16, 8], strides = [1, 1]} : vector<16x96xf32> to vector<16x8xf32>
    %381 = vector.extract_strided_slice %360 {offsets = [0, 80], sizes = [16, 8], strides = [1, 1]} : vector<16x96xf32> to vector<16x8xf32>
    %382 = vector.extract_strided_slice %360 {offsets = [0, 88], sizes = [16, 8], strides = [1, 1]} : vector<16x96xf32> to vector<16x8xf32>
    %383 = vector.shape_cast %379 : vector<16x8xf32> to vector<1x16x8xf32>
    %384 = vector.shape_cast %380 : vector<16x8xf32> to vector<1x16x8xf32>
    %385 = vector.shape_cast %381 : vector<16x8xf32> to vector<1x16x8xf32>
    %386 = vector.shape_cast %382 : vector<16x8xf32> to vector<1x16x8xf32>
    %387 = tpu.concatenate %383, %384, %385, %386 in 0 : vector<1x16x8xf32>, vector<1x16x8xf32>, vector<1x16x8xf32>, vector<1x16x8xf32> -> vector<4x16x8xf32>
    "tpu.trace_start"() <{level = 10 : i32, message = "hqd,hkd->hqk"}> : () -> ()
    %cst_202 = arith.constant dense<0.000000e+00> : vector<4x16x16xf32>
    %388 = tpu.matmul %369, %378, %cst_202 {dimension_numbers = #tpu.dot_dimension_numbers<[2], [2], [1], [1], [0, 0, 0, 1, 1, 1], [0], [0]>} : vector<4x16x8xf32>, vector<4x16x8xf32>, vector<4x16x16xf32> -> vector<4x16x16xf32>
    "tpu.trace_stop"() : () -> ()
    %cst_203 = arith.constant 0.353553385 : f32
    %389 = vector.broadcast %cst_203 : f32 to vector<4x16x16xf32>
    %390 = arith.mulf %388, %389 : vector<4x16x16xf32>
    %391 = vector.shape_cast %61 : vector<1x16xf32> to vector<1x1x16xf32>
    %392 = vector.broadcast %391 : vector<1x1x16xf32> to vector<4x16x16xf32>
    %393 = arith.addf %390, %392 : vector<4x16x16xf32>
    %cst_204 = arith.constant dense<0xFF800000> : vector<4x16xf32>
    %394 = vector.multi_reduction <maximumf>, %393, %cst_204 [2] : vector<4x16x16xf32> to vector<4x16xf32>
    %395 = vector.shape_cast %394 : vector<4x16xf32> to vector<4x16x1xf32>
    %396 = vector.broadcast %395 : vector<4x16x1xf32> to vector<4x16x16xf32>
    %397 = arith.subf %393, %396 : vector<4x16x16xf32>
    %398 = math.exp %397 : vector<4x16x16xf32>
    %cst_205 = arith.constant dense<0.000000e+00> : vector<4x16xf32>
    %399 = vector.multi_reduction <add>, %398, %cst_205 [2] : vector<4x16x16xf32> to vector<4x16xf32>
    %400 = vector.shape_cast %399 : vector<4x16xf32> to vector<4x16x1xf32>
    %401 = tpu.reciprocal %400 {approx = true} : vector<4x16x1xf32> -> vector<4x16x1xf32>
    %402 = vector.broadcast %401 : vector<4x16x1xf32> to vector<4x16x16xf32>
    %403 = arith.mulf %398, %402 : vector<4x16x16xf32>
    "tpu.trace_start"() <{level = 10 : i32, message = "hqk,hkd->hqd"}> : () -> ()
    %cst_206 = arith.constant dense<0.000000e+00> : vector<4x16x8xf32>
    %404 = tpu.matmul %403, %387, %cst_206 {dimension_numbers = #tpu.dot_dimension_numbers<[2], [1], [1], [2], [0, 0, 0, 1, 1, 2], [0], [0]>} : vector<4x16x16xf32>, vector<4x16x8xf32>, vector<4x16x8xf32> -> vector<4x16x8xf32>
    "tpu.trace_stop"() : () -> ()
    %405 = vector.extract_strided_slice %404 {offsets = [0, 0, 0], sizes = [1, 16, 8], strides = [1, 1, 1]} : vector<4x16x8xf32> to vector<1x16x8xf32>
    %406 = vector.shape_cast %405 : vector<1x16x8xf32> to vector<16x8xf32>
    %407 = vector.extract_strided_slice %404 {offsets = [1, 0, 0], sizes = [1, 16, 8], strides = [1, 1, 1]} : vector<4x16x8xf32> to vector<1x16x8xf32>
    %408 = vector.shape_cast %407 : vector<1x16x8xf32> to vector<16x8xf32>
    %409 = vector.extract_strided_slice %404 {offsets = [2, 0, 0], sizes = [1, 16, 8], strides = [1, 1, 1]} : vector<4x16x8xf32> to vector<1x16x8xf32>
    %410 = vector.shape_cast %409 : vector<1x16x8xf32> to vector<16x8xf32>
    %411 = vector.extract_strided_slice %404 {offsets = [3, 0, 0], sizes = [1, 16, 8], strides = [1, 1, 1]} : vector<4x16x8xf32> to vector<1x16x8xf32>
    %412 = vector.shape_cast %411 : vector<1x16x8xf32> to vector<16x8xf32>
    %413 = tpu.concatenate %406, %408, %410, %412 in 1 : vector<16x8xf32>, vector<16x8xf32>, vector<16x8xf32>, vector<16x8xf32> -> vector<16x32xf32>
    %cst_207 = arith.constant dense<0.000000e+00> : vector<16x32xf32>
    %414 = tpu.matmul %413, %351, %cst_207 {dimension_numbers = #tpu.dot_dimension_numbers<[1], [0], [0], [1], [0, 0, 1, 1], [], []>} : vector<16x32xf32>, vector<32x32xf32>, vector<16x32xf32> -> vector<16x32xf32>
    %415 = vector.broadcast %353 : vector<1x32xf32> to vector<16x32xf32>
    %416 = arith.addf %414, %415 : vector<16x32xf32>
    %417 = arith.addf %206, %416 : vector<16x32xf32>
    %cst_208 = arith.constant dense<0.000000e+00> : vector<16xf32>
    %418 = vector.multi_reduction <add>, %417, %cst_208 [1] : vector<16x32xf32> to vector<16xf32>
    %419 = vector.shape_cast %418 : vector<16xf32> to vector<16x1xf32>
    %cst_209 = arith.constant 3.200000e+01 : f32
    %420 = vector.broadcast %cst_209 : f32 to vector<16x1xf32>
    %421 = arith.divf %419, %420 : vector<16x1xf32>
    %422 = vector.broadcast %421 : vector<16x1xf32> to vector<16x32xf32>
    %423 = arith.subf %417, %422 : vector<16x32xf32>
    %424 = arith.mulf %423, %423 : vector<16x32xf32>
    %cst_210 = arith.constant dense<0.000000e+00> : vector<16xf32>
    %425 = vector.multi_reduction <add>, %424, %cst_210 [1] : vector<16x32xf32> to vector<16xf32>
    %426 = vector.shape_cast %425 : vector<16xf32> to vector<16x1xf32>
    %cst_211 = arith.constant 3.200000e+01 : f32
    %427 = vector.broadcast %cst_211 : f32 to vector<16x1xf32>
    %428 = arith.divf %426, %427 : vector<16x1xf32>
    %429 = vector.broadcast %421 : vector<16x1xf32> to vector<16x32xf32>
    %430 = arith.subf %417, %429 : vector<16x32xf32>
    %cst_212 = arith.constant 9.99999974E-6 : f32
    %431 = vector.broadcast %cst_212 : f32 to vector<16x1xf32>
    %432 = arith.addf %428, %431 : vector<16x1xf32>
    %433 = math.rsqrt %432 : vector<16x1xf32>
    %434 = vector.broadcast %433 : vector<16x1xf32> to vector<16x32xf32>
    %435 = arith.mulf %430, %434 : vector<16x32xf32>
    %436 = vector.broadcast %355 : vector<1x32xf32> to vector<16x32xf32>
    %437 = arith.mulf %435, %436 : vector<16x32xf32>
    %438 = vector.broadcast %357 : vector<1x32xf32> to vector<16x32xf32>
    %439 = arith.addf %437, %438 : vector<16x32xf32>
    %440 = vector.broadcast %63 : vector<16x1xf32> to vector<16x32xf32>
    %441 = arith.mulf %439, %440 : vector<16x32xf32>
    %c0_213 = arith.constant 0 : index
    %c1_214 = arith.constant 1 : index
    %c0_215 = arith.constant 0 : index
    %c0_216 = arith.constant 0 : index
    %442 = vector.load %arg17[%c0_213, %c1_214, %c0_215, %c0_216] : memref<2x2x32x64xf32, #tpu.memory_space<vmem>>, vector<1x1x32x64xf32>
    %443 = vector.shape_cast %442 : vector<1x1x32x64xf32> to vector<32x64xf32>
    %c0_217 = arith.constant 0 : index
    %c1_218 = arith.constant 1 : index
    %c0_219 = arith.constant 0 : index
    %c0_220 = arith.constant 0 : index
    %444 = vector.load %arg18[%c0_217, %c1_218, %c0_219, %c0_220] : memref<2x2x1x64xf32, #tpu.memory_space<vmem>>, vector<1x1x1x64xf32>
    %445 = vector.shape_cast %444 : vector<1x1x1x64xf32> to vector<1x64xf32>
    %c0_221 = arith.constant 0 : index
    %c1_222 = arith.constant 1 : index
    %c0_223 = arith.constant 0 : index
    %c0_224 = arith.constant 0 : index
    %446 = vector.load %arg19[%c0_221, %c1_222, %c0_223, %c0_224] : memref<2x2x64x32xf32, #tpu.memory_space<vmem>>, vector<1x1x64x32xf32>
    %447 = vector.shape_cast %446 : vector<1x1x64x32xf32> to vector<64x32xf32>
    %c0_225 = arith.constant 0 : index
    %c1_226 = arith.constant 1 : index
    %c0_227 = arith.constant 0 : index
    %c0_228 = arith.constant 0 : index
    %448 = vector.load %arg20[%c0_225, %c1_226, %c0_227, %c0_228] : memref<2x2x1x32xf32, #tpu.memory_space<vmem>>, vector<1x1x1x32xf32>
    %449 = vector.shape_cast %448 : vector<1x1x1x32xf32> to vector<1x32xf32>
    %c0_229 = arith.constant 0 : index
    %c1_230 = arith.constant 1 : index
    %c0_231 = arith.constant 0 : index
    %c0_232 = arith.constant 0 : index
    %450 = vector.load %arg21[%c0_229, %c1_230, %c0_231, %c0_232] : memref<2x2x1x32xf32, #tpu.memory_space<vmem>>, vector<1x1x1x32xf32>
    %451 = vector.shape_cast %450 : vector<1x1x1x32xf32> to vector<1x32xf32>
    %c0_233 = arith.constant 0 : index
    %c1_234 = arith.constant 1 : index
    %c0_235 = arith.constant 0 : index
    %c0_236 = arith.constant 0 : index
    %452 = vector.load %arg22[%c0_233, %c1_234, %c0_235, %c0_236] : memref<2x2x1x32xf32, #tpu.memory_space<vmem>>, vector<1x1x1x32xf32>
    %453 = vector.shape_cast %452 : vector<1x1x1x32xf32> to vector<1x32xf32>
    %cst_237 = arith.constant dense<0.000000e+00> : vector<16x64xf32>
    %454 = tpu.matmul %441, %443, %cst_237 {dimension_numbers = #tpu.dot_dimension_numbers<[1], [0], [0], [1], [0, 0, 1, 1], [], []>} : vector<16x32xf32>, vector<32x64xf32>, vector<16x64xf32> -> vector<16x64xf32>
    %455 = vector.broadcast %445 : vector<1x64xf32> to vector<16x64xf32>
    %456 = arith.addf %454, %455 : vector<16x64xf32>
    %cst_238 = arith.constant 0.000000e+00 : f32
    %457 = vector.broadcast %cst_238 : f32 to vector<16x64xf32>
    %458 = arith.maximumf %456, %457 : vector<16x64xf32>
    %cst_239 = arith.constant dense<0.000000e+00> : vector<16x32xf32>
    %459 = tpu.matmul %458, %447, %cst_239 {dimension_numbers = #tpu.dot_dimension_numbers<[1], [0], [0], [1], [0, 0, 1, 1], [], []>} : vector<16x64xf32>, vector<64x32xf32>, vector<16x32xf32> -> vector<16x32xf32>
    %460 = vector.broadcast %449 : vector<1x32xf32> to vector<16x32xf32>
    %461 = arith.addf %459, %460 : vector<16x32xf32>
    %462 = arith.addf %441, %461 : vector<16x32xf32>
    %cst_240 = arith.constant dense<0.000000e+00> : vector<16xf32>
    %463 = vector.multi_reduction <add>, %462, %cst_240 [1] : vector<16x32xf32> to vector<16xf32>
    %464 = vector.shape_cast %463 : vector<16xf32> to vector<16x1xf32>
    %cst_241 = arith.constant 3.200000e+01 : f32
    %465 = vector.broadcast %cst_241 : f32 to vector<16x1xf32>
    %466 = arith.divf %464, %465 : vector<16x1xf32>
    %467 = vector.broadcast %466 : vector<16x1xf32> to vector<16x32xf32>
    %468 = arith.subf %462, %467 : vector<16x32xf32>
    %469 = arith.mulf %468, %468 : vector<16x32xf32>
    %cst_242 = arith.constant dense<0.000000e+00> : vector<16xf32>
    %470 = vector.multi_reduction <add>, %469, %cst_242 [1] : vector<16x32xf32> to vector<16xf32>
    %471 = vector.shape_cast %470 : vector<16xf32> to vector<16x1xf32>
    %cst_243 = arith.constant 3.200000e+01 : f32
    %472 = vector.broadcast %cst_243 : f32 to vector<16x1xf32>
    %473 = arith.divf %471, %472 : vector<16x1xf32>
    %474 = vector.broadcast %466 : vector<16x1xf32> to vector<16x32xf32>
    %475 = arith.subf %462, %474 : vector<16x32xf32>
    %cst_244 = arith.constant 9.99999974E-6 : f32
    %476 = vector.broadcast %cst_244 : f32 to vector<16x1xf32>
    %477 = arith.addf %473, %476 : vector<16x1xf32>
    %478 = math.rsqrt %477 : vector<16x1xf32>
    %479 = vector.broadcast %478 : vector<16x1xf32> to vector<16x32xf32>
    %480 = arith.mulf %475, %479 : vector<16x32xf32>
    %481 = vector.broadcast %451 : vector<1x32xf32> to vector<16x32xf32>
    %482 = arith.mulf %480, %481 : vector<16x32xf32>
    %483 = vector.broadcast %453 : vector<1x32xf32> to vector<16x32xf32>
    %484 = arith.addf %482, %483 : vector<16x32xf32>
    %c1_245 = arith.constant 1 : index
    %c1_246 = arith.constant 1 : index
    %c0_247 = arith.constant 0 : index
    %c0_248 = arith.constant 0 : index
    %485 = vector.load %arg11[%c1_245, %c1_246, %c0_247, %c0_248] : memref<2x2x32x96xf32, #tpu.memory_space<vmem>>, vector<1x1x32x96xf32>
    %486 = vector.shape_cast %485 : vector<1x1x32x96xf32> to vector<32x96xf32>
    %c1_249 = arith.constant 1 : index
    %c1_250 = arith.constant 1 : index
    %c0_251 = arith.constant 0 : index
    %c0_252 = arith.constant 0 : index
    %487 = vector.load %arg12[%c1_249, %c1_250, %c0_251, %c0_252] : memref<2x2x1x96xf32, #tpu.memory_space<vmem>>, vector<1x1x1x96xf32>
    %488 = vector.shape_cast %487 : vector<1x1x1x96xf32> to vector<1x96xf32>
    %c1_253 = arith.constant 1 : index
    %c1_254 = arith.constant 1 : index
    %c0_255 = arith.constant 0 : index
    %c0_256 = arith.constant 0 : index
    %489 = vector.load %arg13[%c1_253, %c1_254, %c0_255, %c0_256] : memref<2x2x32x32xf32, #tpu.memory_space<vmem>>, vector<1x1x32x32xf32>
    %490 = vector.shape_cast %489 : vector<1x1x32x32xf32> to vector<32x32xf32>
    %c1_257 = arith.constant 1 : index
    %c1_258 = arith.constant 1 : index
    %c0_259 = arith.constant 0 : index
    %c0_260 = arith.constant 0 : index
    %491 = vector.load %arg14[%c1_257, %c1_258, %c0_259, %c0_260] : memref<2x2x1x32xf32, #tpu.memory_space<vmem>>, vector<1x1x1x32xf32>
    %492 = vector.shape_cast %491 : vector<1x1x1x32xf32> to vector<1x32xf32>
    %c1_261 = arith.constant 1 : index
    %c1_262 = arith.constant 1 : index
    %c0_263 = arith.constant 0 : index
    %c0_264 = arith.constant 0 : index
    %493 = vector.load %arg15[%c1_261, %c1_262, %c0_263, %c0_264] : memref<2x2x1x32xf32, #tpu.memory_space<vmem>>, vector<1x1x1x32xf32>
    %494 = vector.shape_cast %493 : vector<1x1x1x32xf32> to vector<1x32xf32>
    %c1_265 = arith.constant 1 : index
    %c1_266 = arith.constant 1 : index
    %c0_267 = arith.constant 0 : index
    %c0_268 = arith.constant 0 : index
    %495 = vector.load %arg16[%c1_265, %c1_266, %c0_267, %c0_268] : memref<2x2x1x32xf32, #tpu.memory_space<vmem>>, vector<1x1x1x32xf32>
    %496 = vector.shape_cast %495 : vector<1x1x1x32xf32> to vector<1x32xf32>
    %cst_269 = arith.constant dense<0.000000e+00> : vector<8x96xf32>
    %497 = tpu.matmul %345, %486, %cst_269 {dimension_numbers = #tpu.dot_dimension_numbers<[1], [0], [0], [1], [0, 0, 1, 1], [], []>} : vector<8x32xf32>, vector<32x96xf32>, vector<8x96xf32> -> vector<8x96xf32>
    %498 = vector.broadcast %488 : vector<1x96xf32> to vector<8x96xf32>
    %499 = arith.addf %497, %498 : vector<8x96xf32>
    %500 = vector.extract_strided_slice %499 {offsets = [0, 0], sizes = [8, 8], strides = [1, 1]} : vector<8x96xf32> to vector<8x8xf32>
    %501 = vector.extract_strided_slice %499 {offsets = [0, 8], sizes = [8, 8], strides = [1, 1]} : vector<8x96xf32> to vector<8x8xf32>
    %502 = vector.extract_strided_slice %499 {offsets = [0, 16], sizes = [8, 8], strides = [1, 1]} : vector<8x96xf32> to vector<8x8xf32>
    %503 = vector.extract_strided_slice %499 {offsets = [0, 24], sizes = [8, 8], strides = [1, 1]} : vector<8x96xf32> to vector<8x8xf32>
    %504 = vector.shape_cast %500 : vector<8x8xf32> to vector<1x8x8xf32>
    %505 = vector.shape_cast %501 : vector<8x8xf32> to vector<1x8x8xf32>
    %506 = vector.shape_cast %502 : vector<8x8xf32> to vector<1x8x8xf32>
    %507 = vector.shape_cast %503 : vector<8x8xf32> to vector<1x8x8xf32>
    %508 = tpu.concatenate %504, %505, %506, %507 in 0 : vector<1x8x8xf32>, vector<1x8x8xf32>, vector<1x8x8xf32>, vector<1x8x8xf32> -> vector<4x8x8xf32>
    %509 = vector.extract_strided_slice %499 {offsets = [0, 32], sizes = [8, 8], strides = [1, 1]} : vector<8x96xf32> to vector<8x8xf32>
    %510 = vector.extract_strided_slice %499 {offsets = [0, 40], sizes = [8, 8], strides = [1, 1]} : vector<8x96xf32> to vector<8x8xf32>
    %511 = vector.extract_strided_slice %499 {offsets = [0, 48], sizes = [8, 8], strides = [1, 1]} : vector<8x96xf32> to vector<8x8xf32>
    %512 = vector.extract_strided_slice %499 {offsets = [0, 56], sizes = [8, 8], strides = [1, 1]} : vector<8x96xf32> to vector<8x8xf32>
    %513 = vector.shape_cast %509 : vector<8x8xf32> to vector<1x8x8xf32>
    %514 = vector.shape_cast %510 : vector<8x8xf32> to vector<1x8x8xf32>
    %515 = vector.shape_cast %511 : vector<8x8xf32> to vector<1x8x8xf32>
    %516 = vector.shape_cast %512 : vector<8x8xf32> to vector<1x8x8xf32>
    %517 = tpu.concatenate %513, %514, %515, %516 in 0 : vector<1x8x8xf32>, vector<1x8x8xf32>, vector<1x8x8xf32>, vector<1x8x8xf32> -> vector<4x8x8xf32>
    %518 = vector.extract_strided_slice %499 {offsets = [0, 64], sizes = [8, 8], strides = [1, 1]} : vector<8x96xf32> to vector<8x8xf32>
    %519 = vector.extract_strided_slice %499 {offsets = [0, 72], sizes = [8, 8], strides = [1, 1]} : vector<8x96xf32> to vector<8x8xf32>
    %520 = vector.extract_strided_slice %499 {offsets = [0, 80], sizes = [8, 8], strides = [1, 1]} : vector<8x96xf32> to vector<8x8xf32>
    %521 = vector.extract_strided_slice %499 {offsets = [0, 88], sizes = [8, 8], strides = [1, 1]} : vector<8x96xf32> to vector<8x8xf32>
    %522 = vector.shape_cast %518 : vector<8x8xf32> to vector<1x8x8xf32>
    %523 = vector.shape_cast %519 : vector<8x8xf32> to vector<1x8x8xf32>
    %524 = vector.shape_cast %520 : vector<8x8xf32> to vector<1x8x8xf32>
    %525 = vector.shape_cast %521 : vector<8x8xf32> to vector<1x8x8xf32>
    %526 = tpu.concatenate %522, %523, %524, %525 in 0 : vector<1x8x8xf32>, vector<1x8x8xf32>, vector<1x8x8xf32>, vector<1x8x8xf32> -> vector<4x8x8xf32>
    "tpu.trace_start"() <{level = 10 : i32, message = "hqd,hkd->hqk"}> : () -> ()
    %cst_270 = arith.constant dense<0.000000e+00> : vector<4x8x8xf32>
    %527 = tpu.matmul %508, %517, %cst_270 {dimension_numbers = #tpu.dot_dimension_numbers<[2], [2], [1], [1], [0, 0, 0, 1, 1, 1], [0], [0]>} : vector<4x8x8xf32>, vector<4x8x8xf32>, vector<4x8x8xf32> -> vector<4x8x8xf32>
    "tpu.trace_stop"() : () -> ()
    %cst_271 = arith.constant 0.353553385 : f32
    %528 = vector.broadcast %cst_271 : f32 to vector<4x8x8xf32>
    %529 = arith.mulf %527, %528 : vector<4x8x8xf32>
    %530 = vector.shape_cast %65 : vector<1x8xf32> to vector<1x1x8xf32>
    %531 = vector.broadcast %530 : vector<1x1x8xf32> to vector<4x8x8xf32>
    %532 = arith.addf %529, %531 : vector<4x8x8xf32>
    %cst_272 = arith.constant dense<0xFF800000> : vector<4x8xf32>
    %533 = vector.multi_reduction <maximumf>, %532, %cst_272 [2] : vector<4x8x8xf32> to vector<4x8xf32>
    %534 = vector.shape_cast %533 : vector<4x8xf32> to vector<4x8x1xf32>
    %535 = vector.broadcast %534 : vector<4x8x1xf32> to vector<4x8x8xf32>
    %536 = arith.subf %532, %535 : vector<4x8x8xf32>
    %537 = math.exp %536 : vector<4x8x8xf32>
    %cst_273 = arith.constant dense<0.000000e+00> : vector<4x8xf32>
    %538 = vector.multi_reduction <add>, %537, %cst_273 [2] : vector<4x8x8xf32> to vector<4x8xf32>
    %539 = vector.shape_cast %538 : vector<4x8xf32> to vector<4x8x1xf32>
    %540 = tpu.reciprocal %539 {approx = true} : vector<4x8x1xf32> -> vector<4x8x1xf32>
    %541 = vector.broadcast %540 : vector<4x8x1xf32> to vector<4x8x8xf32>
    %542 = arith.mulf %537, %541 : vector<4x8x8xf32>
    "tpu.trace_start"() <{level = 10 : i32, message = "hqk,hkd->hqd"}> : () -> ()
    %cst_274 = arith.constant dense<0.000000e+00> : vector<4x8x8xf32>
    %543 = tpu.matmul %542, %526, %cst_274 {dimension_numbers = #tpu.dot_dimension_numbers<[2], [1], [1], [2], [0, 0, 0, 1, 1, 2], [0], [0]>} : vector<4x8x8xf32>, vector<4x8x8xf32>, vector<4x8x8xf32> -> vector<4x8x8xf32>
    "tpu.trace_stop"() : () -> ()
    %544 = vector.extract_strided_slice %543 {offsets = [0, 0, 0], sizes = [1, 8, 8], strides = [1, 1, 1]} : vector<4x8x8xf32> to vector<1x8x8xf32>
    %545 = vector.shape_cast %544 : vector<1x8x8xf32> to vector<8x8xf32>
    %546 = vector.extract_strided_slice %543 {offsets = [1, 0, 0], sizes = [1, 8, 8], strides = [1, 1, 1]} : vector<4x8x8xf32> to vector<1x8x8xf32>
    %547 = vector.shape_cast %546 : vector<1x8x8xf32> to vector<8x8xf32>
    %548 = vector.extract_strided_slice %543 {offsets = [2, 0, 0], sizes = [1, 8, 8], strides = [1, 1, 1]} : vector<4x8x8xf32> to vector<1x8x8xf32>
    %549 = vector.shape_cast %548 : vector<1x8x8xf32> to vector<8x8xf32>
    %550 = vector.extract_strided_slice %543 {offsets = [3, 0, 0], sizes = [1, 8, 8], strides = [1, 1, 1]} : vector<4x8x8xf32> to vector<1x8x8xf32>
    %551 = vector.shape_cast %550 : vector<1x8x8xf32> to vector<8x8xf32>
    %552 = tpu.concatenate %545, %547, %549, %551 in 1 : vector<8x8xf32>, vector<8x8xf32>, vector<8x8xf32>, vector<8x8xf32> -> vector<8x32xf32>
    %cst_275 = arith.constant dense<0.000000e+00> : vector<8x32xf32>
    %553 = tpu.matmul %552, %490, %cst_275 {dimension_numbers = #tpu.dot_dimension_numbers<[1], [0], [0], [1], [0, 0, 1, 1], [], []>} : vector<8x32xf32>, vector<32x32xf32>, vector<8x32xf32> -> vector<8x32xf32>
    %554 = vector.broadcast %492 : vector<1x32xf32> to vector<8x32xf32>
    %555 = arith.addf %553, %554 : vector<8x32xf32>
    %556 = arith.addf %345, %555 : vector<8x32xf32>
    %cst_276 = arith.constant dense<0.000000e+00> : vector<8xf32>
    %557 = vector.multi_reduction <add>, %556, %cst_276 [1] : vector<8x32xf32> to vector<8xf32>
    %558 = vector.shape_cast %557 : vector<8xf32> to vector<8x1xf32>
    %cst_277 = arith.constant 3.200000e+01 : f32
    %559 = vector.broadcast %cst_277 : f32 to vector<8x1xf32>
    %560 = arith.divf %558, %559 : vector<8x1xf32>
    %561 = vector.broadcast %560 : vector<8x1xf32> to vector<8x32xf32>
    %562 = arith.subf %556, %561 : vector<8x32xf32>
    %563 = arith.mulf %562, %562 : vector<8x32xf32>
    %cst_278 = arith.constant dense<0.000000e+00> : vector<8xf32>
    %564 = vector.multi_reduction <add>, %563, %cst_278 [1] : vector<8x32xf32> to vector<8xf32>
    %565 = vector.shape_cast %564 : vector<8xf32> to vector<8x1xf32>
    %cst_279 = arith.constant 3.200000e+01 : f32
    %566 = vector.broadcast %cst_279 : f32 to vector<8x1xf32>
    %567 = arith.divf %565, %566 : vector<8x1xf32>
    %568 = vector.broadcast %560 : vector<8x1xf32> to vector<8x32xf32>
    %569 = arith.subf %556, %568 : vector<8x32xf32>
    %cst_280 = arith.constant 9.99999974E-6 : f32
    %570 = vector.broadcast %cst_280 : f32 to vector<8x1xf32>
    %571 = arith.addf %567, %570 : vector<8x1xf32>
    %572 = math.rsqrt %571 : vector<8x1xf32>
    %573 = vector.broadcast %572 : vector<8x1xf32> to vector<8x32xf32>
    %574 = arith.mulf %569, %573 : vector<8x32xf32>
    %575 = vector.broadcast %494 : vector<1x32xf32> to vector<8x32xf32>
    %576 = arith.mulf %574, %575 : vector<8x32xf32>
    %577 = vector.broadcast %496 : vector<1x32xf32> to vector<8x32xf32>
    %578 = arith.addf %576, %577 : vector<8x32xf32>
    %579 = vector.broadcast %67 : vector<8x1xf32> to vector<8x32xf32>
    %580 = arith.mulf %578, %579 : vector<8x32xf32>
    %c1_281 = arith.constant 1 : index
    %c1_282 = arith.constant 1 : index
    %c0_283 = arith.constant 0 : index
    %c0_284 = arith.constant 0 : index
    %581 = vector.load %arg17[%c1_281, %c1_282, %c0_283, %c0_284] : memref<2x2x32x64xf32, #tpu.memory_space<vmem>>, vector<1x1x32x64xf32>
    %582 = vector.shape_cast %581 : vector<1x1x32x64xf32> to vector<32x64xf32>
    %c1_285 = arith.constant 1 : index
    %c1_286 = arith.constant 1 : index
    %c0_287 = arith.constant 0 : index
    %c0_288 = arith.constant 0 : index
    %583 = vector.load %arg18[%c1_285, %c1_286, %c0_287, %c0_288] : memref<2x2x1x64xf32, #tpu.memory_space<vmem>>, vector<1x1x1x64xf32>
    %584 = vector.shape_cast %583 : vector<1x1x1x64xf32> to vector<1x64xf32>
    %c1_289 = arith.constant 1 : index
    %c1_290 = arith.constant 1 : index
    %c0_291 = arith.constant 0 : index
    %c0_292 = arith.constant 0 : index
    %585 = vector.load %arg19[%c1_289, %c1_290, %c0_291, %c0_292] : memref<2x2x64x32xf32, #tpu.memory_space<vmem>>, vector<1x1x64x32xf32>
    %586 = vector.shape_cast %585 : vector<1x1x64x32xf32> to vector<64x32xf32>
    %c1_293 = arith.constant 1 : index
    %c1_294 = arith.constant 1 : index
    %c0_295 = arith.constant 0 : index
    %c0_296 = arith.constant 0 : index
    %587 = vector.load %arg20[%c1_293, %c1_294, %c0_295, %c0_296] : memref<2x2x1x32xf32, #tpu.memory_space<vmem>>, vector<1x1x1x32xf32>
    %588 = vector.shape_cast %587 : vector<1x1x1x32xf32> to vector<1x32xf32>
    %c1_297 = arith.constant 1 : index
    %c1_298 = arith.constant 1 : index
    %c0_299 = arith.constant 0 : index
    %c0_300 = arith.constant 0 : index
    %589 = vector.load %arg21[%c1_297, %c1_298, %c0_299, %c0_300] : memref<2x2x1x32xf32, #tpu.memory_space<vmem>>, vector<1x1x1x32xf32>
    %590 = vector.shape_cast %589 : vector<1x1x1x32xf32> to vector<1x32xf32>
    %c1_301 = arith.constant 1 : index
    %c1_302 = arith.constant 1 : index
    %c0_303 = arith.constant 0 : index
    %c0_304 = arith.constant 0 : index
    %591 = vector.load %arg22[%c1_301, %c1_302, %c0_303, %c0_304] : memref<2x2x1x32xf32, #tpu.memory_space<vmem>>, vector<1x1x1x32xf32>
    %592 = vector.shape_cast %591 : vector<1x1x1x32xf32> to vector<1x32xf32>
    %cst_305 = arith.constant dense<0.000000e+00> : vector<8x64xf32>
    %593 = tpu.matmul %580, %582, %cst_305 {dimension_numbers = #tpu.dot_dimension_numbers<[1], [0], [0], [1], [0, 0, 1, 1], [], []>} : vector<8x32xf32>, vector<32x64xf32>, vector<8x64xf32> -> vector<8x64xf32>
    %594 = vector.broadcast %584 : vector<1x64xf32> to vector<8x64xf32>
    %595 = arith.addf %593, %594 : vector<8x64xf32>
    %cst_306 = arith.constant 0.000000e+00 : f32
    %596 = vector.broadcast %cst_306 : f32 to vector<8x64xf32>
    %597 = arith.maximumf %595, %596 : vector<8x64xf32>
    %cst_307 = arith.constant dense<0.000000e+00> : vector<8x32xf32>
    %598 = tpu.matmul %597, %586, %cst_307 {dimension_numbers = #tpu.dot_dimension_numbers<[1], [0], [0], [1], [0, 0, 1, 1], [], []>} : vector<8x64xf32>, vector<64x32xf32>, vector<8x32xf32> -> vector<8x32xf32>
    %599 = vector.broadcast %588 : vector<1x32xf32> to vector<8x32xf32>
    %600 = arith.addf %598, %599 : vector<8x32xf32>
    %601 = arith.addf %580, %600 : vector<8x32xf32>
    %cst_308 = arith.constant dense<0.000000e+00> : vector<8xf32>
    %602 = vector.multi_reduction <add>, %601, %cst_308 [1] : vector<8x32xf32> to vector<8xf32>
    %603 = vector.shape_cast %602 : vector<8xf32> to vector<8x1xf32>
    %cst_309 = arith.constant 3.200000e+01 : f32
    %604 = vector.broadcast %cst_309 : f32 to vector<8x1xf32>
    %605 = arith.divf %603, %604 : vector<8x1xf32>
    %606 = vector.broadcast %605 : vector<8x1xf32> to vector<8x32xf32>
    %607 = arith.subf %601, %606 : vector<8x32xf32>
    %608 = arith.mulf %607, %607 : vector<8x32xf32>
    %cst_310 = arith.constant dense<0.000000e+00> : vector<8xf32>
    %609 = vector.multi_reduction <add>, %608, %cst_310 [1] : vector<8x32xf32> to vector<8xf32>
    %610 = vector.shape_cast %609 : vector<8xf32> to vector<8x1xf32>
    %cst_311 = arith.constant 3.200000e+01 : f32
    %611 = vector.broadcast %cst_311 : f32 to vector<8x1xf32>
    %612 = arith.divf %610, %611 : vector<8x1xf32>
    %613 = vector.broadcast %605 : vector<8x1xf32> to vector<8x32xf32>
    %614 = arith.subf %601, %613 : vector<8x32xf32>
    %cst_312 = arith.constant 9.99999974E-6 : f32
    %615 = vector.broadcast %cst_312 : f32 to vector<8x1xf32>
    %616 = arith.addf %612, %615 : vector<8x1xf32>
    %617 = math.rsqrt %616 : vector<8x1xf32>
    %618 = vector.broadcast %617 : vector<8x1xf32> to vector<8x32xf32>
    %619 = arith.mulf %614, %618 : vector<8x32xf32>
    %620 = vector.broadcast %590 : vector<1x32xf32> to vector<8x32xf32>
    %621 = arith.mulf %619, %620 : vector<8x32xf32>
    %622 = vector.broadcast %592 : vector<1x32xf32> to vector<8x32xf32>
    %623 = arith.addf %621, %622 : vector<8x32xf32>
    %c0_313 = arith.constant 0 : index
    %c0_314 = arith.constant 0 : index
    %c0_315 = arith.constant 0 : index
    %624 = vector.load %arg23[%c0_313, %c0_314, %c0_315] : memref<1x16x32xf32, #tpu.memory_space<vmem>>, vector<1x16x32xf32>
    %625 = vector.shape_cast %624 : vector<1x16x32xf32> to vector<16x32xf32>
    %626 = vector.shape_cast %484 : vector<16x32xf32> to vector<1x16x32xf32>
    tpu.vector_store %arg23[%c0_313, %c0_314, %c0_315], %626 {strides = array<i32>} : memref<1x16x32xf32, #tpu.memory_space<vmem>>, vector<1x16x32xf32>,
    %c0_316 = arith.constant 0 : index
    %c0_317 = arith.constant 0 : index
    %c0_318 = arith.constant 0 : index
    %627 = vector.load %arg24[%c0_316, %c0_317, %c0_318] : memref<1x8x32xf32, #tpu.memory_space<vmem>>, vector<1x8x32xf32>
    %628 = vector.shape_cast %627 : vector<1x8x32xf32> to vector<8x32xf32>
    %629 = vector.shape_cast %623 : vector<8x32xf32> to vector<1x8x32xf32>
    tpu.vector_store %arg24[%c0_316, %c0_317, %c0_318], %629 {strides = array<i32>} : memref<1x8x32xf32, #tpu.memory_space<vmem>>, vector<1x8x32xf32>,
    return
  }
  func.func @transform_0(%arg0: i32) -> (i32, i32, i32) {
    %c0_i32 = arith.constant 0 : i32
    %c0_i32_0 = arith.constant 0 : i32
    %c0_i32_1 = arith.constant 0 : i32
    return %arg0, %c0_i32, %c0_i32_0 : i32, i32, i32
  }
  func.func @transform_1(%arg0: i32) -> (i32, i32, i32) {
    %c0_i32 = arith.constant 0 : i32
    %c0_i32_0 = arith.constant 0 : i32
    %c0_i32_1 = arith.constant 0 : i32
    return %arg0, %c0_i32, %c0_i32_0 : i32, i32, i32
  }
  func.func @transform_2(%arg0: i32) -> (i32, i32, i32) {
    %c0_i32 = arith.constant 0 : i32
    %c0_i32_0 = arith.constant 0 : i32
    %c0_i32_1 = arith.constant 0 : i32
    return %arg0, %c0_i32, %c0_i32_0 : i32, i32, i32
  }
  func.func @transform_3(%arg0: i32) -> (i32, i32, i32) {
    %c0_i32 = arith.constant 0 : i32
    %c0_i32_0 = arith.constant 0 : i32
    %c0_i32_1 = arith.constant 0 : i32
    return %arg0, %c0_i32, %c0_i32_0 : i32, i32, i32
  }
  func.func @transform_4(%arg0: i32) -> (i32, i32, i32) {
    %c0_i32 = arith.constant 0 : i32
    %c0_i32_0 = arith.constant 0 : i32
    %c0_i32_1 = arith.constant 0 : i32
    return %arg0, %c0_i32, %c0_i32_0 : i32, i32, i32
  }
  func.func @transform_5(%arg0: i32) -> (i32, i32, i32) {
    %c0_i32 = arith.constant 0 : i32
    %c0_i32_0 = arith.constant 0 : i32
    %c0_i32_1 = arith.constant 0 : i32
    return %arg0, %c0_i32, %c0_i32_0 : i32, i32, i32
  }
  func.func @transform_6(%arg0: i32) -> (i32, i32, i32) {
    %c0_i32 = arith.constant 0 : i32
    %c0_i32_0 = arith.constant 0 : i32
    %c0_i32_1 = arith.constant 0 : i32
    %c0_i32_2 = arith.constant 0 : i32
    return %c0_i32, %c0_i32_0, %c0_i32_1 : i32, i32, i32
  }
  func.func @transform_7(%arg0: i32) -> (i32, i32, i32) {
    %c0_i32 = arith.constant 0 : i32
    %c0_i32_0 = arith.constant 0 : i32
    %c0_i32_1 = arith.constant 0 : i32
    %c0_i32_2 = arith.constant 0 : i32
    return %c0_i32, %c0_i32_0, %c0_i32_1 : i32, i32, i32
  }
  func.func @transform_8(%arg0: i32) -> (i32, i32) {
    %c0_i32 = arith.constant 0 : i32
    %c0_i32_0 = arith.constant 0 : i32
    %c0_i32_1 = arith.constant 0 : i32
    return %c0_i32, %c0_i32_0 : i32, i32
  }
  func.func @transform_9(%arg0: i32) -> (i32, i32) {
    %c0_i32 = arith.constant 0 : i32
    %c0_i32_0 = arith.constant 0 : i32
    %c0_i32_1 = arith.constant 0 : i32
    return %c0_i32, %c0_i32_0 : i32, i32
  }
  func.func @transform_10(%arg0: i32) -> (i32, i32, i32, i32) {
    %c0_i32 = arith.constant 0 : i32
    %c0_i32_0 = arith.constant 0 : i32
    %c0_i32_1 = arith.constant 0 : i32
    %c0_i32_2 = arith.constant 0 : i32
    %c0_i32_3 = arith.constant 0 : i32
    return %c0_i32, %c0_i32_0, %c0_i32_1, %c0_i32_2 : i32, i32, i32, i32
  }
  func.func @transform_11(%arg0: i32) -> (i32, i32, i32, i32) {
    %c0_i32 = arith.constant 0 : i32
    %c0_i32_0 = arith.constant 0 : i32
    %c0_i32_1 = arith.constant 0 : i32
    %c0_i32_2 = arith.constant 0 : i32
    %c0_i32_3 = arith.constant 0 : i32
    return %c0_i32, %c0_i32_0, %c0_i32_1, %c0_i32_2 : i32, i32, i32, i32
  }
  func.func @transform_12(%arg0: i32) -> (i32, i32, i32, i32) {
    %c0_i32 = arith.constant 0 : i32
    %c0_i32_0 = arith.constant 0 : i32
    %c0_i32_1 = arith.constant 0 : i32
    %c0_i32_2 = arith.constant 0 : i32
    %c0_i32_3 = arith.constant 0 : i32
    return %c0_i32, %c0_i32_0, %c0_i32_1, %c0_i32_2 : i32, i32, i32, i32
  }
  func.func @transform_13(%arg0: i32) -> (i32, i32, i32, i32) {
    %c0_i32 = arith.constant 0 : i32
    %c0_i32_0 = arith.constant 0 : i32
    %c0_i32_1 = arith.constant 0 : i32
    %c0_i32_2 = arith.constant 0 : i32
    %c0_i32_3 = arith.constant 0 : i32
    return %c0_i32, %c0_i32_0, %c0_i32_1, %c0_i32_2 : i32, i32, i32, i32
  }
  func.func @transform_14(%arg0: i32) -> (i32, i32, i32, i32) {
    %c0_i32 = arith.constant 0 : i32
    %c0_i32_0 = arith.constant 0 : i32
    %c0_i32_1 = arith.constant 0 : i32
    %c0_i32_2 = arith.constant 0 : i32
    %c0_i32_3 = arith.constant 0 : i32
    return %c0_i32, %c0_i32_0, %c0_i32_1, %c0_i32_2 : i32, i32, i32, i32
  }
  func.func @transform_15(%arg0: i32) -> (i32, i32, i32, i32) {
    %c0_i32 = arith.constant 0 : i32
    %c0_i32_0 = arith.constant 0 : i32
    %c0_i32_1 = arith.constant 0 : i32
    %c0_i32_2 = arith.constant 0 : i32
    %c0_i32_3 = arith.constant 0 : i32
    return %c0_i32, %c0_i32_0, %c0_i32_1, %c0_i32_2 : i32, i32, i32, i32
  }
  func.func @transform_16(%arg0: i32) -> (i32, i32, i32, i32) {
    %c0_i32 = arith.constant 0 : i32
    %c0_i32_0 = arith.constant 0 : i32
    %c0_i32_1 = arith.constant 0 : i32
    %c0_i32_2 = arith.constant 0 : i32
    %c0_i32_3 = arith.constant 0 : i32
    return %c0_i32, %c0_i32_0, %c0_i32_1, %c0_i32_2 : i32, i32, i32, i32
  }
  func.func @transform_17(%arg0: i32) -> (i32, i32, i32, i32) {
    %c0_i32 = arith.constant 0 : i32
    %c0_i32_0 = arith.constant 0 : i32
    %c0_i32_1 = arith.constant 0 : i32
    %c0_i32_2 = arith.constant 0 : i32
    %c0_i32_3 = arith.constant 0 : i32
    return %c0_i32, %c0_i32_0, %c0_i32_1, %c0_i32_2 : i32, i32, i32, i32
  }
  func.func @transform_18(%arg0: i32) -> (i32, i32, i32, i32) {
    %c0_i32 = arith.constant 0 : i32
    %c0_i32_0 = arith.constant 0 : i32
    %c0_i32_1 = arith.constant 0 : i32
    %c0_i32_2 = arith.constant 0 : i32
    %c0_i32_3 = arith.constant 0 : i32
    return %c0_i32, %c0_i32_0, %c0_i32_1, %c0_i32_2 : i32, i32, i32, i32
  }
  func.func @transform_19(%arg0: i32) -> (i32, i32, i32, i32) {
    %c0_i32 = arith.constant 0 : i32
    %c0_i32_0 = arith.constant 0 : i32
    %c0_i32_1 = arith.constant 0 : i32
    %c0_i32_2 = arith.constant 0 : i32
    %c0_i32_3 = arith.constant 0 : i32
    return %c0_i32, %c0_i32_0, %c0_i32_1, %c0_i32_2 : i32, i32, i32, i32
  }
  func.func @transform_20(%arg0: i32) -> (i32, i32, i32, i32) {
    %c0_i32 = arith.constant 0 : i32
    %c0_i32_0 = arith.constant 0 : i32
    %c0_i32_1 = arith.constant 0 : i32
    %c0_i32_2 = arith.constant 0 : i32
    %c0_i32_3 = arith.constant 0 : i32
    return %c0_i32, %c0_i32_0, %c0_i32_1, %c0_i32_2 : i32, i32, i32, i32
  }
  func.func @transform_21(%arg0: i32) -> (i32, i32, i32, i32) {
    %c0_i32 = arith.constant 0 : i32
    %c0_i32_0 = arith.constant 0 : i32
    %c0_i32_1 = arith.constant 0 : i32
    %c0_i32_2 = arith.constant 0 : i32
    %c0_i32_3 = arith.constant 0 : i32
    return %c0_i32, %c0_i32_0, %c0_i32_1, %c0_i32_2 : i32, i32, i32, i32
  }
  func.func @transform_22(%arg0: i32) -> (i32, i32, i32) {
    %c0_i32 = arith.constant 0 : i32
    %c0_i32_0 = arith.constant 0 : i32
    %c0_i32_1 = arith.constant 0 : i32
    return %arg0, %c0_i32, %c0_i32_0 : i32, i32, i32
  }
  func.func @transform_23(%arg0: i32) -> (i32, i32, i32) {
    %c0_i32 = arith.constant 0 : i32
    %c0_i32_0 = arith.constant 0 : i32
    %c0_i32_1 = arith.constant 0 : i32
    return %arg0, %c0_i32, %c0_i32_0 : i32, i32, i32
  }
}

</mosaic_0001>

<bundles_post_ra>
// kernel: cross_modality_encoder.1
= control target key start
LH: loop header
LB: loop body
LE: loop exit
PB: predicated region body
PF: predicated region fallthrough
CT: control target
= control target key end

     0   :  { %s9179_s0 = inlined_call_operand.vmem [shape: f32[2,16,32], index: 0, kind: input, shape index: {}]   ;;  %s9180_s1 = inlined_call_operand.vmem [shape: f32[2,8,32], index: 1, kind: input, shape index: {}]   ;;  %s9181_s2 = inlined_call_operand.vmem [shape: f32[2,1,16], index: 2, kind: input, shape index: {}]   ;;  %s9182_s3 = inlined_call_operand.vmem [shape: f32[2,16,1], index: 3, kind: input, shape index: {}]   ;;  %s9183_s4 = inlined_call_operand.vmem [shape: f32[2,1,8], index: 4, kind: input, shape index: {}]   ;;  %s9184_s5 = inlined_call_operand.vmem [shape: f32[2,8,1], index: 5, kind: input, shape index: {}]   ;;  %s9185_s6 = inlined_call_operand.hbm [shape: f32[2,1,32], index: 6, kind: input, shape index: {}]   ;;  %s9186_s7 = inlined_call_operand.hbm [shape: f32[2,1,32], index: 7, kind: input, shape index: {}]   ;;  %s9187_s8 = inlined_call_operand.vmem [shape: f32[16,32], index: 8, kind: input, shape index: {}]   ;;  %s9188_s9 = inlined_call_operand.vmem [shape: f32[8,32], index: 9, kind: input, shape index: {}]   ;;  %s9189_s10 = inlined_call_operand.vmem [shape: f32[2,2,32,96], index: 10, kind: input, shape index: {}]   ;;  %s9190_s11 = inlined_call_operand.vmem [shape: f32[2,2,1,96], index: 11, kind: input, shape index: {}]   ;;  %s9191_s12 = inlined_call_operand.vmem [shape: f32[2,2,32,32], index: 12, kind: input, shape index: {}]   ;;  %s9192_s13 = inlined_call_operand.vmem [shape: f32[2,2,1,32], index: 13, kind: input, shape index: {}]   ;;  %s9193_s14 = inlined_call_operand.vmem [shape: f32[2,2,1,32], index: 14, kind: input, shape index: {}]   ;;  %s9194_s15 = inlined_call_operand.hbm [shape: f32[2,2,1,32], index: 15, kind: input, shape index: {}]   ;;  %s9195_s16 = inlined_call_operand.vmem [shape: f32[2,2,32,64], index: 16, kind: input, shape index: {}]   ;;  %s9196_s17 = inlined_call_operand.hbm [shape: f32[2,2,1,64], index: 17, kind: input, shape index: {}]   ;;  %s9197_s18 = inlined_call_operand.vmem [shape: f32[2,2,64,32], index: 18, kind: input, shape index: {}]   ;;  %s9198_s19 = inlined_call_operand.hbm [shape: f32[2,2,1,32], index: 19, kind: input, shape index: {}]   ;;  %s9199_s20 = inlined_call_operand.hbm [shape: f32[2,2,1,32], index: 20, kind: input, shape index: {}]   ;;  %s9200_s21 = inlined_call_operand.hbm [shape: f32[2,2,1,32], index: 21, kind: input, shape index: {}]   ;;  %s9201_s22 = inlined_call_operand.hbm [shape: f32[2,16,32], index: 22, kind: output, shape index: {0}]   ;;  %s9202_s23 = inlined_call_operand.hbm [shape: f32[2,8,32], index: 23, kind: output, shape index: {1}]  }
   0x1   :  { %9236 = sst [smem:[#allocation31_spill]] %s9179_s0 }
   0x2   :  { %9237 = sst [smem:[#allocation32_spill]] %s9180_s1 }
   0x3   :  { %9238 = sst [smem:[#allocation33_spill]] %s9181_s2 }
   0x4   :  { %9239 = sst [smem:[#allocation34_spill]] %s9182_s3 }
   0x5   :  { %9240 = sst [smem:[#allocation35_spill]] %s9183_s4 }
   0x6   :  { %9241 = sst [smem:[#allocation36_spill]] %s9184_s5 }
   0x7   :  { %9242 = sst [smem:[#allocation37_spill]] %s9185_s6 }
   0x8   :  { %9243 = sst [smem:[#allocation38_spill]] %s9186_s7 }
   0x9   :  { %9244 = sst [smem:[#allocation39_spill]] %s9188_s9 }
   0xa   :  { %9245 = sst [smem:[#allocation40_spill]] %s9193_s14 }
   0xb   :  { %9246 = sst [smem:[#allocation41_spill]] %s9196_s17 }
   0xc   :  { %9247 = sst [smem:[#allocation42_spill]] %s9201_s22 }
   0xd   :  { %9248 = sst [smem:[#allocation43_spill]] %s9202_s23 }
   0xe   :  { %29 = vsyncpa [#allocation3], 0 }
   0xf   :  { %30 = vsyncpa [#allocation6], 0 }
  0x10   :  { %31 = vsyncpa [#allocation9], 0 }
  0x11   :  { %32 = vsyncpa [#allocation12], 0 }
  0x12   :  { %33 = vsyncpa [#allocation4], 0 }
  0x13   :  { %35 = vsyncpa [#allocation4 + $0x1], 0 }
  0x14   :  { %36 = vsyncpa [#allocation16], 0 }
  0x15   :  { %38 = vsyncpa [#allocation16 + $0x1], 0  ;;  %s7957_s4 = smov 0   ;;  %s7959_s30 = smov 0  }
  0x16   :  { %s7961_s24 = smov 0   ;;  %s7963_s25 = smov 0  }
  0x17 LB: > { %9249 = sst [smem:[#allocation23_spill]] %s7799_s4  ;;  %s7978_s5 = sadd.s32 4294967295, %s7811_s25   ;;  %s7811_s25 = sphi %s7963_s25, %s9303_s25   ;;  %s7807_s24 = sphi %s7961_s24, %s9306_s24   ;;  %s7803_s30 = sphi %s7959_s30, %s9305_s30   ;;  %s7799_s4 = sphi %s7957_s4, %s9304_s4  }
  0x18   : > { %9250 = sst [smem:[#allocation24_spill]] %s7803_s30  ;;  %s6106_s1 = sadd.s32 4294967294, %s7811_s25  }
  0x19   : > { %9251 = sst [smem:[#allocation25_spill]] %s7807_s24  ;;  %s7982_s26 = sadd.s32 1, %s7811_s25  }
  0x1a   : > { %9252 = sst [smem:[#allocation26_spill]] %s7811_s25  ;;  %s543_s2 = sadd.s32 1, %s7807_s24 }
  0x1b   : > { %9253 = sst [smem:[#allocation27_spill]] %s7982_s26  ;;  %s540_s6 = ssub.s32 %s7811_s25, %s7982_s26 }
  0x1c   : > { %p553_p0 = scmp.ne.s32.totalorder %s7807_s24, %s7803_s30  ;;  %p541_p1 = scmp.eq.s32.totalorder %s540_s6, 0 }
  0x1d   : > { %p554_p2 = scmp.eq.s32.totalorder %s7978_s5, 1  ;;  %p559_p3 = scmp.ne.s32.totalorder %s7803_s30, %s7799_s4 }
  0x1e   : > { %p560_p4 = scmp.eq.s32.totalorder %s6106_s1, 1  ;;  %p6107_p7 = scmp.ge.s32.totalorder %s7811_s25, 1 }
  0x1f   : > { %s7993_s27 = scalar_select %p541_p1, %s7807_s24, %s543_s2  }
  0x20   : > { %p7995_p5 = por %p554_p2, %p553_p0  ;;  %p7999_p6 = por %p560_p4, %p559_p3 }
  0x21   : > { %9254 = sst [smem:[#allocation28_spill]] %s7993_s27  ;;  %p593_p8 = scmp.lt.s32.totalorder %s7811_s25, 3 }
  0x22   : > { %s9255_s7 = scalar_select %p7995_p5, 1, 0 }
  0x23   : > { %s9257_s28 = scalar_select %p7999_p6, 1, 0 }
  0x24   : > { %9256 = sst [smem:[#allocation29_spill]] %s9255_s7  ;;  %p9215_p9 = scmp.eq.s32.totalorder %s7978_s5, 0 }
  0x25   : > { %9258 = sst [smem:[#allocation30_spill]] %s9257_s28  ;;  %p8006_p10 = pnand %p6107_p7, %p593_p8 }
  0x26   : > { %s7813_s3 = smov [#allocation5]   ;;  %s7814_s2 = smov [#allocation8]  }
  0x27   : > { %s9259_s29 = scalar_select %p8006_p10, 1, 0 }
  0x28   : > { %p7197_p11 = pneg %p8006_p10  ;;  %s618_s0 = sshll.u32 %s7813_s3, 4  ;;  %s8012_s0 = int_to_ptr.vmem [resolvable:$true] %s618_s0 }
  0x29   : > { %s668_s6 = sshll.u32 %s7814_s2, 4  ;;  %s7815_s27 = smov [#allocation11]   ;;  %s8020_s6 = int_to_ptr.vmem [resolvable:$true] %s668_s6 }
  0x2a   : > { %p8016_p12 = pnand %p9215_p9, %p7197_p11  ;;  %s8022_s24 = sshll.u32 %s7815_s27, 4  ;;  %s698_s24 = int_to_ptr.vmem [resolvable:$true] %s8022_s24 }
  0x2b   : > { %s9261_s4 = sld [smem:[#allocation38_spill]] }
  0x2c   : > { %p8032_p0 = pneg %p8016_p12 }
  0x31   : > { %s9262_s23 = smov %s9261_s4  ;;  %s7505_s25 = scalar_lea.hbm %s9261_s4, 32 }
  0x32   : > { %p7506_p13 = scmp.ne.s32.totalorder %s9262_s23, %s7505_s25  ;;  %p7512_p3 = scmp.lt.u32.totalorder %s7505_s25, %s9262_s23 }
  0x34   : > { %p7508_p1 = pnand %p8032_p0, %p7506_p13 }
  0x36   : > { %p7509_p2 = pneg %p7508_p1 }
  0x38   : > { %p7514_p4 = pnand %p7512_p3, %p7509_p2 }
  0x3a   : > { %7517 = shalt.err (!%p7514_p4)
}
  0x3b   : > { %s7518_s22 = scalar_lea.vmem %s8012_s0, 32  ;;  %p7526_p9 = scmp.lt.s32.totalorder %s8012_s0, %s8012_s0 }
  0x3c   : > { %p7519_p7 = scmp.ne.s32.totalorder %s8012_s0, %s7518_s22  ;;  %p7527_p6 = scmp.lt.s32.totalorder %s7518_s22, %s7518_s22 }
  0x3e   : > { %p7521_p8 = pnand %p7519_p7, %p8032_p0  ;;  %p7528_p13 = por %p7527_p6, %p7526_p9 }
  0x40   : > { %p7522_p11 = pneg %p7521_p8 }
  0x42   : > { %p7529_p1 = pnand %p7528_p13, %p7522_p11 }
  0x44   : > { %7532 = shalt.err (!%p7529_p1)
}
  0x45   : > { %s7816_s4 = smov 16   ;;  %s7817_s25 = smov 1  }
  0x46   : > { %7203 = dma.hbm_to_vmem [thread:$0]  (!%p8016_p12), %s9262_s23, 32, %s8012_s0, [#allocation6], %s7816_s4, %s7816_s4, %s7817_s25  }
  0x47   : > { %s9264_s17 = sld [smem:[#allocation41_spill]] }
  0x4d   : > { %s7533_s27 = scalar_lea.hbm %s9264_s17, 64 }
  0x4e   : > { %p7534_p6 = scmp.ne.s32.totalorder %s9264_s17, %s7533_s27  ;;  %p7540_p3 = scmp.lt.u32.totalorder %s7533_s27, %s9264_s17 }
  0x50   : > { %p7536_p9 = pnand %p7534_p6, %p8032_p0 }
  0x52   : > { %p7537_p2 = pneg %p7536_p9 }
  0x54   : > { %p7542_p4 = pnand %p7540_p3, %p7537_p2 }
  0x56   : > { %7545 = shalt.err (!%p7542_p4)
}
  0x57   : > { %s7546_s0 = scalar_lea.vmem %s8020_s6, 64  ;;  %p7554_p13 = scmp.lt.s32.totalorder %s8020_s6, %s8020_s6 }
  0x58   : > { %p7547_p7 = scmp.ne.s32.totalorder %s8020_s6, %s7546_s0  ;;  %p7555_p1 = scmp.lt.s32.totalorder %s7546_s0, %s7546_s0 }
  0x5a   : > { %p7549_p8 = pnand %p7547_p7, %p8032_p0  ;;  %p7556_p6 = por %p7555_p1, %p7554_p13 }
  0x5c   : > { %p7550_p11 = pneg %p7549_p8 }
  0x5e   : > { %p7557_p9 = pnand %p7556_p6, %p7550_p11 }
  0x60   : > { %7560 = shalt.err (!%p7557_p9)
}
  0x61   : > { %7209 = dma.hbm_to_vmem [thread:$0]  (!%p8016_p12), %s9264_s17, 64, %s8020_s6, [#allocation9], %s7816_s4, %s7816_s4, %s7817_s25  }
  0x62   : > { %s7561_s28 = scalar_lea.hbm %s9199_s20, 64 }
  0x63   : > { %p7562_p2 = scmp.ne.s32.totalorder %s9199_s20, %s7561_s28  ;;  %p7568_p7 = scmp.lt.u32.totalorder %s7561_s28, %s9199_s20 }
  0x65   : > { %p7564_p3 = pnand %p7562_p2, %p8032_p0 }
  0x67   : > { %p7565_p4 = pneg %p7564_p3 }
  0x69   : > { %p7570_p8 = pnand %p7568_p7, %p7565_p4 }
  0x6b   : > { %7573 = shalt.err (!%p7570_p8)
}
  0x6c   : > { %s7574_s0 = scalar_lea.vmem %s698_s24, 64  ;;  %p7582_p6 = scmp.lt.s32.totalorder %s698_s24, %s698_s24 }
  0x6d   : > { %p7575_p11 = scmp.ne.s32.totalorder %s698_s24, %s7574_s0  ;;  %p7583_p9 = scmp.lt.s32.totalorder %s7574_s0, %s7574_s0 }
  0x6f   : > { %p7577_p13 = pnand %p7575_p11, %p8032_p0  ;;  %p7584_p5 = por %p7583_p9, %p7582_p6 }
  0x71   : > { %p7578_p1 = pneg %p7577_p13 }
  0x73   : > { %p7585_p10 = pnand %p7584_p5, %p7578_p1 }
  0x75   : > { %7588 = shalt.err (!%p7585_p10)
}
  0x76   : > { %7215 = dma.hbm_to_vmem [thread:$0]  (!%p8016_p12), %s9199_s20, 64, %s698_s24, [#allocation12], %s7816_s4, %s7816_s4, %s7817_s25  }
  0x77   : > { %s7818_s14 = smov [#allocation2]   ;;  %s7819_s26 = smov [#allocation7]  }
  0x78   : > { %s605_s30 = sshll.u32 %s7818_s14, 4  ;;  %s652_s28 = sshll.u32 %s7819_s26, 4  ;;  %s606_s30 = int_to_ptr.vmem [resolvable:$true] %s605_s30  ;;  %s653_s28 = int_to_ptr.vmem [resolvable:$true] %s652_s28 }
  0x79   : > { %s9265_s27 = sld [smem:[#allocation37_spill]] }
  0x7f   : > { %s7589_s22 = scalar_lea.hbm %s9265_s27, 32 }
  0x80   : > { %p7590_p5 = scmp.ne.s32.totalorder %s9265_s27, %s7589_s22  ;;  %p7596_p3 = scmp.lt.u32.totalorder %s7589_s22, %s9265_s27 }
  0x82   : > { %p7592_p10 = pnand %p7590_p5, %p8032_p0 }
  0x84   : > { %p7593_p2 = pneg %p7592_p10 }
  0x86   : > { %p7598_p4 = pnand %p7596_p3, %p7593_p2 }
  0x88   : > { %7601 = shalt.err (!%p7598_p4)
}
  0x89   : > { %s7602_s24 = scalar_lea.vmem %s606_s30, 32  ;;  %p7610_p13 = scmp.lt.s32.totalorder %s606_s30, %s606_s30 }
  0x8a   : > { %p7603_p7 = scmp.ne.s32.totalorder %s606_s30, %s7602_s24  ;;  %p7611_p1 = scmp.lt.s32.totalorder %s7602_s24, %s7602_s24 }
  0x8c   : > { %p7605_p8 = pnand %p7603_p7, %p8032_p0  ;;  %p7612_p6 = por %p7611_p1, %p7610_p13 }
  0x8e   : > { %p7606_p11 = pneg %p7605_p8 }
  0x90   : > { %p7613_p9 = pnand %p7612_p6, %p7606_p11 }
  0x92   : > { %7616 = shalt.err (!%p7613_p9)
}
  0x93   : > { %7200 = dma.hbm_to_vmem [thread:$0]  (!%p8016_p12), %s9265_s27, 32, %s606_s30, [#allocation3], %s7816_s4, %s7816_s4, %s7817_s25  }
  0x94   : > { %s7617_s26 = scalar_lea.hbm %s9194_s15, 64 }
  0x95   : > { %p7618_p5 = scmp.ne.s32.totalorder %s9194_s15, %s7617_s26  ;;  %p7624_p3 = scmp.lt.u32.totalorder %s7617_s26, %s9194_s15 }
  0x97   : > { %p7620_p10 = pnand %p7618_p5, %p8032_p0 }
  0x99   : > { %p7621_p2 = pneg %p7620_p10 }
  0x9b   : > { %p7626_p4 = pnand %p7624_p3, %p7621_p2 }
  0x9d   : > { %7629 = shalt.err (!%p7626_p4)
}
  0x9e   : > { %s7630_s6 = scalar_lea.vmem %s653_s28, 64  ;;  %p7638_p13 = scmp.lt.s32.totalorder %s653_s28, %s653_s28 }
  0x9f   : > { %p7631_p7 = scmp.ne.s32.totalorder %s653_s28, %s7630_s6  ;;  %p7639_p1 = scmp.lt.s32.totalorder %s7630_s6, %s7630_s6 }
  0xa1   : > { %p7633_p8 = pnand %p7631_p7, %p8032_p0  ;;  %p7640_p6 = por %p7639_p1, %p7638_p13 }
  0xa3   : > { %p7634_p11 = pneg %p7633_p8 }
  0xa5   : > { %p7641_p9 = pnand %p7640_p6, %p7634_p11 }
  0xa7   : > { %7644 = shalt.err (!%p7641_p9)
}
  0xa8   : > { %7206 = dma.hbm_to_vmem [thread:$0]  (!%p8016_p12), %s9194_s15, 64, %s653_s28, [#allocation6], %s7816_s4, %s7816_s4, %s7817_s25  }
  0xa9   : > { %s7820_s17 = smov [#allocation10]   ;;  %s7821_s9 = smov [#allocation13]  }
  0xaa   : > { %s684_s23 = sshll.u32 %s7820_s17, 4  ;;  %s710_s14 = sshll.u32 %s7821_s9, 4  ;;  %s685_s23 = int_to_ptr.vmem [resolvable:$true] %s684_s23  ;;  %s711_s14 = int_to_ptr.vmem [resolvable:$true] %s710_s14 }
  0xab   : > { %s7645_s2 = scalar_lea.hbm %s9198_s19, 64 }
  0xac   : > { %p7646_p5 = scmp.ne.s32.totalorder %s9198_s19, %s7645_s2  ;;  %p7652_p3 = scmp.lt.u32.totalorder %s7645_s2, %s9198_s19 }
  0xae   : > { %p7648_p10 = pnand %p7646_p5, %p8032_p0 }
  0xb0   : > { %p7649_p2 = pneg %p7648_p10 }
  0xb2   : > { %p7654_p4 = pnand %p7652_p3, %p7649_p2 }
  0xb4   : > { %7657 = shalt.err (!%p7654_p4)
}
  0xb5   : > { %s7658_s28 = scalar_lea.vmem %s685_s23, 64  ;;  %p7666_p13 = scmp.lt.s32.totalorder %s685_s23, %s685_s23 }
  0xb6   : > { %p7659_p7 = scmp.ne.s32.totalorder %s685_s23, %s7658_s28  ;;  %p7667_p1 = scmp.lt.s32.totalorder %s7658_s28, %s7658_s28 }
  0xb8   : > { %p7661_p8 = pnand %p7659_p7, %p8032_p0  ;;  %p7668_p6 = por %p7667_p1, %p7666_p13 }
  0xba   : > { %p7662_p11 = pneg %p7661_p8 }
  0xbc   : > { %p7669_p9 = pnand %p7668_p6, %p7662_p11 }
  0xbe   : > { %7672 = shalt.err (!%p7669_p9)
}
  0xbf   : > { %7212 = dma.hbm_to_vmem [thread:$0]  (!%p8016_p12), %s9198_s19, 64, %s685_s23, [#allocation9], %s7816_s4, %s7816_s4, %s7817_s25  }
  0xc0   : > { %s7673_s3 = scalar_lea.hbm %s9200_s21, 64 }
  0xc1   : > { %p7674_p5 = scmp.ne.s32.totalorder %s9200_s21, %s7673_s3  ;;  %p7680_p3 = scmp.lt.u32.totalorder %s7673_s3, %s9200_s21 }
  0xc3   : > { %p7676_p10 = pnand %p7674_p5, %p8032_p0 }
  0xc5   : > { %p7677_p2 = pneg %p7676_p10 }
  0xc7   : > { %p7682_p4 = pnand %p7680_p3, %p7677_p2 }
  0xc9   : > { %7685 = shalt.err (!%p7682_p4)
}
  0xca   : > { %s7686_s30 = scalar_lea.vmem %s711_s14, 64  ;;  %p7694_p13 = scmp.lt.s32.totalorder %s711_s14, %s711_s14 }
  0xcb   : > { %p7687_p7 = scmp.ne.s32.totalorder %s711_s14, %s7686_s30  ;;  %p7695_p1 = scmp.lt.s32.totalorder %s7686_s30, %s7686_s30 }
  0xcd   : > { %p7689_p8 = pnand %p7687_p7, %p8032_p0  ;;  %p7696_p6 = por %p7695_p1, %p7694_p13 }
  0xcf   : > { %p7690_p11 = pneg %p7689_p8 }
  0xd1   : > { %p7697_p9 = pnand %p7696_p6, %p7690_p11 }
  0xd3   : > { %7700 = shalt.err (!%p7697_p9)
}
  0xd4   : > { %7218 = dma.hbm_to_vmem [thread:$0]  (!%p8016_p12), %s9200_s21, 64, %s711_s14, [#allocation12], %s7816_s4, %s7816_s4, %s7817_s25  }
  0xd5   : > { %p9266_p5 = scmp.ne.s32.totalorder %s9259_s29, 0 }
  0xd6   : > { %p9267_p0 = scmp.eq.s32.totalorder (!%p9266_p5), %s7978_s5, 0 }
  0xd7   : > { %768 = sbr.rel (%p9266_p5) target bundleno = 8822 (0x2276), region = 108 }
  0xde   : > { %7774 = dma.done.wait (%p9267_p0), [#allocation3], 32   ;;  %p9268_p10 = pmov %p9267_p0 }
  0xdf   : > { %p9269_p2 = pmov %p9267_p0 }
  0xe0   : > { %7776 = vsyncadd (%p9268_p10), [#allocation3], 4294967264 }
  0xe1   : > { %7778 = dma.done.wait (%p9269_p2), [#allocation6], 96   ;;  %p9270_p3 = pmov %p9267_p0 }
  0xe2   : > { %p9271_p4 = pmov %p9267_p0 }
  0xe3   : > { %7780 = vsyncadd (%p9270_p3), [#allocation6], 4294967200 }
  0xe4   : > { %7782 = dma.done.wait (%p9271_p4), [#allocation9], 128   ;;  %p9272_p12 = pmov %p9267_p0 }
  0xe5   : > { %p9273_p7 = pmov %p9267_p0 }
  0xe6   : > { %7784 = vsyncadd (%p9272_p12), [#allocation9], 4294967168 }
  0xe7   : > { %7786 = dma.done.wait (%p9273_p7), [#allocation12], 128   ;;  %p9274_p8 = pmov %p9267_p0 }
  0xe8   : > { %p880_p11 = scmp.lt.s32.totalorder %s7978_s5, 1  ;;  %s9275_s25 = sld [smem:[#allocation31_spill]]  ;;  %vm908_vm0 = vcmask 261120   ;;  %v995_v14 = vld [vmem:[%s9189_s10] sm:$0xff]  ;;  %v996_v15 = vld [vmem:[%s9189_s10 + $0x8] sm:$0xff]  ;;  %v997_v16 = vld [vmem:[%s9189_s10 + $0x10] sm:$0xff] }
  0xe9   : > { %7788 = vsyncadd (%p9274_p8), [#allocation12], 4294967168  ;;  %v6945_v17 = vpack.c.bf16 %v996_v15, %v995_v14  ;;  %v998_v18 = vld [vmem:[%s9189_s10 + $0x18] sm:$0xff]  ;;  %v6132_v27 = vld [vmem:[#allocation2] ss:$0 sm:$0xff]  ;;  %vm1112_vm1 = vcmask 64512  }
  0xea   : > { %s8208_s7 = scalar_select %p880_p11, %s7978_s5, 1  ;;  %v6949_v19 = vpack.c.bf16 %v998_v18, %v997_v16  ;;  %v6133_v29 = vld [vmem:[#allocation5] ss:$0 sm:$0xff]  ;;  %v953_v37 = vld [vmem:[%s9187_s8 + $0x8] sm:$0xff]  ;;  %v6136_v40 = vld [vmem:[%s9190_s11] ss:$0 sm:$0xff] }
  0xeb   : > { %6946 = vmatprep.subr.bf16.mxu1 %v6945_v17  ;;  %v952_v32 = vld [vmem:[%s9187_s8] sm:$0xff]  ;;  %s9232_s24 = smov 104   ;;  %s9230_s17 = smov 96   ;;  %vm8271_vm2 = vmpackc.low %vm1112_vm1, %vm1112_vm1  ;;  %vm1479_vm3 = vcmask 130048   ;;  %vm1944_vm4 = vcmask 195584   ;;  %vm7832_vm5 = vmmov 0  }
  0xec   : > { %s6342_s29 = sshll.u32 %s8208_s7, 4  ;;  %6948 = vmatpush3.bf16.msra.mxu1 %v6945_v17  ;;  %s9278_s3 = sld [smem:[#allocation33_spill]]  ;;  %vm2201_vm6 = vcmask 523264  }
  0xed   : > { %6950 = vmatprep.subr.bf16.mxu1 %v6949_v19  ;;  %s9228_s22 = smov 64   ;;  %s9226_s26 = smov 8  }
  0xee   : > { %s884_s14 = scalar_lea.vmem %s9275_s25, %s6342_s29  ;;  %s9234_s25 = smov 120  }
  0xef   : > { %v904_v0 = vld [vmem:[%s884_s14] sm:$0xff]  ;;  %v905_v1 = vld [vmem:[%s884_s14 + $0x8] sm:$0xff]  ;;  %s9235_s14 = smov 112   ;;  %s9222_s0 = smov 24  }
  0xf0   : > { %v909_v2 = vsel %vm908_vm0, %v904_v0, 0.0  ;;  %v912_v3 = vsel %vm908_vm0, %v905_v1, 0.0  ;;  %6952 = vmatpush3.bf16.msra.mxu1 %v6949_v19  ;;  %s9221_s23 = sshll.u32 %s8208_s7, 3  ;;  %s9279_s4 = sld [smem:[#allocation32_spill]] }
  0xf1   : > { %910 = vadd.xlane.f32.xlu0 %v909_v2  ;;  %s9280_s28 = sld [smem:[#allocation34_spill]]  ;;  %s9288_s6 = sld [smem:[#allocation36_spill]] }
  0xf2   : > { %s8305_s2 = scalar_lea.vmem %s9278_s3, %s8208_s7  ;;  %s9224_s3 = smov 16  }
  0xf5   : > { %913 = vadd.xlane.f32.xlu0 %v912_v3 }
  0xf6   : > { %s888_s9 = scalar_lea.vmem %s9279_s4, %s9221_s23  ;;  %s9283_s23 = sld [smem:[#allocation35_spill]] }
  0xf7   : > { %s896_s1 = scalar_lea.vmem %s9280_s28, %s6342_s29  ;;  %s9281_s28 = sld [smem:[#allocation40_spill]] }
  0xf8   : > { %s9287_s4 = sshll.u32 %s8208_s7, 3  ;;  %s9296_s29 = sld [smem:[#allocation42_spill]] }
  0xf9   : > { %s903_s30 = scalar_lea.vmem %s9288_s6, %s9287_s4 }
 0x17e   : > { %v911_v4 = vpop.xlane.xlu0 %910 }
 0x17f   : > { %v916_v5 = vmul.f32 0.03125, %v911_v4 }
 0x181   : > { %v918_v6 = vsub.f32 %v904_v0, %v916_v5 }
 0x182   : > { %v914_v7 = vpop.xlane.xlu0 %913 }
 0x183   : > { %v917_v8 = vmul.f32 0.03125, %v914_v7  ;;  %v920_v9 = vmul.f32 %v918_v6, %v918_v6 }
 0x185   : > { %v919_v10 = vsub.f32 %v905_v1, %v917_v8  ;;  %v922_v11 = vsel %vm908_vm0, %v920_v9, 0.0  ;;  %v6155_v8 = vld [vmem:[%s8305_s2] ss:$0 sm:$0xff] }
 0x186   : > { %923 = vadd.xlane.f32.xlu1 %v922_v11 }
 0x187   : > { %v921_v12 = vmul.f32 %v919_v10, %v919_v10 }
 0x189   : > { %v925_v13 = vsel %vm908_vm0, %v921_v12, 0.0 }
 0x18a   : > { %926 = vadd.xlane.f32.xlu1 %v925_v13 }
 0x213   : > { %v924_v20 = vpop.xlane.xlu1 %923 }
 0x214   : > { %v928_v21 = vmul.f32 0.03125, %v924_v20 }
 0x216   : > { %v930_v22 = vadd.f32 1e-05, %v928_v21 }
 0x217   : > { %v927_v23 = vpop.xlane.xlu1 %926 }
 0x218   : > { %7377 = vrsqrt.f32 %v930_v22  ;;  %v929_v24 = vmul.f32 0.03125, %v927_v23 }
 0x21a   : > { %v931_v25 = vadd.f32 1e-05, %v929_v24 }
 0x21c   : > { %7379 = vrsqrt.f32 %v931_v25 }
 0x222   : > { %v7378_v26 = vpop.eup %7377 }
 0x223   : > { %v934_v28 = vmul.f32 %v7378_v26, %v918_v6 }
 0x225   : > { %v942_v30 = vmul.f32 %v6132_v27, %v934_v28 }
 0x226   : > { %v7380_v31 = vpop.eup %7379 }
 0x227   : > { %v935_v33 = vmul.f32 %v7380_v31, %v919_v10  ;;  %v950_v34 = vadd.f32 %v6133_v29, %v942_v30 }
 0x229   : > { %v943_v35 = vmul.f32 %v6132_v27, %v935_v33  ;;  %v8235_v36 = vadd.f32 %v952_v32, %v950_v34 }
 0x22b   : > { %v951_v38 = vadd.f32 %v6133_v29, %v943_v35  ;;  %6553 = vmatprep.mubr.msk.f32.mxu1 %vm908_vm0, %v8235_v36 }
 0x22d   : > { %v8242_v39 = vadd.f32 %v953_v37, %v951_v38 }
 0x22f   : > { %6554 = vmatmul.mubr.msk.f32.vlgmr.msra.gmra.mrb[0].mxu1 %vm908_vm0, %v8242_v39 }
 0x302   : > { %v6555_v41 = vpop.f32.mrb[0].mxu1 }
 0x303   : > { %v1091_v42 = vadd.f32 %v6555_v41, %v6136_v40  ;;  %v1085_v43 = vpop.f32.mrb[1].mxu1 }
 0x304   : > { %v1086_v44 = vadd.f32 %v6136_v40, %v1085_v43 }
 0x305   : > { %1098 = vrot.lane.b32.xlu1 %v1091_v42, %s9234_s25 }
 0x306   : > { %1096 = vrot.lane.b32.xlu0 %v1086_v44, %s9234_s25  ;;  %6560 = vmatprep.mubr.msk.f32.mxu1 %vm1112_vm1, %v1086_v44  ;;  %v8254_v45 = vpack.i.bf16 %v1091_v42, %v1086_v44 }
 0x309   : > { %1102 = vrot.lane.b32.xlu1 %v1091_v42, %s9235_s14 }
 0x30a   : > { %1104 = vrot.lane.b32.xlu0 %v1086_v44, %s9232_s24 }
 0x30d   : > { %1100 = vrot.lane.b32.xlu1 %v1086_v44, %s9235_s14 }
 0x30e   : > { %7296 = vrot.lane.b32.xlu0 %v8254_v45, %s9230_s17 }
 0x311   : > { %1106 = vrot.lane.b32.xlu1 %v1091_v42, %s9232_s24 }
 0x377   : > { %v1099_v46 = vpop.permute.xlu1 %1098 }
 0x378   : > { %v1097_v47 = vpop.permute.xlu0 %1096 }
 0x379   : > { %6567 = vmatprep.mubr.msk.f32.mxu0 %vm1112_vm1, %v1097_v47  ;;  %v8261_v48 = vpack.i.bf16 %v1099_v46, %v1097_v47 }
 0x37b   : > { %v1103_v49 = vpop.permute.xlu1 %1102  ;;  %7301 = vrot.lane.b32.xlu1 %v8261_v48, %s9230_s17 }
 0x37c   : > { %v1105_v50 = vpop.permute.xlu0 %1104 }
 0x37f   : > { %v1101_v51 = vpop.permute.xlu1 %1100 }
 0x380   : > { %v7297_v52 = vpop.permute.xlu0 %7296  ;;  %v8265_v53 = vpack.i.bf16 %v1103_v49, %v1101_v51 }
 0x381   : > { %v7299_v54 = vunpack.i.h.bf16 %v7297_v52  ;;  %v7298_v55 = vunpack.i.l.bf16 %v7297_v52 }
 0x382   : > { %7306 = vrot.lane.b32.xlu0 %v8265_v53, %s9230_s17 }
 0x383   : > { %v6953_v57 = vpack.c.bf16 %v7299_v54, %v7298_v55  ;;  %v1107_v58 = vpop.permute.xlu1 %1106 }
 0x384   : > { %v8275_v59 = vpack.i.bf16 %v1107_v58, %v1105_v50 }
 0x385   : > { %6955 = vmatprep.subr.msk.bf16.mxu1 %vm8271_vm2, %v6953_v57 }
 0x386   : > { %7311 = vrot.lane.b32.xlu1 %v8275_v59, %s9230_s17  ;;  %6958 = vmatpush3.bf16.xpose.msk.msra.mxu1 %vm8271_vm2, %v6953_v57 }
 0x38d   : > { %6561 = vmatmul.mubr.msk.f32.vlgmr.msra.gmra.mrb[2].mxu1 %vm1112_vm1, %v1091_v42 }
 0x38e   : > { %6574 = vmatprep.mubr.msk.f32.mxu1 %vm1112_vm1, %v1101_v51 }
 0x3ed   : > { %v7302_v60 = vpop.permute.xlu1 %7301 }
 0x3ee   : > { %v7304_v61 = vunpack.i.h.bf16 %v7302_v60  ;;  %v7303_v62 = vunpack.i.l.bf16 %v7302_v60 }
 0x3f0   : > { %v6959_v63 = vpack.c.bf16 %v7304_v61, %v7303_v62 }
 0x3f2   : > { %6961 = vmatprep.subr.msk.bf16.mxu0 %vm8271_vm2, %v6959_v63 }
 0x3f3   : > { %6964 = vmatpush3.bf16.xpose.msk.msra.mxu0 %vm8271_vm2, %v6959_v63 }
 0x3f4   : > { %v7307_v0 = vpop.permute.xlu0 %7306 }
 0x3f5   : > { %v7309_v1 = vunpack.i.h.bf16 %v7307_v0  ;;  %v7308_v2 = vunpack.i.l.bf16 %v7307_v0 }
 0x3f7   : > { %v6965_v3 = vpack.c.bf16 %v7309_v1, %v7308_v2 }
 0x3f8   : > { %v7312_v4 = vpop.permute.xlu1 %7311 }
 0x3f9   : > { %v7314_v5 = vunpack.i.h.bf16 %v7312_v4  ;;  %v7313_v6 = vunpack.i.l.bf16 %v7312_v4  ;;  %6967 = vmatprep.subr.msk.bf16.mxu1 %vm8271_vm2, %v6965_v3 }
 0x3fa   : > { %6568 = vmatmul.mubr.msk.f32.vlgmr.msra.gmra.mrb[0].mxu0 %vm1112_vm1, %v1099_v46  ;;  %6970 = vmatpush3.bf16.xpose.msk.msra.mxu1 %vm8271_vm2, %v6965_v3 }
 0x3fb   : > { %v6971_v7 = vpack.c.bf16 %v7314_v5, %v7313_v6  ;;  %6581 = vmatprep.mubr.msk.f32.mxu0 %vm1112_vm1, %v1105_v50 }
 0x3fd   : > { %6973 = vmatprep.subr.msk.bf16.mxu0 %vm8271_vm2, %v6971_v7 }
 0x3fe   : > { %6976 = vmatpush3.bf16.xpose.msk.msra.mxu0 %vm8271_vm2, %v6971_v7 }
 0x401   : > { %6575 = vmatmul.mubr.msk.f32.vlgmr.msra.gmra.mrb[4].mxu1 %vm1112_vm1, %v1103_v49 }
 0x405   : > { %6582 = vmatmul.mubr.msk.f32.vlgmr.msra.gmra.mrb[2].mxu0 %vm1112_vm1, %v1107_v58 }
 0x460   : > { %v6562_v9 = vpop.f32.mrb[2].mxu1 }
 0x461   : > { %v1458_v10 = vmul.f32 0.35355338, %v6562_v9  ;;  %v1187_v11 = vpop.f32.mrb[3].mxu1 }
 0x462   : > { %v1457_v12 = vmul.f32 0.35355338, %v1187_v11 }
 0x463   : > { %v1472_v13 = vadd.f32 %v6155_v8, %v1458_v10 }
 0x464   : > { %v1471_v14 = vadd.f32 %v6155_v8, %v1457_v12 }
 0x465   : > { %v1483_v15 = vsel %vm1479_vm3, %v1472_v13, -inf }
 0x466   : > { %1484 = vmax.xlane.f32.xlu1 %v1483_v15  ;;  %v1480_v16 = vsel %vm1479_vm3, %v1471_v14, -inf }
 0x467   : > { %1481 = vmax.xlane.f32.xlu0 %v1480_v16 }
 0x4cd   : > { %v6569_v17 = vpop.f32.mrb[0].mxu0 }
 0x4ce   : > { %v1460_v18 = vmul.f32 0.35355338, %v6569_v17  ;;  %v1274_v19 = vpop.f32.mrb[1].mxu0 }
 0x4cf   : > { %v1459_v20 = vmul.f32 0.35355338, %v1274_v19 }
 0x4d0   : > { %v1474_v21 = vadd.f32 %v6155_v8, %v1460_v18 }
 0x4d1   : > { %v1473_v23 = vadd.f32 %v6155_v8, %v1459_v20 }
 0x4d2   : > { %v1489_v22 = vsel %vm1479_vm3, %v1474_v21, -inf }
 0x4d3   : > { %1490 = vmax.xlane.f32.xlu0 %v1489_v22  ;;  %v1486_v28 = vsel %vm1479_vm3, %v1473_v23, -inf }
 0x4d4   : > { %v6576_v24 = vpop.f32.mrb[4].mxu1 }
 0x4d5   : > { %v1462_v25 = vmul.f32 0.35355338, %v6576_v24  ;;  %v1361_v26 = vpop.f32.mrb[5].mxu1 }
 0x4d6   : > { %v1461_v27 = vmul.f32 0.35355338, %v1361_v26 }
 0x4d7   : > { %1487 = vmax.xlane.f32.xlu0 %v1486_v28  ;;  %v1476_v29 = vadd.f32 %v6155_v8, %v1462_v25 }
 0x4d8   : > { %v6583_v30 = vpop.f32.mrb[2].mxu0  ;;  %v1475_v31 = vadd.f32 %v6155_v8, %v1461_v27 }
 0x4d9   : > { %v1464_v32 = vmul.f32 0.35355338, %v6583_v30  ;;  %v1448_v33 = vpop.f32.mrb[3].mxu0  ;;  %v1495_v34 = vsel %vm1479_vm3, %v1476_v29, -inf }
 0x4da   : > { %v1463_v35 = vmul.f32 0.35355338, %v1448_v33  ;;  %1496 = vmax.xlane.f32.xlu1 %v1495_v34  ;;  %v1492_v37 = vsel %vm1479_vm3, %v1475_v31, -inf }
 0x4db   : > { %1493 = vmax.xlane.f32.xlu0 %v1492_v37  ;;  %v1478_v38 = vadd.f32 %v6155_v8, %v1464_v32 }
 0x4dc   : > { %v1477_v40 = vadd.f32 %v6155_v8, %v1463_v35 }
 0x4dd   : > { %v1501_v41 = vsel %vm1479_vm3, %v1478_v38, -inf }
 0x4de   : > { %1502 = vmax.xlane.f32.xlu1 %v1501_v41  ;;  %v1498_v42 = vsel %vm1479_vm3, %v1477_v40, -inf }
 0x4df   : > { %1499 = vmax.xlane.f32.xlu0 %v1498_v42 }
 0x4f3   : > { %v1485_v43 = vpop.xlane.xlu1 %1484 }
 0x4f4   : > { %v1505_v44 = vsub.f32 %v1472_v13, %v1485_v43  ;;  %v1482_v46 = vpop.xlane.xlu0 %1481 }
 0x4f5   : > { %v1504_v47 = vsub.f32 %v1471_v14, %v1482_v46 }
 0x4f6   : > { %v1514_v49 = vmul.f32 1.442695, %v1505_v44 }
 0x4f7   : > { %v1512_v50 = vmul.f32 1.442695, %v1504_v47 }
 0x4f8   : > { %7381 = vpow2.f32 %v1514_v49 }
 0x4f9   : > { %7383 = vpow2.f32 %v1512_v50 }
 0x502   : > { %v8316_v51 = vpop.eup %7381 }
 0x503   : > { %v7384_v52 = vpop.eup %7383  ;;  %v1531_v54 = vsel %vm1479_vm3, %v8316_v51, 0.0 }
 0x504   : > { %1532 = vadd.xlane.f32.xlu1 %v1531_v54  ;;  %v1528_v55 = vsel %vm1479_vm3, %v7384_v52, 0.0 }
 0x505   : > { %1529 = vadd.xlane.f32.xlu0 %v1528_v55 }
 0x560   : > { %v1491_v57 = vpop.xlane.xlu0 %1490 }
 0x561   : > { %v1507_v58 = vsub.f32 %v1474_v21, %v1491_v57 }
 0x563   : > { %v1518_v60 = vmul.f32 1.442695, %v1507_v58 }
 0x564   : > { %v1488_v61 = vpop.xlane.xlu0 %1487 }
 0x565   : > { %7385 = vpow2.f32 %v1518_v60  ;;  %v1506_v62 = vsub.f32 %v1473_v23, %v1488_v61 }
 0x567   : > { %v1516_v63 = vmul.f32 1.442695, %v1506_v62  ;;  %v1497_v0 = vpop.xlane.xlu1 %1496 }
 0x568   : > { %v1509_v1 = vsub.f32 %v1476_v29, %v1497_v0  ;;  %v1494_v2 = vpop.xlane.xlu0 %1493 }
 0x569   : > { %7387 = vpow2.f32 %v1516_v63  ;;  %v1508_v3 = vsub.f32 %v1475_v31, %v1494_v2 }
 0x56a   : > { %v1522_v4 = vmul.f32 1.442695, %v1509_v1 }
 0x56b   : > { %v1520_v5 = vmul.f32 1.442695, %v1508_v3  ;;  %v1503_v6 = vpop.xlane.xlu1 %1502  ;;  %v1000_v3 = vld [vmem:[%s9191_s12] sm:$0xff] }
 0x56c   : > { %7389 = vpow2.f32 %v1522_v4  ;;  %v1511_v7 = vsub.f32 %v1478_v38, %v1503_v6  ;;  %v1500_v8 = vpop.xlane.xlu0 %1499  ;;  %v1001_v4 = vld [vmem:[%s9191_s12 + $0x8] sm:$0xff]  ;;  %v1002_v6 = vld [vmem:[%s9191_s12 + $0x10] sm:$0xff] }
 0x56d   : > { %7391 = vpow2.f32 %v1520_v5  ;;  %v1510_v9 = vsub.f32 %v1477_v40, %v1500_v8  ;;  %v6993_v5 = vpack.c.bf16 %v1001_v4, %v1000_v3  ;;  %v2096_v3 = vld [vmem:[%s9197_s18 + $0x8] sm:$0xff]  ;;  %v2097_v4 = vld [vmem:[%s9197_s18 + $0x10] sm:$0xff] }
 0x56e   : > { %v1526_v10 = vmul.f32 1.442695, %v1511_v7  ;;  %v1003_v7 = vld [vmem:[%s9191_s12 + $0x18] sm:$0xff] }
 0x56f   : > { %v8321_v11 = vpop.eup %7385  ;;  %v1524_v12 = vmul.f32 1.442695, %v1510_v9  ;;  %v6997_v8 = vpack.c.bf16 %v1003_v7, %v1002_v6  ;;  %v2098_v6 = vld [vmem:[%s9197_s18 + $0x18] sm:$0xff] }
 0x570   : > { %7393 = vpow2.f32 %v1526_v10  ;;  %v1537_v13 = vsel %vm1479_vm3, %v8321_v11, 0.0  ;;  %v7013_v7 = vpack.c.bf16 %v2098_v6, %v2097_v4 }
 0x571   : > { %7395 = vpow2.f32 %v1524_v12  ;;  %1538 = vadd.xlane.f32.xlu1 %v1537_v13 }
 0x573   : > { %v8325_v14 = vpop.eup %7387 }
 0x574   : > { %v1534_v15 = vsel %vm1479_vm3, %v8325_v14, 0.0 }
 0x575   : > { %1535 = vadd.xlane.f32.xlu0 %v1534_v15 }
 0x576   : > { %v8329_v16 = vpop.eup %7389 }
 0x577   : > { %v7392_v17 = vpop.eup %7391  ;;  %v1543_v18 = vsel %vm1479_vm3, %v8329_v16, 0.0 }
 0x578   : > { %1544 = vadd.xlane.f32.xlu1 %v1543_v18  ;;  %v1540_v19 = vsel %vm1479_vm3, %v7392_v17, 0.0 }
 0x579   : > { %1541 = vadd.xlane.f32.xlu0 %v1540_v19 }
 0x57a   : > { %v8334_v20 = vpop.eup %7393 }
 0x57b   : > { %v8336_v21 = vpop.eup %7395  ;;  %v1549_v22 = vsel %vm1479_vm3, %v8334_v20, 0.0 }
 0x57c   : > { %1550 = vadd.xlane.f32.xlu1 %v1549_v22  ;;  %v1546_v23 = vsel %vm1479_vm3, %v8336_v21, 0.0 }
 0x57d   : > { %1547 = vadd.xlane.f32.xlu0 %v1546_v23 }
 0x58d   : > { %7321 = vrot.lane.b32.xlu1 %v8261_v48, %s9228_s22 }
 0x591   : > { %7326 = vrot.lane.b32.xlu1 %v8265_v53, %s9228_s22  ;;  %v1533_v27 = vpop.xlane.xlu1 %1532 }
 0x592   : > { %v1530_v24 = vpop.xlane.xlu0 %1529 }
 0x593   : > { %7397 = vrcp.f32 %v1530_v24  ;;  %7316 = vrot.lane.b32.xlu0 %v8254_v45, %s9228_s22 }
 0x595   : > { %7331 = vrot.lane.b32.xlu1 %v8275_v59, %s9228_s22 }
 0x59d   : > { %v7398_v25 = vpop.eup %7397 }
 0x59e   : > { %v1560_v26 = vmul.f32 %v7398_v25, %v7384_v52 }
 0x5a0   : > { %6588 = vmatprep.mubr.msk.f32.mxu1 %vm1479_vm3, %v1560_v26 }
 0x5fe   : > { %v1539_v28 = vpop.xlane.xlu1 %1538 }
 0x602   : > { %v1536_v29 = vpop.xlane.xlu0 %1535 }
 0x605   : > { %v1545_v30 = vpop.xlane.xlu1 %1544 }
 0x606   : > { %v1542_v48 = vpop.xlane.xlu0 %1541 }
 0x607   : > { %7399 = vrcp.f32 %v1542_v48 }
 0x608   : > { %7401 = vrcp.f32 %v1533_v27 }
 0x609   : > { %7403 = vrcp.f32 %v1536_v29  ;;  %v1551_v53 = vpop.xlane.xlu1 %1550  ;;  %v6164_v29 = vld [vmem:[%s9192_s13] ss:$0 sm:$0xff] }
 0x60a   : > { %v1548_v31 = vpop.xlane.xlu0 %1547  ;;  %7405 = vrcp.f32 %v1545_v30 }
 0x60b   : > { %7407 = vrcp.f32 %v1539_v28 }
 0x60c   : > { %7409 = vrcp.f32 %v1548_v31 }
 0x60d   : > { %v7322_v45 = vpop.permute.xlu1 %7321  ;;  %7411 = vrcp.f32 %v1551_v53 }
 0x60e   : > { %v7317_v32 = vpop.permute.xlu0 %7316  ;;  %v7324_v59 = vunpack.i.h.bf16 %v7322_v45  ;;  %v7323_v33 = vunpack.i.l.bf16 %v7322_v45 }
 0x60f   : > { %v7319_v34 = vunpack.i.h.bf16 %v7317_v32  ;;  %v7318_v35 = vunpack.i.l.bf16 %v7317_v32 }
 0x610   : > { %v6981_v47 = vpack.c.bf16 %v7324_v59, %v7323_v33  ;;  %v956_v33 = vld [vmem:[%s888_s9] sm:$0xff] }
 0x611   : > { %v7400_v37 = vpop.eup %7399  ;;  %v7327_v38 = vpop.permute.xlu1 %7326  ;;  %v6977_v40 = vpack.c.bf16 %v7319_v34, %v7318_v35  ;;  %v961_v35 = vsel %vm908_vm0, %v956_v33, 0.0 }
 0x612   : > { %v7402_v41 = vpop.eup %7401  ;;  %v7329_v42 = vunpack.i.h.bf16 %v7327_v38  ;;  %v7328_v43 = vunpack.i.l.bf16 %v7327_v38  ;;  %v1564_v44 = vmul.f32 %v7400_v37, %v7392_v17  ;;  %v7830_v37 = vmov 0  }
 0x613   : > { %v7404_v46 = vpop.eup %7403  ;;  %6978 = vmatprep.subr.bf16.mxu1 %v6977_v40  ;;  %v1561_v54 = vmul.f32 %v7402_v41, %v8316_v51  ;;  %7336 = vset.pattern.permute.xlu1 %v7830_v37 }
 0x614   : > { %6980 = vmatpush3.bf16.msra.mxu1 %v6977_v40  ;;  %6602 = vmatprep.mubr.msk.f32.mxu0 %vm1479_vm3, %v1564_v44  ;;  %v6985_v49 = vpack.c.bf16 %v7329_v42, %v7328_v43  ;;  %v7406_v50 = vpop.eup %7405  ;;  %v1562_v60 = vmul.f32 %v7404_v46, %v8325_v14 }
 0x615   : > { %v7332_v52 = vpop.permute.xlu1 %7331  ;;  %6982 = vmatprep.subr.bf16.mxu1 %v6981_v47  ;;  %v7408_v55 = vpop.eup %7407  ;;  %v1565_v62 = vmul.f32 %v7406_v50, %v8329_v16  ;;  %7335 = vset.pattern.permute.xlu0 %v7830_v37 }
 0x616   : > { %v7334_v57 = vunpack.i.h.bf16 %v7332_v52  ;;  %v7333_v58 = vunpack.i.l.bf16 %v7332_v52  ;;  %6986 = vmatprep.subr.bf16.mxu0 %v6985_v49  ;;  %v7410_v61 = vpop.eup %7409  ;;  %v1563_v0 = vmul.f32 %v7408_v55, %v8321_v11 }
 0x617   : > { %6589 = vmatmul.mubr.msk.f32.vlgmr.msra.gmra.mrb[6].mxu1 %vm1479_vm3, %v1561_v54  ;;  %6988 = vmatpush3.bf16.msra.mxu0 %v6985_v49  ;;  %v7412_v1 = vpop.eup %7411  ;;  %v1566_v51 = vmul.f32 %v7410_v61, %v8336_v21  ;;  %v2091_v61 = vld [vmem:[%s9195_s16 + $0x8] sm:$0xff] }
 0x618   : > { %6984 = vmatpush3.bf16.msra.mxu1 %v6981_v47  ;;  %6595 = vmatprep.mubr.msk.f32.mxu1 %vm1479_vm3, %v1562_v60  ;;  %v6989_v63 = vpack.c.bf16 %v7334_v57, %v7333_v58  ;;  %v1567_v2 = vmul.f32 %v7412_v1, %v8334_v20  ;;  %v992_v57 = vld [vmem:[%s896_s1 + $0x8] sm:$0xff]  ;;  %v991_v58 = vld [vmem:[%s896_s1] sm:$0xff]  ;;  %s9286_s1 = smov 24  }
 0x619   : > { %6994 = vmatprep.subr.bf16.mxu0 %v6993_v5  ;;  %v2090_v60 = vld [vmem:[%s9195_s16] sm:$0xff] }
 0x61a   : > { %6603 = vmatmul.mubr.msk.f32.vlgmr.msra.gmra.mrb[4].mxu0 %vm1479_vm3, %v1565_v62  ;;  %6990 = vmatprep.subr.bf16.mxu1 %v6989_v63  ;;  %v7001_v62 = vpack.c.bf16 %v2091_v61, %v2090_v60  ;;  %v6188_v61 = vld [vmem:[%s9190_s11 + $0x2] ss:$0 sm:$0xff] }
 0x61b   : > { %6596 = vmatmul.mubr.msk.f32.vlgmr.msra.gmra.mrb[8].mxu1 %vm1479_vm3, %v1563_v0  ;;  %6996 = vmatpush3.bf16.msra.mxu0 %v6993_v5  ;;  %v2093_v0 = vld [vmem:[%s9195_s16 + $0x18] sm:$0xff] }
 0x61c   : > { %6992 = vmatpush3.bf16.msra.mxu1 %v6989_v63  ;;  %6609 = vmatprep.mubr.msk.f32.mxu1 %vm1479_vm3, %v1566_v51  ;;  %v2092_v63 = vld [vmem:[%s9195_s16 + $0x10] sm:$0xff]  ;;  %v7831_v51 = vmov 0.0|0.0  }
 0x61d   : > { %6998 = vmatprep.subr.bf16.mxu0 %v6997_v8  ;;  %7002 = vmatprep.subr.bf16.mxu1 %v7001_v62  ;;  %v7005_v1 = vpack.c.bf16 %v2093_v0, %v2092_v63 }
 0x61f   : > { %6610 = vmatmul.mubr.msk.f32.vlgmr.msra.gmra.mrb[10].mxu1 %vm1479_vm3, %v1567_v2  ;;  %7000 = vmatpush3.bf16.msra.mxu0 %v6997_v8  ;;  %v2095_v2 = vld [vmem:[%s9197_s18] sm:$0xff] }
 0x620   : > { %7004 = vmatpush3.bf16.msra.mxu1 %v7001_v62  ;;  %v7009_v5 = vpack.c.bf16 %v2096_v3, %v2095_v2  ;;  %v2099_v8 = vld [vmem:[%s9197_s18 + $0x20] sm:$0xff] }
 0x621   : > { %7006 = vmatprep.subr.bf16.mxu1 %v7005_v1 }
 0x622   : > { %7010 = vmatprep.subr.bf16.mxu0 %v7009_v5 }
 0x624   : > { %7008 = vmatpush3.bf16.msra.mxu1 %v7005_v1 }
 0x625   : > { %7025 = vmatprep.subr.bf16.mxu1 %v7831_v51 }
 0x6ea   : > { %v6590_v9 = vpop.f32.mrb[6].mxu1 }
 0x6eb   : > { %v1646_v10 = vpop.f32.mrb[7].mxu1 }
 0x6ed   : > { %v6604_v11 = vpop.f32.mrb[4].mxu0 }
 0x6ee   : > { %v6597_v12 = vpop.f32.mrb[8].mxu1  ;;  %v1820_v13 = vpop.f32.mrb[5].mxu0 }
 0x6ef   : > { %1920 = vrot.lane.b32.xlu1 %v6597_v12, %s9226_s26  ;;  %v1733_v14 = vpop.f32.mrb[9].mxu1 }
 0x6f0   : > { %1918 = vrot.lane.b32.xlu0 %v1733_v14, %s9226_s26  ;;  %s9282_s26 = sld [smem:[#allocation39_spill]] }
 0x6f2   : > { %v6611_v15 = vpop.f32.mrb[10].mxu1 }
 0x6f3   : > { %1928 = vrot.lane.b32.xlu1 %v6604_v11, %s9224_s3  ;;  %v1907_v16 = vpop.f32.mrb[11].mxu1 }
 0x6f4   : > { %1926 = vrot.lane.b32.xlu0 %v1820_v13, %s9224_s3  ;;  %s9285_s3 = smov 16  }
 0x6f7   : > { %1936 = vrot.lane.b32.xlu1 %v6611_v15, %s9222_s0 }
 0x6f8   : > { %1934 = vrot.lane.b32.xlu0 %v1907_v16, %s9222_s0  ;;  %s9290_s0 = smov 96  }
 0x761   : > { %v1921_v17 = vpop.permute.xlu1 %1920 }
 0x762   : > { %v1919_v18 = vpop.permute.xlu0 %1918  ;;  %v1941_v23 = vsel %vm1112_vm1, %v6590_v9, %v1921_v17  ;;  %v2100_v9 = vld [vmem:[%s9197_s18 + $0x28] sm:$0xff] }
 0x763   : > { %v1940_v21 = vsel %vm1112_vm1, %v1646_v10, %v1919_v18  ;;  %v7017_v10 = vpack.c.bf16 %v2100_v9, %v2099_v8 }
 0x765   : > { %v1929_v19 = vpop.permute.xlu1 %1928 }
 0x766   : > { %v1927_v20 = vpop.permute.xlu0 %1926  ;;  %v1943_v26 = vsel %vm1479_vm3, %v1941_v23, %v1929_v19 }
 0x767   : > { %v1942_v24 = vsel %vm1479_vm3, %v1940_v21, %v1927_v20  ;;  %v6167_v21 = vld [vmem:[%s9281_s28] ss:$0 sm:$0xff] }
 0x769   : > { %v1937_v22 = vpop.permute.xlu1 %1936 }
 0x76a   : > { %v1935_v25 = vpop.permute.xlu0 %1934  ;;  %v1946_v28 = vsel %vm1944_vm4, %v1943_v26, %v1937_v22  ;;  %v6168_v26 = vld [vmem:[#allocation7] ss:$0 sm:$0xff] }
 0x76b   : > { %v1945_v27 = vsel %vm1944_vm4, %v1942_v24, %v1935_v25 }
 0x76c   : > { %6620 = vmatprep.mubr.msk.f32.mxu0 %vm908_vm0, %v1945_v27 }
 0x76d   : > { %6621 = vmatmul.mubr.msk.f32.vlgmr.msra.gmra.mrb[6].mxu0 %vm908_vm0, %v1946_v28 }
 0x76e   : > { %7012 = vmatpush3.bf16.msra.mxu0 %v7009_v5 }
 0x76f   : > { %7014 = vmatprep.subr.bf16.mxu0 %v7013_v7 }
 0x772   : > { %7016 = vmatpush3.bf16.msra.mxu0 %v7013_v7 }
 0x773   : > { %7018 = vmatprep.subr.bf16.mxu0 %v7017_v10 }
 0x776   : > { %7020 = vmatpush3.bf16.msra.mxu0 %v7017_v10 }
 0x840   : > { %v6622_v30 = vpop.f32.mrb[6].mxu0 }
 0x841   : > { %v2031_v48 = vadd.f32 %v6622_v30, %v6164_v29  ;;  %v2025_v53 = vpop.f32.mrb[7].mxu0 }
 0x842   : > { %v2026_v31 = vadd.f32 %v6164_v29, %v2025_v53  ;;  %v6177_v53 = vld [vmem:[%s9189_s10 + $0x40] sm:$0xff] }
 0x843   : > { %v2035_v45 = vadd.f32 %v2031_v48, %v8242_v39 }
 0x844   : > { %v2034_v32 = vadd.f32 %v2026_v31, %v8235_v36  ;;  %v6178_v31 = vld [vmem:[%s9189_s10 + $0x48] sm:$0xff] }
 0x845   : > { %v2039_v59 = vsel %vm908_vm0, %v2035_v45, 0.0 }
 0x846   : > { %2040 = vadd.xlane.f32.xlu1 %v2039_v59  ;;  %v2036_v34 = vsel %vm908_vm0, %v2034_v32, 0.0 }
 0x847   : > { %2037 = vadd.xlane.f32.xlu0 %v2036_v34  ;;  %v7026_v34 = vpack.c.bf16 %v6178_v31, %v6177_v53 }
 0x84b   : > { %962 = vadd.xlane.f32.xlu0 %v961_v35 }
 0x8d3   : > { %v2041_v38 = vpop.xlane.xlu1 %2040 }
 0x8d4   : > { %v2043_v40 = vmul.f32 0.03125, %v2041_v38  ;;  %v2038_v41 = vpop.xlane.xlu0 %2037  ;;  %v6179_v38 = vld [vmem:[%s9189_s10 + $0x50] sm:$0xff] }
 0x8d5   : > { %v2042_v39 = vmul.f32 0.03125, %v2038_v41  ;;  %v6135_v41 = vld [vmem:[#allocation5 + $0x1] ss:$0 sm:$0xff] }
 0x8d6   : > { %v2045_v42 = vsub.f32 %v2035_v45, %v2043_v40  ;;  %v6134_v45 = vld [vmem:[#allocation2 + $0x1] ss:$0 sm:$0xff]  ;;  %v6180_v40 = vld [vmem:[%s9189_s10 + $0x58] sm:$0xff] }
 0x8d7   : > { %v8404_v36 = vsub.f32 %v2034_v32, %v2042_v39  ;;  %v7029_v39 = vpack.c.bf16 %v6180_v40, %v6179_v38 }
 0x8d8   : > { %v963_v43 = vpop.xlane.xlu0 %962  ;;  %v2047_v44 = vmul.f32 %v2045_v42, %v2045_v42 }
 0x8d9   : > { %v964_v46 = vmul.f32 0.03125, %v963_v43  ;;  %v2046_v49 = vmul.f32 %v8404_v36, %v8404_v36  ;;  %v988_v43 = vld [vmem:[%s9282_s26] sm:$0xff]  ;;  %s8551_s26 = scalar_lea.vmem %s9283_s23, %s8208_s7  ;;  %s9284_s23 = smov 8  }
 0x8da   : > { %v2051_v47 = vsel %vm908_vm0, %v2047_v44, 0.0  ;;  %s9292_s7 = smov 112  }
 0x8db   : > { %v965_v50 = vsub.f32 %v956_v33, %v964_v46  ;;  %2052 = vadd.xlane.f32.xlu0 %v2051_v47  ;;  %v2048_v54 = vsel %vm908_vm0, %v2046_v49, 0.0  ;;  %v2101_v46 = vld [vmem:[%s9197_s18 + $0x30] sm:$0xff]  ;;  %v2102_v47 = vld [vmem:[%s9197_s18 + $0x38] sm:$0xff] }
 0x8dc   : > { %v7021_v49 = vpack.c.bf16 %v2102_v47, %v2101_v46 }
 0x8dd   : > { %v966_v52 = vmul.f32 %v965_v50, %v965_v50 }
 0x8de   : > { %7022 = vmatprep.subr.bf16.mxu0 %v7021_v49 }
 0x8df   : > { %2049 = vadd.xlane.f32.xlu0 %v2048_v54  ;;  %v967_v55 = vsel %vm908_vm0, %v966_v52, 0.0  ;;  %7024 = vmatpush3.bf16.msra.mxu0 %v7021_v49 }
 0x8e0   : > { %968 = vadd.xlane.f32.xlu1 %v967_v55 }
 0x8f1   : > { %2085 = vperm.xlu1 %7336, %v992_v57  }
 0x8f5   : > { %2080 = vperm.xlu0 %7335, %v991_v58  }
 0x968   : > { %v2053_v11 = vpop.xlane.xlu0 %2052 }
 0x969   : > { %v2055_v12 = vmul.f32 0.03125, %v2053_v11  ;;  %v6198_v11 = vld [vmem:[%s8551_s26] ss:$0 sm:$0xff] }
 0x96b   : > { %v2057_v13 = vadd.f32 1e-05, %v2055_v12 }
 0x96c   : > { %v2050_v14 = vpop.xlane.xlu0 %2049 }
 0x96d   : > { %7413 = vrsqrt.f32 %v2057_v13  ;;  %v2054_v15 = vmul.f32 0.03125, %v2050_v14  ;;  %v969_v16 = vpop.xlane.xlu1 %968 }
 0x96e   : > { %v970_v17 = vmul.f32 0.03125, %v969_v16 }
 0x96f   : > { %v2056_v18 = vadd.f32 1e-05, %v2054_v15 }
 0x970   : > { %v971_v19 = vadd.f32 1e-05, %v970_v17 }
 0x971   : > { %7415 = vrsqrt.f32 %v2056_v18  ;;  %v8459_v32 = vpop.permute.xlu1 %2085 }
 0x972   : > { %7417 = vrsqrt.f32 %v971_v19 }
 0x974   : > { %v8451_v48 = vpop.permute.xlu0 %2080 }
 0x977   : > { %v7414_v20 = vpop.eup %7413 }
 0x978   : > { %v2061_v22 = vmul.f32 %v7414_v20, %v2045_v42  ;;  %v7833_v42 = vmov 0.0  }
 0x979   : > { %6674 = vmatprep.subr.mxu0 %v7833_v42 }
 0x97a   : > { %v2069_v24 = vmul.f32 %v6167_v21, %v2061_v22 }
 0x97b   : > { %v7416_v23 = vpop.eup %7415 }
 0x97c   : > { %v7418_v25 = vpop.eup %7417  ;;  %v2060_v27 = vmul.f32 %v7416_v23, %v8404_v36  ;;  %v2077_v30 = vadd.f32 %v6168_v26, %v2069_v24 }
 0x97d   : > { %v973_v29 = vmul.f32 %v7418_v25, %v965_v50  ;;  %v6169_v50 = vld [vmem:[#allocation8] ss:$0 sm:$0xff] }
 0x97e   : > { %v2068_v28 = vmul.f32 %v6167_v21, %v2060_v27  ;;  %v8465_v37 = vmul.f32 %v8459_v32, %v2077_v30 }
 0x97f   : > { %v980_v35 = vmul.f32 %v6134_v45, %v973_v29 }
 0x980   : > { %v2076_v59 = vadd.f32 %v6168_v26, %v2068_v28 }
 0x981   : > { %v987_v36 = vadd.f32 %v6135_v41, %v980_v35 }
 0x982   : > { %v8462_v33 = vmul.f32 %v8451_v48, %v2076_v59 }
 0x983   : > { %v8483_v44 = vadd.f32 %v988_v43, %v987_v36 }
 0x984   : > { %6631 = vmatprep.mubr.msk.f32.mxu1 %vm908_vm0, %v8462_v33 }
 0x985   : > { %6632 = vmatmul.mubr.msk.f32.vlgmr.msra.gmra.mrb[12].mxu1 %vm908_vm0, %v8465_v37 }
 0x986   : > { %7027 = vmatpush3.bf16.msra.mxu1 %v7026_v34  ;;  %6661 = vmatprep.mubr.msk.f32.mxu1 %vm7832_vm5, %v7833_v42 }
 0x987   : > { %7028 = vmatprep.subr.bf16.mxu1 %v7831_v51 }
 0x98a   : > { %7030 = vmatpush3.bf16.msra.mxu1 %v7029_v39 }
 0x98b   : > { %6664 = vmatprep.subr.mxu1 %v7833_v42 }
 0x98d   : > { %6662 = vmatmul.mubr.msk.f32.vlgmr.msra.gmra.mrb[14].mxu1 %vm908_vm0, %v8483_v44 }
 0x98e   : > { %6666 = vmatprep.mubr.msk.f32.mxu1 %vm7832_vm5, %v7833_v42 }
 0xa58   : > { %v6633_v52 = vpop.f32.mrb[12].mxu1 }
 0xa59   : > { %v2190_v54 = vadd.f32 %v6633_v52, %v6169_v50  ;;  %v2184_v55 = vpop.f32.mrb[13].mxu1 }
 0xa5a   : > { %v2185_v57 = vadd.f32 %v6169_v50, %v2184_v55 }
 0xa5b   : > { %v2194_v60 = vmax.f32 %v2190_v54, 0.0 }
 0xa5c   : > { %v2193_v58 = vmax.f32 %v2185_v57, 0.0 }
 0xa5e   : > { %6650 = vmatprep.mubr.msk.f32.mxu0 %vm2201_vm6, %v2193_v58 }
 0xa5f   : > { %6651 = vmatmul.mubr.msk.f32.vlgmr.msra.gmra.mrb[8].mxu0 %vm2201_vm6, %v2194_v60 }
 0xa60   : > { %v2420_v62 = vpop.f32.mrb[14].mxu1  ;;  %6676 = vmatprep.mubr.msk.f32.mxu0 %vm7832_vm5, %v7833_v42 }
 0xa61   : > { %v2421_v63 = vadd.f32 %v6188_v61, %v2420_v62  ;;  %v6663_v0 = vpop.f32.mrb[15].mxu1 }
 0xa63   : > { %2425 = vrot.lane.b32.xlu1 %v2421_v63, %s9234_s25 }
 0xa67   : > { %2427 = vrot.lane.b32.xlu1 %v2421_v63, %s9235_s14 }
 0xa6b   : > { %2429 = vrot.lane.b32.xlu1 %v2421_v63, %s9232_s24 }
 0xa6f   : > { %2431 = vrot.lane.b32.xlu1 %v2421_v63, %s9230_s17 }
 0xad5   : > { %v8508_v1 = vpop.permute.xlu1 %2425 }
 0xad6   : > { %2507 = vrot.lane.b32.xlu1 %v8508_v1, %s9230_s17 }
 0xad9   : > { %v8512_v2 = vpop.permute.xlu1 %2427 }
 0xada   : > { %2583 = vrot.lane.b32.xlu1 %v8512_v2, %s9230_s17 }
 0xadd   : > { %v8516_v3 = vpop.permute.xlu1 %2429 }
 0xade   : > { %2659 = vrot.lane.b32.xlu1 %v8516_v3, %s9230_s17  ;;  %s6344_s17 = sshll.u32 %s7978_s5, 8 }
 0xadf   : > { %s9100_s6 = scalar_lea.hbm %s9296_s29, %s6344_s17 }
 0xae1   : > { %v2432_v4 = vpop.permute.xlu1 %2431 }
 0xae2   : > { %6665 = vmatpush3.xpose.msk.msra.mxu1 %vm1112_vm1, %v2432_v4 }
 0xae3   : > { %6669 = vmatprep.subr.mxu1 %v7833_v42 }
 0xae5   : > { %6667 = vmatmul.mubr.msk.f32.vlgmr.msra.gmra.mrb[16].mxu1 %vm1112_vm1, %v2421_v63 }
 0xae6   : > { %6671 = vmatprep.mubr.msk.f32.mxu1 %vm7832_vm5, %v7833_v42 }
 0xb32   : > { %v8525_v5 = vpop.f32.mrb[8].mxu0 }
 0xb33   : > { %v8527_v6 = vpop.f32.mrb[9].mxu0 }
 0xb48   : > { %v2508_v7 = vpop.permute.xlu1 %2507 }
 0xb49   : > { %6670 = vmatpush3.xpose.msk.msra.mxu1 %vm1112_vm1, %v2508_v7 }
 0xb4a   : > { %6679 = vmatprep.subr.mxu1 %v7833_v42 }
 0xb4c   : > { %6672 = vmatmul.mubr.msk.f32.vlgmr.msra.gmra.mrb[18].mxu1 %vm1112_vm1, %v8508_v1  ;;  %v2584_v8 = vpop.permute.xlu1 %2583 }
 0xb4d   : > { %6675 = vmatpush3.xpose.msk.msra.mxu0 %vm1112_vm1, %v2584_v8  ;;  %6681 = vmatprep.mubr.msk.f32.mxu1 %vm7832_vm5, %v7833_v42 }
 0xb4e   : > { %6684 = vmatprep.subr.mxu0 %v7833_v42 }
 0xb50   : > { %v2660_v9 = vpop.permute.xlu1 %2659  ;;  %6677 = vmatmul.mubr.msk.f32.vlgmr.msra.gmra.mrb[10].mxu0 %vm1112_vm1, %v8512_v2 }
 0xb51   : > { %6680 = vmatpush3.xpose.msk.msra.mxu1 %vm1112_vm1, %v2660_v9  ;;  %6686 = vmatprep.mubr.msk.f32.mxu0 %vm7832_vm5, %v7833_v42 }
 0xb52   : > { %6689 = vmatprep.subr.mxu1 %v7833_v42 }
 0xb54   : > { %6682 = vmatmul.mubr.msk.f32.vlgmr.msra.gmra.mrb[20].mxu1 %vm1112_vm1, %v8516_v3 }
 0xb55   : > { %6691 = vmatprep.mubr.msk.f32.mxu1 %vm7832_vm5, %v7833_v42 }
 0xbb8   : > { %v2503_v10 = vpop.f32.mrb[16].mxu1 }
 0xbb9   : > { %v2735_v12 = vmul.f32 0.35355338, %v2503_v10  ;;  %v6668_v13 = vpop.f32.mrb[17].mxu1 }
 0xbbb   : > { %v2745_v14 = vadd.f32 %v6198_v11, %v2735_v12 }
 0xbbd   : > { %v2749_v15 = vsel %vm1112_vm1, %v2745_v14, -inf }
 0xbbe   : > { %2750 = vmax.xlane.f32.xlu0 %v2749_v15  ;;  %v6182_v15 = vld [vmem:[%s9191_s12 + $0x40] sm:$0xff] }
 0xc1f   : > { %v2579_v16 = vpop.f32.mrb[18].mxu1 }
 0xc20   : > { %v2736_v17 = vmul.f32 0.35355338, %v2579_v16  ;;  %v6673_v18 = vpop.f32.mrb[19].mxu1  ;;  %v6183_v16 = vld [vmem:[%s9191_s12 + $0x48] sm:$0xff] }
 0xc21   : > { %v6184_v18 = vld [vmem:[%s9191_s12 + $0x50] sm:$0xff] }
 0xc22   : > { %v2746_v19 = vadd.f32 %v6198_v11, %v2736_v17  ;;  %v7032_v17 = vpack.c.bf16 %v6183_v16, %v6182_v15  ;;  %v6214_v16 = vld [vmem:[%s9197_s18 + $0x98] sm:$0xff] }
 0xc23   : > { %v2655_v20 = vpop.f32.mrb[10].mxu0 }
 0xc24   : > { %v2737_v21 = vmul.f32 0.35355338, %v2655_v20  ;;  %v6678_v22 = vpop.f32.mrb[11].mxu0  ;;  %v2752_v23 = vsel %vm1112_vm1, %v2746_v19, -inf }
 0xc25   : > { %2753 = vmax.xlane.f32.xlu1 %v2752_v23 }
 0xc26   : > { %v2747_v24 = vadd.f32 %v6198_v11, %v2737_v21 }
 0xc27   : > { %v2731_v25 = vpop.f32.mrb[20].mxu1 }
 0xc28   : > { %v2738_v26 = vmul.f32 0.35355338, %v2731_v25  ;;  %v6683_v27 = vpop.f32.mrb[21].mxu1  ;;  %v2755_v28 = vsel %vm1112_vm1, %v2747_v24, -inf }
 0xc29   : > { %2756 = vmax.xlane.f32.xlu0 %v2755_v28  ;;  %v6172_v27 = vld [vmem:[#allocation10] ss:$0 sm:$0xff] }
 0xc2a   : > { %v2748_v29 = vadd.f32 %v6198_v11, %v2738_v26  ;;  %v2275_v28 = vadd.f32 %v6172_v27, %v8527_v6 }
 0xc2c   : > { %v2758_v30 = vsel %vm1112_vm1, %v2748_v29, -inf }
 0xc2d   : > { %2759 = vmax.xlane.f32.xlu0 %v2758_v30  ;;  %v2283_v30 = vadd.f32 %v2275_v28, %v8462_v33 }
 0xc36   : > { %2793 = vrot.lane.b32.xlu1 %v2421_v63, %s9228_s22 }
 0xc4b   : > { %v2751_v53 = vpop.xlane.xlu0 %2750 }
 0xc4c   : > { %v2761_v31 = vsub.f32 %v2745_v14, %v2751_v53  ;;  %v2285_v53 = vsel %vm908_vm0, %v2283_v30, 0.0 }
 0xc4e   : > { %v2765_v45 = vmul.f32 1.442695, %v2761_v31 }
 0xc50   : > { %7419 = vpow2.f32 %v2765_v45 }
 0xc5a   : > { %v7420_v59 = vpop.eup %7419 }
 0xc5b   : > { %v2773_v34 = vsel %vm1112_vm1, %v7420_v59, 0.0 }
 0xc5c   : > { %2774 = vadd.xlane.f32.xlu1 %v2773_v34 }
 0xcb2   : > { %v2754_v35 = vpop.xlane.xlu1 %2753 }
 0xcb3   : > { %v2762_v38 = vsub.f32 %v2746_v19, %v2754_v35  ;;  %v6185_v19 = vld [vmem:[%s9191_s12 + $0x58] sm:$0xff] }
 0xcb4   : > { %v7035_v20 = vpack.c.bf16 %v6185_v19, %v6184_v18  ;;  %v6215_v18 = vld [vmem:[%s9197_s18 + $0xa0] sm:$0xff]  ;;  %v6216_v19 = vld [vmem:[%s9197_s18 + $0xa8] sm:$0xff] }
 0xcb5   : > { %v2767_v40 = vmul.f32 1.442695, %v2762_v38 }
 0xcb6   : > { %v2794_v41 = vpop.permute.xlu1 %2793  ;;  %v2757_v39 = vpop.xlane.xlu0 %2756 }
 0xcb7   : > { %7421 = vpow2.f32 %v2767_v40  ;;  %v2763_v36 = vsub.f32 %v2747_v24, %v2757_v39  ;;  %6685 = vmatpush3.msra.mxu0 %v2794_v41 }
 0xcb8   : > { %6694 = vmatprep.subr.mxu0 %v7833_v42 }
 0xcb9   : > { %v2769_v43 = vmul.f32 1.442695, %v2763_v36  ;;  %v994_v36 = vld [vmem:[%s903_s30] sm:$0xff]  ;;  %s9289_s30 = smov 104  }
 0xcba   : > { %v2760_v46 = vpop.xlane.xlu0 %2759 }
 0xcbb   : > { %7423 = vpow2.f32 %v2769_v43  ;;  %v2764_v47 = vsub.f32 %v2748_v29, %v2760_v46  ;;  %v2280_v29 = vadd.f32 %v8525_v5, %v6172_v27  ;;  %v6203_v43 = vld [vmem:[%s9192_s13 + $0x2] ss:$0 sm:$0xff] }
 0xcbd   : > { %v2771_v49 = vmul.f32 1.442695, %v2764_v47  ;;  %v2284_v31 = vadd.f32 %v2280_v29, %v8465_v37 }
 0xcbf   : > { %7425 = vpow2.f32 %v2771_v49  ;;  %v2288_v45 = vsel %vm908_vm0, %v2284_v31, 0.0 }
 0xcc1   : > { %v7422_v50 = vpop.eup %7421 }
 0xcc2   : > { %v2776_v52 = vsel %vm1112_vm1, %v7422_v50, 0.0 }
 0xcc3   : > { %2777 = vadd.xlane.f32.xlu0 %v2776_v52 }
 0xcc5   : > { %v7424_v54 = vpop.eup %7423 }
 0xcc6   : > { %v2779_v55 = vsel %vm1112_vm1, %v7424_v54, 0.0 }
 0xcc7   : > { %2780 = vadd.xlane.f32.xlu1 %v2779_v55 }
 0xcc9   : > { %v7426_v57 = vpop.eup %7425 }
 0xcca   : > { %v2782_v58 = vsel %vm1112_vm1, %v7426_v57, 0.0 }
 0xccb   : > { %2783 = vadd.xlane.f32.xlu0 %v2782_v58 }
 0xcd8   : > { %2945 = vrot.lane.b32.xlu1 %v8512_v2, %s9228_s22 }
 0xcdc   : > { %3021 = vrot.lane.b32.xlu1 %v8516_v3, %s9228_s22 }
 0xce1   : > { %2869 = vrot.lane.b32.xlu0 %v8508_v1, %s9228_s22  ;;  %s9293_s22 = smov 120  }
 0xce9   : > { %v2775_v60 = vpop.xlane.xlu1 %2774 }
 0xcea   : > { %7427 = vrcp.f32 %v2775_v60 }
 0xcf4   : > { %v7428_v61 = vpop.eup %7427 }
 0xcf5   : > { %v2789_v62 = vmul.f32 %v7428_v61, %v7420_v59 }
 0xcf7   : > { %6687 = vmatmul.mubr.msk.f32.vlgmr.msra.gmra.mrb[12].mxu0 %vm1112_vm1, %v2789_v62 }
 0xcf8   : > { %6696 = vmatprep.mubr.msk.f32.mxu0 %vm7832_vm5, %v7833_v42 }
 0xd50   : > { %v2778_v63 = vpop.xlane.xlu0 %2777 }
 0xd51   : > { %7429 = vrcp.f32 %v2778_v63 }
 0xd54   : > { %v2781_v0 = vpop.xlane.xlu1 %2780 }
 0xd55   : > { %7431 = vrcp.f32 %v2781_v0 }
 0xd58   : > { %v2946_v2 = vpop.permute.xlu1 %2945  ;;  %v2784_v4 = vpop.xlane.xlu0 %2783 }
 0xd59   : > { %7433 = vrcp.f32 %v2784_v4  ;;  %6695 = vmatpush3.msra.mxu0 %v2946_v2  ;;  %v6208_v4 = vld [vmem:[%s9195_s16 + $0x48] sm:$0xff] }
 0xd5a   : > { %7031 = vmatprep.subr.bf16.mxu0 %v7831_v51 }
 0xd5b   : > { %v7430_v1 = vpop.eup %7429 }
 0xd5c   : > { %v2790_v3 = vmul.f32 %v7430_v1, %v7422_v50  ;;  %v2870_v7 = vpop.permute.xlu0 %2869  ;;  %v3022_v8 = vpop.permute.xlu1 %3021 }
 0xd5d   : > { %6690 = vmatpush3.msra.mxu1 %v2870_v7  ;;  %v6210_v7 = vld [vmem:[%s9195_s16 + $0x58] sm:$0xff] }
 0xd5e   : > { %6692 = vmatmul.mubr.msk.f32.vlgmr.msra.gmra.mrb[22].mxu1 %vm1112_vm1, %v2790_v3  ;;  %6699 = vmatprep.subr.mxu1 %v7833_v42  ;;  %v6209_v3 = vld [vmem:[%s9195_s16 + $0x50] sm:$0xff] }
 0xd5f   : > { %v7432_v9 = vpop.eup %7431  ;;  %6700 = vmatpush3.msra.mxu1 %v3022_v8  ;;  %6701 = vmatprep.mubr.msk.f32.mxu1 %vm7832_vm5, %v7833_v42  ;;  %v7041_v8 = vpack.c.bf16 %v6210_v7, %v6209_v3 }
 0xd60   : > { %v2791_v10 = vmul.f32 %v7432_v9, %v7424_v54  ;;  %7037 = vmatprep.subr.bf16.mxu1 %v7831_v51  ;;  %v6225_v9 = vld [vmem:[%s9189_s10 + $0x20] sm:$0xff] }
 0xd62   : > { %6697 = vmatmul.mubr.msk.f32.vlgmr.msra.gmra.mrb[14].mxu0 %vm1112_vm1, %v2791_v10  ;;  %v6226_v10 = vld [vmem:[%s9189_s10 + $0x28] sm:$0xff] }
 0xd63   : > { %v7434_v11 = vpop.eup %7433  ;;  %6712 = vmatprep.mubr.msk.f32.mxu0 %vm7832_vm5, %v7833_v42  ;;  %7033 = vmatpush3.bf16.msra.mxu0 %v7032_v17 }
 0xd64   : > { %v2792_v12 = vmul.f32 %v7434_v11, %v7426_v57  ;;  %7034 = vmatprep.subr.bf16.mxu0 %v7831_v51  ;;  %v7055_v11 = vpack.c.bf16 %v6226_v10, %v6225_v9 }
 0xd66   : > { %6702 = vmatmul.mubr.msk.f32.vlgmr.msra.gmra.mrb[24].mxu1 %vm1112_vm1, %v2792_v12  ;;  %v6211_v12 = vld [vmem:[%s9197_s18 + $0x80] sm:$0xff] }
 0xd67   : > { %6723 = vmatprep.mubr.msk.f32.mxu1 %vm7832_vm5, %v7833_v42  ;;  %7036 = vmatpush3.bf16.msra.mxu0 %v7035_v20  ;;  %v7050_v20 = vpack.c.bf16 %v6216_v19, %v6215_v18 }
 0xd68   : > { %7043 = vmatprep.subr.bf16.mxu0 %v7831_v51 }
 0xdca   : > { %v2865_v13 = vpop.f32.mrb[12].mxu0 }
 0xdcb   : > { %v6688_v14 = vpop.f32.mrb[13].mxu0 }
 0xdcc   : > { %v6213_v14 = vld [vmem:[%s9197_s18 + $0x90] sm:$0xff] }
 0xdcd   : > { %v7047_v17 = vpack.c.bf16 %v6214_v16, %v6213_v14 }
 0xe31   : > { %v2941_v21 = vpop.f32.mrb[22].mxu1 }
 0xe32   : > { %3098 = vrot.lane.b32.xlu0 %v2941_v21, %s9284_s23  ;;  %v6693_v22 = vpop.f32.mrb[23].mxu1 }
 0xe35   : > { %v3017_v23 = vpop.f32.mrb[14].mxu0 }
 0xe36   : > { %3102 = vrot.lane.b32.xlu1 %v3017_v23, %s9285_s3  ;;  %v6698_v24 = vpop.f32.mrb[15].mxu0 }
 0xe39   : > { %v3093_v25 = vpop.f32.mrb[24].mxu1 }
 0xe3a   : > { %3106 = vrot.lane.b32.xlu0 %v3093_v25, %s9286_s1  ;;  %v6703_v26 = vpop.f32.mrb[25].mxu1 }
 0xe59   : > { %2286 = vadd.xlane.f32.xlu0 %v2285_v53 }
 0xe5d   : > { %2289 = vadd.xlane.f32.xlu0 %v2288_v45 }
 0xea4   : > { %v3099_v59 = vpop.permute.xlu0 %3098 }
 0xea5   : > { %v3109_v35 = vsel %vm1112_vm1, %v2865_v13, %v3099_v59  ;;  %v6212_v13 = vld [vmem:[%s9197_s18 + $0x88] sm:$0xff] }
 0xea6   : > { %v7044_v15 = vpack.c.bf16 %v6212_v13, %v6211_v12 }
 0xea8   : > { %v3103_v34 = vpop.permute.xlu1 %3102 }
 0xea9   : > { %v3110_v38 = vsel %vm1479_vm3, %v3109_v35, %v3103_v34  ;;  %v6175_v34 = vld [vmem:[#allocation11] ss:$0 sm:$0xff]  ;;  %v6206_v35 = vld [vmem:[#allocation7 + $0x2] ss:$0 sm:$0xff] }
 0xeac   : > { %v3107_v6 = vpop.permute.xlu0 %3106 }
 0xead   : > { %v3111_v5 = vsel %vm1944_vm4, %v3110_v38, %v3107_v6 }
 0xeae   : > { %6713 = vmatmul.mubr.msk.f32.vlgmr.msra.gmra.mrb[16].mxu0 %vm908_vm0, %v3111_v5 }
 0xeaf   : > { %6742 = vmatprep.mubr.msk.f32.mxu0 %vm7832_vm5, %v7833_v42  ;;  %7045 = vmatpush3.bf16.msra.mxu0 %v7044_v15 }
 0xeb0   : > { %7046 = vmatprep.subr.bf16.mxu0 %v7831_v51 }
 0xeb3   : > { %7048 = vmatpush3.bf16.msra.mxu0 %v7047_v17 }
 0xeb4   : > { %7049 = vmatprep.subr.bf16.mxu0 %v7831_v51 }
 0xeb7   : > { %7051 = vmatpush3.bf16.msra.mxu0 %v7050_v20 }
 0xeb8   : > { %7052 = vmatprep.subr.bf16.mxu0 %v7831_v51 }
 0xee6   : > { %v2287_v33 = vpop.xlane.xlu0 %2286 }
 0xee7   : > { %v2291_v37 = vmul.f32 0.03125, %v2287_v33  ;;  %v6227_v33 = vld [vmem:[%s9189_s10 + $0x30] sm:$0xff] }
 0xee9   : > { %v8614_v40 = vsub.f32 %v2283_v30, %v2291_v37  ;;  %v6228_v37 = vld [vmem:[%s9189_s10 + $0x38] sm:$0xff] }
 0xeea   : > { %v2290_v54 = vpop.xlane.xlu0 %2289 }
 0xeeb   : > { %v2295_v41 = vmul.f32 %v8614_v40, %v8614_v40  ;;  %v2292_v55 = vmul.f32 0.03125, %v2290_v54  ;;  %v6218_v54 = vld [vmem:[%s9197_s18 + $0xb8] sm:$0xff] }
 0xeed   : > { %v2297_v39 = vsel %vm908_vm0, %v2295_v41, 0.0  ;;  %v8629_v60 = vsub.f32 %v2284_v31, %v2292_v55  ;;  %v6205_v31 = vld [vmem:[%s9281_s28 + $0x2] ss:$0 sm:$0xff] }
 0xeee   : > { %2298 = vadd.xlane.f32.xlu0 %v2297_v39  ;;  %v6176_v39 = vld [vmem:[#allocation13] ss:$0 sm:$0xff] }
 0xeef   : > { %v2296_v0 = vmul.f32 %v8629_v60, %v8629_v60 }
 0xef1   : > { %v2300_v2 = vsel %vm908_vm0, %v2296_v0, 0.0 }
 0xf04   : > { %3221 = vperm.xlu0 %7335, %v994_v36  }
 0xf7b   : > { %v2299_v21 = vpop.xlane.xlu0 %2298 }
 0xf7c   : > { %v2303_v22 = vmul.f32 0.03125, %v2299_v21 }
 0xf7e   : > { %v2305_v23 = vadd.f32 1e-05, %v2303_v22 }
 0xf80   : > { %7435 = vrsqrt.f32 %v2305_v23 }
 0xf81   : > { %v3187_v46 = vpop.f32.mrb[16].mxu0 }
 0xf82   : > { %v3188_v47 = vadd.f32 %v6203_v43, %v3187_v46  ;;  %v6714_v49 = vpop.f32.mrb[17].mxu0  ;;  %v7059_v46 = vpack.c.bf16 %v6228_v37, %v6227_v33 }
 0xf83   : > { %v8685_v36 = vpop.permute.xlu0 %3221 }
 0xf84   : > { %v3191_v50 = vadd.f32 %v3188_v47, %v8483_v44  ;;  %v6207_v44 = vld [vmem:[%s9195_s16 + $0x40] sm:$0xff] }
 0xf85   : > { %v7038_v1 = vpack.c.bf16 %v6208_v4, %v6207_v44 }
 0xf86   : > { %v3192_v52 = vsel %vm908_vm0, %v3191_v50, 0.0 }
 0xf87   : > { %3193 = vadd.xlane.f32.xlu1 %v3192_v52  ;;  %7039 = vmatpush3.bf16.msra.mxu1 %v7038_v1  ;;  %v6217_v52 = vld [vmem:[%s9197_s18 + $0xb0] sm:$0xff] }
 0xf88   : > { %7040 = vmatprep.subr.bf16.mxu1 %v7831_v51  ;;  %v7053_v55 = vpack.c.bf16 %v6218_v54, %v6217_v52 }
 0xf8a   : > { %v7436_v30 = vpop.eup %7435  ;;  %7054 = vmatpush3.bf16.msra.mxu0 %v7053_v55 }
 0xf8b   : > { %7042 = vmatpush3.bf16.msra.mxu1 %v7041_v8  ;;  %v2309_v45 = vmul.f32 %v7436_v30, %v8614_v40 }
 0xf8c   : > { %7056 = vmatprep.subr.bf16.mxu1 %v7055_v11 }
 0xf8d   : > { %v2317_v5 = vmul.f32 %v6175_v34, %v2309_v45 }
 0xf8f   : > { %v8691_v47 = vadd.f32 %v6176_v39, %v2317_v5 }
0x1014   : > { %v3194_v57 = vpop.xlane.xlu1 %3193 }
0x1015   : > { %v3195_v58 = vmul.f32 0.03125, %v3194_v57  ;;  %v6219_v57 = vld [vmem:[#allocation8 + $0x2] ss:$0 sm:$0xff] }
0x1017   : > { %v3196_v61 = vsub.f32 %v3191_v50, %v3195_v58 }
0x1019   : > { %v3197_v62 = vmul.f32 %v3196_v61, %v3196_v61 }
0x101b   : > { %v3198_v63 = vsel %vm908_vm0, %v3197_v62, 0.0 }
0x101c   : > { %3199 = vadd.xlane.f32.xlu1 %v3198_v63  ;;  %v6236_v63 = vld [vmem:[%s9190_s11 + $0x1] ss:$0 sm:$0xff] }
0x1020   : > { %2301 = vadd.xlane.f32.xlu1 %v2300_v2 }
0x10a9   : > { %v3200_v24 = vpop.xlane.xlu1 %3199 }
0x10aa   : > { %v3201_v25 = vmul.f32 0.03125, %v3200_v24 }
0x10ac   : > { %v3202_v26 = vadd.f32 1e-05, %v3201_v25 }
0x10ad   : > { %v2302_v27 = vpop.xlane.xlu1 %2301 }
0x10ae   : > { %7437 = vrsqrt.f32 %v3202_v26  ;;  %v2304_v28 = vmul.f32 0.03125, %v2302_v27 }
0x10b0   : > { %v2306_v29 = vadd.f32 1e-05, %v2304_v28 }
0x10b2   : > { %7439 = vrsqrt.f32 %v2306_v29 }
0x10b8   : > { %v7438_v53 = vpop.eup %7437 }
0x10b9   : > { %v3204_v59 = vmul.f32 %v7438_v53, %v3196_v61 }
0x10bb   : > { %v3211_v38 = vmul.f32 %v6205_v31, %v3204_v59 }
0x10bc   : > { %v7440_v6 = vpop.eup %7439 }
0x10bd   : > { %v3218_v41 = vadd.f32 %v6206_v35, %v3211_v38  ;;  %v2310_v40 = vmul.f32 %v7440_v6, %v8629_v60  ;;  %v7503_v38 = vld [vmem:[%s8305_s2] ss:$0 sm:$0xff]  ;;  %s9291_s2 = smov 64  }
0x10bf   : > { %v8689_v43 = vmul.f32 %v8685_v36, %v3218_v41  ;;  %v2318_v49 = vmul.f32 %v6175_v34, %v2310_v40 }
0x10c1   : > { %6724 = vmatmul.mubr.msk.f32.vlgmr.msra.gmra.mrb[26].mxu1 %vm908_vm0, %v8689_v43  ;;  %v8697_v50 = vadd.f32 %v6176_v39, %v2318_v49 }
0x10c2   : > { %7058 = vmatpush3.bf16.msra.mxu1 %v7055_v11  ;;  %6753 = vmatprep.mubr.msk.f32.mxu1 %vm908_vm0, %v8691_v47 }
0x10c3   : > { %7060 = vmatprep.subr.bf16.mxu1 %v7059_v46 }
0x10c6   : > { %7062 = vmatpush3.bf16.msra.mxu1 %v7059_v46 }
0x10c9   : > { %6754 = vmatmul.mubr.msk.f32.vlgmr.msra.gmra.mrb[28].mxu1 %vm908_vm0, %v8697_v50 }
0x1194   : > { %v3322_v58 = vpop.f32.mrb[26].mxu1 }
0x1195   : > { %v3323_v60 = vadd.f32 %v6219_v57, %v3322_v58  ;;  %v6725_v61 = vpop.f32.mrb[27].mxu1 }
0x1197   : > { %v3326_v62 = vmax.f32 %v3323_v60, 0.0 }
0x1199   : > { %6743 = vmatmul.mubr.msk.f32.vlgmr.msra.gmra.mrb[18].mxu0 %vm2201_vm6, %v3326_v62 }
0x119c   : > { %v6755_v0 = vpop.f32.mrb[28].mxu1 }
0x119d   : > { %v3536_v2 = vadd.f32 %v6755_v0, %v6236_v63  ;;  %v3530_v44 = vpop.f32.mrb[29].mxu1 }
0x119e   : > { %v3531_v4 = vadd.f32 %v6236_v63, %v3530_v44 }
0x119f   : > { %3543 = vrot.lane.b32.xlu1 %v3536_v2, %s9234_s25 }
0x11a0   : > { %3545 = vrot.lane.b32.xlu0 %v3531_v4, %s9235_s14  ;;  %6760 = vmatprep.mubr.msk.f32.mxu1 %vm1112_vm1, %v3531_v4  ;;  %v8716_v1 = vpack.i.bf16 %v3536_v2, %v3531_v4 }
0x11a3   : > { %3541 = vrot.lane.b32.xlu1 %v3531_v4, %s9234_s25 }
0x11a4   : > { %3549 = vrot.lane.b32.xlu0 %v3531_v4, %s9289_s30 }
0x11a7   : > { %3547 = vrot.lane.b32.xlu1 %v3536_v2, %s9235_s14 }
0x11a8   : > { %7338 = vrot.lane.b32.xlu0 %v8716_v1, %s9290_s0 }
0x11ab   : > { %3551 = vrot.lane.b32.xlu1 %v3536_v2, %s9289_s30 }
0x1211   : > { %v3544_v3 = vpop.permute.xlu1 %3543 }
0x1212   : > { %v3546_v7 = vpop.permute.xlu0 %3545 }
0x1215   : > { %v3542_v8 = vpop.permute.xlu1 %3541 }
0x1216   : > { %v8722_v9 = vpack.i.bf16 %v3544_v3, %v3542_v8  ;;  %v3550_v10 = vpop.permute.xlu0 %3549  ;;  %6767 = vmatprep.mubr.msk.f32.mxu0 %vm1112_vm1, %v3542_v8 }
0x1218   : > { %7343 = vrot.lane.b32.xlu1 %v8722_v9, %s9290_s0 }
0x1219   : > { %v3548_v11 = vpop.permute.xlu1 %3547 }
0x121a   : > { %v8727_v12 = vpack.i.bf16 %v3548_v11, %v3546_v7  ;;  %v7339_v13 = vpop.permute.xlu0 %7338 }
0x121b   : > { %v7341_v14 = vunpack.i.h.bf16 %v7339_v13  ;;  %v7340_v15 = vunpack.i.l.bf16 %v7339_v13 }
0x121c   : > { %7348 = vrot.lane.b32.xlu0 %v8727_v12, %s9290_s0 }
0x121d   : > { %v7063_v16 = vpack.c.bf16 %v7341_v14, %v7340_v15  ;;  %v3552_v17 = vpop.permute.xlu1 %3551 }
0x121e   : > { %v8731_v18 = vpack.i.bf16 %v3552_v17, %v3550_v10 }
0x121f   : > { %7065 = vmatprep.subr.msk.bf16.mxu1 %vm8271_vm2, %v7063_v16 }
0x1220   : > { %7068 = vmatpush3.bf16.xpose.msk.msra.mxu1 %vm8271_vm2, %v7063_v16  ;;  %7353 = vrot.lane.b32.xlu1 %v8731_v18, %s9290_s0 }
0x1227   : > { %6761 = vmatmul.mubr.msk.f32.vlgmr.msra.gmra.mrb[30].mxu1 %vm1112_vm1, %v3536_v2 }
0x1228   : > { %6774 = vmatprep.mubr.msk.f32.mxu1 %vm1112_vm1, %v3546_v7 }
0x126c   : > { %v8741_v19 = vpop.f32.mrb[18].mxu0 }
0x126d   : > { %v6744_v20 = vpop.f32.mrb[19].mxu0 }
0x128a   : > { %v7344_v21 = vpop.permute.xlu1 %7343 }
0x128b   : > { %v7346_v22 = vunpack.i.h.bf16 %v7344_v21  ;;  %v7345_v23 = vunpack.i.l.bf16 %v7344_v21 }
0x128d   : > { %v7069_v24 = vpack.c.bf16 %v7346_v22, %v7345_v23 }
0x128e   : > { %v7349_v25 = vpop.permute.xlu0 %7348 }
0x128f   : > { %v7351_v26 = vunpack.i.h.bf16 %v7349_v25  ;;  %v7350_v27 = vunpack.i.l.bf16 %v7349_v25  ;;  %7071 = vmatprep.subr.msk.bf16.mxu0 %vm8271_vm2, %v7069_v24 }
0x1290   : > { %7074 = vmatpush3.bf16.xpose.msk.msra.mxu0 %vm8271_vm2, %v7069_v24 }
0x1291   : > { %v7075_v28 = vpack.c.bf16 %v7351_v26, %v7350_v27 }
0x1292   : > { %v7354_v29 = vpop.permute.xlu1 %7353 }
0x1293   : > { %v7356_v30 = vunpack.i.h.bf16 %v7354_v29  ;;  %v7355_v53 = vunpack.i.l.bf16 %v7354_v29  ;;  %7077 = vmatprep.subr.msk.bf16.mxu1 %vm8271_vm2, %v7075_v28 }
0x1294   : > { %7080 = vmatpush3.bf16.xpose.msk.msra.mxu1 %vm8271_vm2, %v7075_v28 }
0x1295   : > { %v7081_v31 = vpack.c.bf16 %v7356_v30, %v7355_v53 }
0x1297   : > { %6768 = vmatmul.mubr.msk.f32.vlgmr.msra.gmra.mrb[20].mxu0 %vm1112_vm1, %v3544_v3  ;;  %7083 = vmatprep.subr.msk.bf16.mxu0 %vm8271_vm2, %v7081_v31 }
0x1298   : > { %7086 = vmatpush3.bf16.xpose.msk.msra.mxu0 %vm8271_vm2, %v7081_v31  ;;  %6781 = vmatprep.mubr.msk.f32.mxu0 %vm1112_vm1, %v3550_v10 }
0x129b   : > { %6775 = vmatmul.mubr.msk.f32.vlgmr.msra.gmra.mrb[32].mxu1 %vm1112_vm1, %v3548_v11 }
0x129f   : > { %6782 = vmatmul.mubr.msk.f32.vlgmr.msra.gmra.mrb[22].mxu0 %vm1112_vm1, %v3552_v17 }
0x12fa   : > { %v6762_v45 = vpop.f32.mrb[30].mxu1 }
0x12fb   : > { %v3902_v59 = vmul.f32 0.35355338, %v6762_v45  ;;  %v3631_v34 = vpop.f32.mrb[31].mxu1 }
0x12fc   : > { %v3901_v35 = vmul.f32 0.35355338, %v3631_v34 }
0x12fd   : > { %v3910_v6 = vadd.f32 %v7503_v38, %v3902_v59 }
0x12fe   : > { %v3909_v5 = vadd.f32 %v7503_v38, %v3901_v35 }
0x12ff   : > { %v3920_v33 = vsel %vm1479_vm3, %v3910_v6, -inf }
0x1300   : > { %3921 = vmax.xlane.f32.xlu1 %v3920_v33  ;;  %v3917_v37 = vsel %vm1479_vm3, %v3909_v5, -inf }
0x1301   : > { %3918 = vmax.xlane.f32.xlu0 %v3917_v37 }
0x136a   : > { %v6769_v56 = vpop.f32.mrb[20].mxu0 }
0x136b   : > { %v3904_v41 = vmul.f32 0.35355338, %v6769_v56  ;;  %v3718_v39 = vpop.f32.mrb[21].mxu0 }
0x136c   : > { %v3903_v40 = vmul.f32 0.35355338, %v3718_v39 }
0x136d   : > { %v3912_v46 = vadd.f32 %v7503_v38, %v3904_v41 }
0x136e   : > { %v6776_v49 = vpop.f32.mrb[32].mxu1  ;;  %v3911_v57 = vadd.f32 %v7503_v38, %v3903_v40 }
0x136f   : > { %v3906_v52 = vmul.f32 0.35355338, %v6776_v49  ;;  %v3805_v54 = vpop.f32.mrb[33].mxu1  ;;  %v3926_v55 = vsel %vm1479_vm3, %v3912_v46, -inf }
0x1370   : > { %v3905_v58 = vmul.f32 0.35355338, %v3805_v54  ;;  %3927 = vmax.xlane.f32.xlu0 %v3926_v55  ;;  %v3923_v0 = vsel %vm1479_vm3, %v3911_v57, -inf }
0x1371   : > { %v3914_v2 = vadd.f32 %v7503_v38, %v3906_v52 }
0x1372   : > { %v6783_v60 = vpop.f32.mrb[22].mxu0  ;;  %v3913_v61 = vadd.f32 %v7503_v38, %v3905_v58 }
0x1373   : > { %v3908_v62 = vmul.f32 0.35355338, %v6783_v60  ;;  %v3892_v63 = vpop.f32.mrb[23].mxu0  ;;  %v3932_v7 = vsel %vm1479_vm3, %v3914_v2, -inf }
0x1374   : > { %v3907_v44 = vmul.f32 0.35355338, %v3892_v63  ;;  %3924 = vmax.xlane.f32.xlu0 %v3923_v0  ;;  %v3929_v4 = vsel %vm1479_vm3, %v3913_v61, -inf }
0x1375   : > { %3930 = vmax.xlane.f32.xlu1 %v3929_v4  ;;  %v3916_v8 = vadd.f32 %v7503_v38, %v3908_v62 }
0x1376   : > { %v8765_v3 = vadd.f32 %v7503_v38, %v3907_v44 }
0x1377   : > { %v3938_v11 = vsel %vm1479_vm3, %v3916_v8, -inf }
0x1378   : > { %3933 = vmax.xlane.f32.xlu0 %v3932_v7  ;;  %v3935_v10 = vsel %vm1479_vm3, %v8765_v3, -inf }
0x1379   : > { %3936 = vmax.xlane.f32.xlu1 %v3935_v10 }
0x137c   : > { %3939 = vmax.xlane.f32.xlu0 %v3938_v11 }
0x138a   : > { %7358 = vrot.lane.b32.xlu1 %v8716_v1, %s9291_s2 }
0x138d   : > { %v3922_v13 = vpop.xlane.xlu1 %3921 }
0x138e   : > { %v3942_v14 = vsub.f32 %v3910_v6, %v3922_v13  ;;  %v3919_v16 = vpop.xlane.xlu0 %3918 }
0x138f   : > { %v3941_v17 = vsub.f32 %v3909_v5, %v3919_v16 }
0x1390   : > { %v3951_v15 = vmul.f32 1.442695, %v3942_v14 }
0x1391   : > { %v3949_v21 = vmul.f32 1.442695, %v3941_v17 }
0x1392   : > { %7441 = vpow2.f32 %v3951_v15 }
0x1393   : > { %7443 = vpow2.f32 %v3949_v21 }
0x139c   : > { %v8773_v20 = vpop.eup %7441 }
0x139d   : > { %v3968_v22 = vsel %vm1479_vm3, %v8773_v20, 0.0  ;;  %v7444_v23 = vpop.eup %7443 }
0x139e   : > { %3969 = vadd.xlane.f32.xlu0 %v3968_v22  ;;  %v3965_v24 = vsel %vm1479_vm3, %v7444_v23, 0.0 }
0x13ae   : > { %3966 = vadd.xlane.f32.xlu1 %v3965_v24 }
0x13fd   : > { %v3928_v25 = vpop.xlane.xlu0 %3927 }
0x13fe   : > { %v3944_v1 = vsub.f32 %v3912_v46, %v3928_v25 }
0x1400   : > { %v3955_v26 = vmul.f32 1.442695, %v3944_v1 }
0x1401   : > { %v3925_v27 = vpop.xlane.xlu0 %3924 }
0x1402   : > { %7445 = vpow2.f32 %v3955_v26  ;;  %v3943_v28 = vsub.f32 %v3911_v57, %v3925_v27  ;;  %v3931_v29 = vpop.xlane.xlu1 %3930 }
0x1403   : > { %v3945_v30 = vsub.f32 %v3913_v61, %v3931_v29 }
0x1404   : > { %v3953_v53 = vmul.f32 1.442695, %v3943_v28 }
0x1405   : > { %v3957_v31 = vmul.f32 1.442695, %v3945_v30  ;;  %v3934_v45 = vpop.xlane.xlu0 %3933 }
0x1406   : > { %7447 = vpow2.f32 %v3953_v53  ;;  %v3946_v59 = vsub.f32 %v3914_v2, %v3934_v45  ;;  %v3937_v34 = vpop.xlane.xlu1 %3936 }
0x1407   : > { %7449 = vpow2.f32 %v3957_v31  ;;  %v3947_v61 = vsub.f32 %v8765_v3, %v3937_v34 }
0x1408   : > { %v3959_v35 = vmul.f32 1.442695, %v3946_v59 }
0x1409   : > { %v3940_v38 = vpop.xlane.xlu0 %3939  ;;  %v3961_v63 = vmul.f32 1.442695, %v3947_v61 }
0x140a   : > { %7451 = vpow2.f32 %v3959_v35  ;;  %v3948_v6 = vsub.f32 %v3916_v8, %v3940_v38  ;;  %v7359_v5 = vpop.permute.xlu1 %7358 }
0x140b   : > { %v7361_v33 = vunpack.i.h.bf16 %v7359_v5  ;;  %v7360_v37 = vunpack.i.l.bf16 %v7359_v5 }
0x140c   : > { %v8778_v56 = vpop.eup %7445  ;;  %v3963_v41 = vmul.f32 1.442695, %v3948_v6 }
0x140d   : > { %v7087_v39 = vpack.c.bf16 %v7361_v33, %v7360_v37  ;;  %v3974_v40 = vsel %vm1479_vm3, %v8778_v56, 0.0  ;;  %v6230_v37 = vld [vmem:[%s9191_s12 + $0x20] sm:$0xff] }
0x140e   : > { %7453 = vpow2.f32 %v3963_v41  ;;  %3975 = vadd.xlane.f32.xlu0 %v3974_v40  ;;  %v6232_v41 = vld [vmem:[%s9191_s12 + $0x30] sm:$0xff]  ;;  %v6233_v40 = vld [vmem:[%s9191_s12 + $0x38] sm:$0xff] }
0x140f   : > { %7088 = vmatprep.subr.bf16.mxu1 %v7087_v39 }
0x1410   : > { %v7448_v46 = vpop.eup %7447  ;;  %7090 = vmatpush3.bf16.msra.mxu1 %v7087_v39 }
0x1411   : > { %v3971_v49 = vsel %vm1479_vm3, %v7448_v46, 0.0  ;;  %v7450_v52 = vpop.eup %7449 }
0x1412   : > { %3972 = vadd.xlane.f32.xlu1 %v3971_v49  ;;  %v3977_v57 = vsel %vm1479_vm3, %v7450_v52, 0.0 }
0x1414   : > { %v7452_v54 = vpop.eup %7451 }
0x1415   : > { %v3980_v55 = vsel %vm1479_vm3, %v7452_v54, 0.0 }
0x1416   : > { %3981 = vadd.xlane.f32.xlu0 %v3980_v55  ;;  %3978 = vadd.xlane.f32.xlu1 %v3977_v57 }
0x1418   : > { %v8785_v58 = vpop.eup %7453 }
0x1419   : > { %v3986_v60 = vsel %vm1479_vm3, %v8785_v58, 0.0 }
0x141a   : > { %3987 = vadd.xlane.f32.xlu0 %v3986_v60 }
0x1427   : > { %7368 = vrot.lane.b32.xlu1 %v8727_v12, %s9291_s2 }
0x142b   : > { %v3970_v62 = vpop.xlane.xlu0 %3969 }
0x142c   : > { %7455 = vrcp.f32 %v3970_v62 }
0x1430   : > { %7363 = vrot.lane.b32.xlu0 %v8722_v9, %s9291_s2 }
0x1436   : > { %v7456_v2 = vpop.eup %7455 }
0x1437   : > { %v3998_v8 = vmul.f32 %v7456_v2, %v8773_v20 }
0x143b   : > { %v3967_v0 = vpop.xlane.xlu1 %3966 }
0x143c   : > { %7457 = vrcp.f32 %v3967_v0 }
0x143d   : > { %7459 = vpow2.f32 %v3961_v63 }
0x1446   : > { %v7458_v44 = vpop.eup %7457 }
0x1447   : > { %v7460_v4 = vpop.eup %7459  ;;  %v3997_v7 = vmul.f32 %v7458_v44, %v7444_v23 }
0x1448   : > { %v3983_v9 = vsel %vm1479_vm3, %v7460_v4, 0.0 }
0x1449   : > { %6788 = vmatprep.mubr.msk.f32.mxu1 %vm1479_vm3, %v3997_v7 }
0x144a   : > { %6789 = vmatmul.mubr.msk.f32.vlgmr.msra.gmra.mrb[34].mxu1 %vm1479_vm3, %v3998_v8 }
0x144b   : > { %3984 = vadd.xlane.f32.xlu1 %v3983_v9 }
0x145c   : > { %7373 = vrot.lane.b32.xlu1 %v8731_v18, %s9291_s2 }
0x149b   : > { %v3976_v12 = vpop.xlane.xlu0 %3975 }
0x149f   : > { %v3973_v3 = vpop.xlane.xlu1 %3972 }
0x14a0   : > { %7461 = vrcp.f32 %v3973_v3  ;;  %v6263_v3 = vld [vmem:[%s9192_s13 + $0x1] ss:$0 sm:$0xff] }
0x14a1   : > { %7463 = vrcp.f32 %v3976_v12 }
0x14a3   : > { %v3982_v10 = vpop.xlane.xlu0 %3981  ;;  %v3979_v11 = vpop.xlane.xlu1 %3978 }
0x14a4   : > { %7465 = vrcp.f32 %v3982_v10  ;;  %v6221_v10 = vld [vmem:[#allocation10 + $0x2] ss:$0 sm:$0xff] }
0x14a5   : > { %7467 = vrcp.f32 %v3979_v11 }
0x14a7   : > { %v3988_v13 = vpop.xlane.xlu0 %3987  ;;  %v7369_v14 = vpop.permute.xlu1 %7368 }
0x14a8   : > { %v7371_v15 = vunpack.i.h.bf16 %v7369_v14  ;;  %v7370_v16 = vunpack.i.l.bf16 %v7369_v14  ;;  %7469 = vrcp.f32 %v3988_v13 }
0x14aa   : > { %v7462_v17 = vpop.eup %7461  ;;  %v7095_v20 = vpack.c.bf16 %v7371_v15, %v7370_v16  ;;  %v3403_v15 = vadd.f32 %v6221_v10, %v8741_v19 }
0x14ab   : > { %v7364_v21 = vpop.permute.xlu0 %7363  ;;  %v3999_v22 = vmul.f32 %v7462_v17, %v7448_v46  ;;  %v7464_v18 = vpop.eup %7463  ;;  %v7107_v46 = vpack.c.bf16 %v6233_v40, %v6232_v41 }
0x14ac   : > { %v7366_v23 = vunpack.i.h.bf16 %v7364_v21  ;;  %v7365_v24 = vunpack.i.l.bf16 %v7364_v21  ;;  %7096 = vmatprep.subr.bf16.mxu0 %v7095_v20  ;;  %v4000_v29 = vmul.f32 %v7464_v18, %v8778_v56  ;;  %v6231_v56 = vld [vmem:[%s9191_s12 + $0x28] sm:$0xff] }
0x14ad   : > { %6795 = vmatprep.mubr.msk.f32.mxu1 %vm1479_vm3, %v3999_v22  ;;  %7098 = vmatpush3.bf16.msra.mxu0 %v7095_v20  ;;  %v7103_v39 = vpack.c.bf16 %v6231_v56, %v6230_v37  ;;  %v3406_v22 = vadd.f32 %v3403_v15, %v8689_v43  ;;  %v6273_v37 = vld [vmem:[%s9197_s18 + $0x48] sm:$0xff]  ;;  %v6274_v56 = vld [vmem:[%s9197_s18 + $0x50] sm:$0xff] }
0x14ae   : > { %v7466_v25 = vpop.eup %7465  ;;  %v7091_v1 = vpack.c.bf16 %v7366_v23, %v7365_v24 }
0x14af   : > { %v7468_v26 = vpop.eup %7467  ;;  %v4002_v27 = vmul.f32 %v7466_v25, %v7452_v54  ;;  %7104 = vmatprep.subr.bf16.mxu0 %v7103_v39  ;;  %v3407_v24 = vsel %vm908_vm0, %v3406_v22, 0.0 }
0x14b0   : > { %7092 = vmatprep.subr.bf16.mxu1 %v7091_v1  ;;  %v4001_v28 = vmul.f32 %v7468_v26, %v7450_v52 }
0x14b1   : > { %7094 = vmatpush3.bf16.msra.mxu1 %v7091_v1 }
0x14b2   : > { %6802 = vmatprep.mubr.msk.f32.mxu0 %vm1479_vm3, %v4001_v28  ;;  %v7470_v34 = vpop.eup %7469 }
0x14b3   : > { %6803 = vmatmul.mubr.msk.f32.vlgmr.msra.gmra.mrb[24].mxu0 %vm1479_vm3, %v4002_v27  ;;  %v4004_v6 = vmul.f32 %v7470_v34, %v8785_v58  ;;  %v6269_v34 = vld [vmem:[%s9195_s16 + $0x28] sm:$0xff] }
0x14b4   : > { %6796 = vmatmul.mubr.msk.f32.vlgmr.msra.gmra.mrb[36].mxu1 %vm1479_vm3, %v4000_v29  ;;  %7106 = vmatpush3.bf16.msra.mxu0 %v7103_v39  ;;  %v6275_v39 = vld [vmem:[%s9197_s18 + $0x58] sm:$0xff] }
0x14b5   : > { %7108 = vmatprep.subr.bf16.mxu0 %v7107_v46  ;;  %v7123_v40 = vpack.c.bf16 %v6275_v39, %v6274_v56 }
0x14b8   : > { %7110 = vmatpush3.bf16.msra.mxu0 %v7107_v46  ;;  %v6276_v46 = vld [vmem:[%s9197_s18 + $0x60] sm:$0xff] }
0x14d8   : > { %v3985_v30 = vpop.xlane.xlu1 %3984 }
0x14d9   : > { %7471 = vrcp.f32 %v3985_v30 }
0x14dc   : > { %v7374_v53 = vpop.permute.xlu1 %7373 }
0x14dd   : > { %v7376_v31 = vunpack.i.h.bf16 %v7374_v53  ;;  %v7375_v45 = vunpack.i.l.bf16 %v7374_v53 }
0x14df   : > { %v7099_v59 = vpack.c.bf16 %v7376_v31, %v7375_v45 }
0x14e1   : > { %7100 = vmatprep.subr.bf16.mxu1 %v7099_v59 }
0x14e2   : > { %7102 = vmatpush3.bf16.msra.mxu1 %v7099_v59  ;;  %v6268_v59 = vld [vmem:[%s9195_s16 + $0x20] sm:$0xff] }
0x14e3   : > { %v7472_v35 = vpop.eup %7471 }
0x14e4   : > { %v4003_v38 = vmul.f32 %v7472_v35, %v7460_v4  ;;  %v7111_v35 = vpack.c.bf16 %v6269_v34, %v6268_v59 }
0x14e6   : > { %6809 = vmatprep.mubr.msk.f32.mxu1 %vm1479_vm3, %v4003_v38  ;;  %7112 = vmatprep.subr.bf16.mxu1 %v7111_v35  ;;  %v6270_v38 = vld [vmem:[%s9195_s16 + $0x30] sm:$0xff] }
0x14e7   : > { %6810 = vmatmul.mubr.msk.f32.vlgmr.msra.gmra.mrb[38].mxu1 %vm1479_vm3, %v4004_v6  ;;  %v6271_v6 = vld [vmem:[%s9195_s16 + $0x38] sm:$0xff] }
0x14e8   : > { %7114 = vmatpush3.bf16.msra.mxu1 %v7111_v35 }
0x151d   : > { %v6790_v5 = vpop.f32.mrb[34].mxu1 }
0x151e   : > { %v4083_v33 = vpop.f32.mrb[35].mxu1 }
0x1586   : > { %v6804_v49 = vpop.f32.mrb[24].mxu0 }
0x1587   : > { %v4257_v52 = vpop.f32.mrb[25].mxu0  ;;  %v6797_v54 = vpop.f32.mrb[36].mxu1 }
0x1588   : > { %4357 = vrot.lane.b32.xlu1 %v6797_v54, %s9284_s23  ;;  %v4170_v55 = vpop.f32.mrb[37].mxu1 }
0x1589   : > { %4355 = vrot.lane.b32.xlu0 %v4170_v55, %s9284_s23 }
0x158c   : > { %4365 = vrot.lane.b32.xlu1 %v6804_v49, %s9285_s3  ;;  %v6277_v49 = vld [vmem:[%s9197_s18 + $0x68] sm:$0xff] }
0x158d   : > { %4363 = vrot.lane.b32.xlu0 %v4257_v52, %s9285_s3  ;;  %v7127_v52 = vpack.c.bf16 %v6277_v49, %v6276_v46  ;;  %v7504_v49 = vld [vmem:[%s8551_s26] ss:$0 sm:$0xff] }
0x15ba   : > { %v6811_v57 = vpop.f32.mrb[38].mxu1 }
0x15bb   : > { %4373 = vrot.lane.b32.xlu1 %v6811_v57, %s9286_s1  ;;  %v4344_v58 = vpop.f32.mrb[39].mxu1 }
0x15bc   : > { %4371 = vrot.lane.b32.xlu0 %v4344_v58, %s9286_s1 }
0x15fa   : > { %v4358_v60 = vpop.permute.xlu1 %4357 }
0x15fb   : > { %v4356_v61 = vpop.permute.xlu0 %4355  ;;  %v4378_v44 = vsel %vm1112_vm1, %v6790_v5, %v4358_v60  ;;  %v7115_v5 = vpack.c.bf16 %v6271_v6, %v6270_v38 }
0x15fc   : > { %v4377_v0 = vsel %vm1112_vm1, %v4083_v33, %v4356_v61  ;;  %v6272_v33 = vld [vmem:[%s9197_s18 + $0x40] sm:$0xff] }
0x15fd   : > { %7116 = vmatprep.subr.bf16.mxu1 %v7115_v5  ;;  %v7119_v41 = vpack.c.bf16 %v6273_v37, %v6272_v33 }
0x15fe   : > { %v4366_v62 = vpop.permute.xlu1 %4365  ;;  %7118 = vmatpush3.bf16.msra.mxu1 %v7115_v5 }
0x15ff   : > { %v4364_v63 = vpop.permute.xlu0 %4363  ;;  %v4380_v8 = vsel %vm1479_vm3, %v4378_v44, %v4366_v62  ;;  %7135 = vmatprep.subr.bf16.mxu1 %v7831_v51  ;;  %7120 = vmatprep.subr.bf16.mxu0 %v7119_v41  ;;  %v6266_v44 = vld [vmem:[%s9281_s28 + $0x1] ss:$0 sm:$0xff] }
0x1600   : > { %v4379_v4 = vsel %vm1479_vm3, %v4377_v0, %v4364_v63 }
0x162d   : > { %v4374_v2 = vpop.permute.xlu1 %4373 }
0x162e   : > { %v4372_v7 = vpop.permute.xlu0 %4371  ;;  %v4382_v12 = vsel %vm1944_vm4, %v4380_v8, %v4374_v2 }
0x162f   : > { %v4381_v9 = vsel %vm1944_vm4, %v4379_v4, %v4372_v7 }
0x1630   : > { %6820 = vmatprep.mubr.msk.f32.mxu0 %vm908_vm0, %v4381_v9  ;;  %v6267_v9 = vld [vmem:[#allocation7 + $0x1] ss:$0 sm:$0xff] }
0x1631   : > { %6821 = vmatmul.mubr.msk.f32.vlgmr.msra.gmra.mrb[26].mxu0 %vm908_vm0, %v4382_v12 }
0x1632   : > { %7122 = vmatpush3.bf16.msra.mxu0 %v7119_v41 }
0x1633   : > { %7124 = vmatprep.subr.bf16.mxu0 %v7123_v40 }
0x1636   : > { %7126 = vmatpush3.bf16.msra.mxu0 %v7123_v40 }
0x1637   : > { %7128 = vmatprep.subr.bf16.mxu0 %v7127_v52 }
0x163a   : > { %7130 = vmatpush3.bf16.msra.mxu0 %v7127_v52 }
0x1704   : > { %v6822_v11 = vpop.f32.mrb[26].mxu0 }
0x1705   : > { %v4467_v13 = vadd.f32 %v6822_v11, %v6263_v3  ;;  %v4461_v14 = vpop.f32.mrb[27].mxu0  ;;  %v6288_v11 = vld [vmem:[%s9189_s10 + $0x60] sm:$0xff] }
0x1706   : > { %v4462_v16 = vadd.f32 %v6263_v3, %v4461_v14 }
0x1707   : > { %v4471_v17 = vadd.f32 %v4467_v13, %v8697_v50  ;;  %v6289_v13 = vld [vmem:[%s9189_s10 + $0x68] sm:$0xff] }
0x1708   : > { %v4470_v20 = vadd.f32 %v4462_v16, %v8691_v47 }
0x1709   : > { %v4475_v21 = vsel %vm908_vm0, %v4471_v17, 0.0 }
0x170a   : > { %4476 = vadd.xlane.f32.xlu1 %v4475_v21  ;;  %v4472_v23 = vsel %vm908_vm0, %v4470_v20, 0.0 }
0x170b   : > { %4473 = vadd.xlane.f32.xlu0 %v4472_v23  ;;  %v6291_v23 = vld [vmem:[%s9189_s10 + $0x78] sm:$0xff] }
0x170f   : > { %3408 = vadd.xlane.f32.xlu0 %v3407_v24  ;;  %v6223_v24 = vld [vmem:[#allocation11 + $0x2] ss:$0 sm:$0xff] }
0x1797   : > { %v4477_v18 = vpop.xlane.xlu1 %4476 }
0x1798   : > { %v4479_v25 = vmul.f32 0.03125, %v4477_v18  ;;  %v4474_v1 = vpop.xlane.xlu0 %4473  ;;  %v6224_v18 = vld [vmem:[#allocation13 + $0x2] ss:$0 sm:$0xff] }
0x1799   : > { %v4478_v19 = vmul.f32 0.03125, %v4474_v1  ;;  %v6278_v1 = vld [vmem:[%s9197_s18 + $0x70] sm:$0xff] }
0x179a   : > { %v4481_v26 = vsub.f32 %v4471_v17, %v4479_v25  ;;  %v7136_v17 = vpack.c.bf16 %v6289_v13, %v6288_v11 }
0x179b   : > { %v4480_v27 = vsub.f32 %v4470_v20, %v4478_v19  ;;  %v6279_v19 = vld [vmem:[%s9197_s18 + $0x78] sm:$0xff] }
0x179c   : > { %v3409_v50 = vpop.xlane.xlu0 %3408  ;;  %v4483_v28 = vmul.f32 %v4481_v26, %v4481_v26 }
0x179d   : > { %v3410_v47 = vmul.f32 0.03125, %v3409_v50  ;;  %v4482_v29 = vmul.f32 %v4480_v27, %v4480_v27 }
0x179e   : > { %v4487_v30 = vsel %vm908_vm0, %v4483_v28, 0.0 }
0x179f   : > { %v3411_v43 = vsub.f32 %v3406_v22, %v3410_v47  ;;  %4488 = vadd.xlane.f32.xlu1 %v4487_v30  ;;  %v4484_v53 = vsel %vm908_vm0, %v4482_v29, 0.0  ;;  %v6290_v22 = vld [vmem:[%s9189_s10 + $0x70] sm:$0xff] }
0x17a0   : > { %4485 = vadd.xlane.f32.xlu0 %v4484_v53  ;;  %v6299_v53 = vld [vmem:[%s9190_s11 + $0x3] ss:$0 sm:$0xff] }
0x17a1   : > { %v3412_v31 = vmul.f32 %v3411_v43, %v3411_v43 }
0x17a3   : > { %v3413_v45 = vsel %vm908_vm0, %v3412_v31, 0.0 }
0x17a4   : > { %3414 = vadd.xlane.f32.xlu0 %v3413_v45 }
0x182c   : > { %v4489_v54 = vpop.xlane.xlu1 %4488 }
0x182d   : > { %v4491_v55 = vmul.f32 0.03125, %v4489_v54  ;;  %v4486_v57 = vpop.xlane.xlu0 %4485 }
0x182e   : > { %v4490_v58 = vmul.f32 0.03125, %v4486_v57 }
0x182f   : > { %v4493_v60 = vadd.f32 1e-05, %v4491_v55 }
0x1830   : > { %v4492_v61 = vadd.f32 1e-05, %v4490_v58 }
0x1831   : > { %7473 = vrsqrt.f32 %v4493_v60  ;;  %v3415_v62 = vpop.xlane.xlu0 %3414 }
0x1832   : > { %7475 = vrsqrt.f32 %v4492_v61  ;;  %v3416_v63 = vmul.f32 0.03125, %v3415_v62 }
0x1834   : > { %v3417_v0 = vadd.f32 1e-05, %v3416_v63 }
0x1836   : > { %7477 = vrsqrt.f32 %v3417_v0 }
0x183b   : > { %v7474_v2 = vpop.eup %7473 }
0x183c   : > { %v7476_v4 = vpop.eup %7475  ;;  %v4497_v7 = vmul.f32 %v7474_v2, %v4481_v26  ;;  %v7131_v26 = vpack.c.bf16 %v6279_v19, %v6278_v1 }
0x183d   : > { %v4496_v8 = vmul.f32 %v7476_v4, %v4480_v27  ;;  %v6280_v27 = vld [vmem:[#allocation8 + $0x1] ss:$0 sm:$0xff] }
0x183e   : > { %v4505_v12 = vmul.f32 %v6266_v44, %v4497_v7  ;;  %7132 = vmatprep.subr.bf16.mxu0 %v7131_v26 }
0x183f   : > { %v4504_v3 = vmul.f32 %v6266_v44, %v4496_v8  ;;  %7134 = vmatpush3.bf16.msra.mxu0 %v7131_v26 }
0x1840   : > { %v4513_v10 = vadd.f32 %v6267_v9, %v4505_v12  ;;  %v7478_v14 = vpop.eup %7477  ;;  %6874 = vmatprep.subr.mxu0 %v7833_v42 }
0x1841   : > { %v4512_v15 = vadd.f32 %v6267_v9, %v4504_v3  ;;  %v3419_v20 = vmul.f32 %v7478_v14, %v3411_v43 }
0x1842   : > { %v8891_v21 = vmul.f32 %v4513_v10, %v8459_v32 }
0x1843   : > { %v8888_v16 = vmul.f32 %v4512_v15, %v8451_v48  ;;  %v7139_v48 = vpack.c.bf16 %v6291_v23, %v6290_v22  ;;  %v3426_v32 = vmul.f32 %v6223_v24, %v3419_v20 }
0x1845   : > { %6831 = vmatprep.mubr.msk.f32.mxu1 %vm908_vm0, %v8888_v16  ;;  %v8906_v25 = vadd.f32 %v6224_v18, %v3426_v32 }
0x1846   : > { %6832 = vmatmul.mubr.msk.f32.vlgmr.msra.gmra.mrb[40].mxu1 %vm908_vm0, %v8891_v21 }
0x1847   : > { %7137 = vmatpush3.bf16.msra.mxu1 %v7136_v17  ;;  %6861 = vmatprep.mubr.msk.f32.mxu1 %vm7832_vm5, %v7833_v42 }
0x1848   : > { %7138 = vmatprep.subr.bf16.mxu1 %v7831_v51 }
0x184b   : > { %7140 = vmatpush3.bf16.msra.mxu1 %v7139_v48 }
0x184c   : > { %6864 = vmatprep.subr.mxu1 %v7833_v42 }
0x184e   : > { %6862 = vmatmul.mubr.msk.f32.vlgmr.msra.gmra.mrb[42].mxu1 %vm908_vm0, %v8906_v25 }
0x184f   : > { %6866 = vmatprep.mubr.msk.f32.mxu1 %vm7832_vm5, %v7833_v42 }
0x1919   : > { %v6833_v50 = vpop.f32.mrb[40].mxu1 }
0x191a   : > { %v4622_v28 = vadd.f32 %v6833_v50, %v6280_v27  ;;  %v4616_v47 = vpop.f32.mrb[41].mxu1 }
0x191b   : > { %v4617_v29 = vadd.f32 %v6280_v27, %v4616_v47 }
0x191c   : > { %v4626_v43 = vmax.f32 %v4622_v28, 0.0 }
0x191d   : > { %v4625_v30 = vmax.f32 %v4617_v29, 0.0 }
0x191f   : > { %6850 = vmatprep.mubr.msk.f32.mxu0 %vm2201_vm6, %v4625_v30 }
0x1920   : > { %6851 = vmatmul.mubr.msk.f32.vlgmr.msra.gmra.mrb[28].mxu0 %vm2201_vm6, %v4626_v43 }
0x1921   : > { %v4851_v31 = vpop.f32.mrb[42].mxu1  ;;  %6876 = vmatprep.mubr.msk.f32.mxu0 %vm7832_vm5, %v7833_v42 }
0x1922   : > { %v4852_v45 = vadd.f32 %v6299_v53, %v4851_v31  ;;  %v6863_v59 = vpop.f32.mrb[43].mxu1 }
0x1924   : > { %4858 = vrot.lane.b32.xlu0 %v4852_v45, %s9292_s7  ;;  %4856 = vrot.lane.b32.xlu1 %v4852_v45, %s9293_s22  ;;  %s9294_s7 = sld [smem:[#allocation24_spill]] }
0x1928   : > { %4860 = vrot.lane.b32.xlu1 %v4852_v45, %s9289_s30 }
0x192a   : > { %s9074_s30 = sand.u32 1, %s9294_s7  }
0x192b   : > { %s5858_s22 = scalar_lea.sflag [#allocation4], %s9074_s30 }
0x192c   : > { %4862 = vrot.lane.b32.xlu1 %v4852_v45, %s9290_s0 }
0x1996   : > { %v8931_v34 = vpop.permute.xlu0 %4858  ;;  %v4857_v35 = vpop.permute.xlu1 %4856 }
0x1997   : > { %5014 = vrot.lane.b32.xlu1 %v8931_v34, %s9290_s0  ;;  %4938 = vrot.lane.b32.xlu0 %v4857_v35, %s9290_s0 }
0x199a   : > { %v8936_v38 = vpop.permute.xlu1 %4860 }
0x199b   : > { %5090 = vrot.lane.b32.xlu0 %v8936_v38, %s9290_s0  ;;  %s6124_s0 = sshll.u32 %s9074_s30, 4 }
0x199e   : > { %v4863_v6 = vpop.permute.xlu1 %4862 }
0x199f   : > { %6865 = vmatpush3.xpose.msk.msra.mxu1 %vm1112_vm1, %v4863_v6 }
0x19a0   : > { %6869 = vmatprep.subr.mxu1 %v7833_v42 }
0x19a2   : > { %6867 = vmatmul.mubr.msk.f32.vlgmr.msra.gmra.mrb[44].mxu1 %vm1112_vm1, %v4852_v45 }
0x19a3   : > { %6871 = vmatprep.mubr.msk.f32.mxu1 %vm7832_vm5, %v7833_v42 }
0x19f3   : > { %v8945_v5 = vpop.f32.mrb[28].mxu0 }
0x19f4   : > { %v8947_v33 = vpop.f32.mrb[29].mxu0 }
0x1a09   : > { %v4939_v37 = vpop.permute.xlu0 %4938  ;;  %v5015_v56 = vpop.permute.xlu1 %5014 }
0x1a0a   : > { %6870 = vmatpush3.xpose.msk.msra.mxu1 %vm1112_vm1, %v4939_v37  ;;  %6875 = vmatpush3.xpose.msk.msra.mxu0 %vm1112_vm1, %v5015_v56 }
0x1a0b   : > { %6879 = vmatprep.subr.mxu1 %v7833_v42  ;;  %6884 = vmatprep.subr.mxu0 %v7833_v42 }
0x1a0d   : > { %v5091_v41 = vpop.permute.xlu0 %5090  ;;  %6872 = vmatmul.mubr.msk.f32.vlgmr.msra.gmra.mrb[46].mxu1 %vm1112_vm1, %v4857_v35  ;;  %6877 = vmatmul.mubr.msk.f32.vlgmr.msra.gmra.mrb[30].mxu0 %vm1112_vm1, %v8931_v34 }
0x1a0e   : > { %6880 = vmatpush3.xpose.msk.msra.mxu1 %vm1112_vm1, %v5091_v41  ;;  %6881 = vmatprep.mubr.msk.f32.mxu1 %vm7832_vm5, %v7833_v42 }
0x1a0f   : > { %6889 = vmatprep.subr.mxu1 %v7833_v42  ;;  %6886 = vmatprep.mubr.msk.f32.mxu0 %vm7832_vm5, %v7833_v42 }
0x1a11   : > { %6882 = vmatmul.mubr.msk.f32.vlgmr.msra.gmra.mrb[48].mxu1 %vm1112_vm1, %v8936_v38 }
0x1a12   : > { %6891 = vmatprep.mubr.msk.f32.mxu1 %vm7832_vm5, %v7833_v42 }
0x1a75   : > { %v4934_v39 = vpop.f32.mrb[44].mxu1 }
0x1a76   : > { %v5166_v40 = vmul.f32 0.35355338, %v4934_v39  ;;  %v6868_v46 = vpop.f32.mrb[45].mxu1 }
0x1a77   : > { %v6294_v46 = vld [vmem:[%s9191_s12 + $0x68] sm:$0xff] }
0x1a78   : > { %v5170_v52 = vadd.f32 %v7504_v49, %v5166_v40  ;;  %v6293_v40 = vld [vmem:[%s9191_s12 + $0x60] sm:$0xff] }
0x1a7a   : > { %v5174_v54 = vsel %vm1112_vm1, %v5170_v52, -inf }
0x1a7b   : > { %5175 = vmax.xlane.f32.xlu1 %v5174_v54 }
0x1ae0   : > { %v5010_v55 = vpop.f32.mrb[46].mxu1  ;;  %v5086_v57 = vpop.f32.mrb[30].mxu0 }
0x1ae1   : > { %v5167_v58 = vmul.f32 0.35355338, %v5010_v55  ;;  %v5168_v60 = vmul.f32 0.35355338, %v5086_v57  ;;  %v6873_v61 = vpop.f32.mrb[47].mxu1  ;;  %v6878_v62 = vpop.f32.mrb[31].mxu0 }
0x1ae2   : > { %v6295_v55 = vld [vmem:[%s9191_s12 + $0x70] sm:$0xff]  ;;  %v6296_v57 = vld [vmem:[%s9191_s12 + $0x78] sm:$0xff] }
0x1ae3   : > { %v5171_v63 = vadd.f32 %v7504_v49, %v5167_v58  ;;  %v5172_v2 = vadd.f32 %v7504_v49, %v5168_v60  ;;  %v7145_v58 = vpack.c.bf16 %v6296_v57, %v6295_v55  ;;  %v6316_v57 = vld [vmem:[#allocation7 + $0x3] ss:$0 sm:$0xff] }
0x1ae4   : > { %v5162_v0 = vpop.f32.mrb[48].mxu1 }
0x1ae5   : > { %v5169_v44 = vmul.f32 0.35355338, %v5162_v0  ;;  %v6883_v4 = vpop.f32.mrb[49].mxu1  ;;  %v5177_v7 = vsel %vm1112_vm1, %v5171_v63, -inf  ;;  %v5180_v9 = vsel %vm1112_vm1, %v5172_v2, -inf }
0x1ae6   : > { %5178 = vmax.xlane.f32.xlu0 %v5177_v7 }
0x1ae7   : > { %v5173_v8 = vadd.f32 %v7504_v49, %v5169_v44  ;;  %v7142_v49 = vpack.c.bf16 %v6294_v46, %v6293_v40 }
0x1ae9   : > { %v5183_v12 = vsel %vm1112_vm1, %v5173_v8, -inf }
0x1aea   : > { %5181 = vmax.xlane.f32.xlu0 %v5180_v9  ;;  %5184 = vmax.xlane.f32.xlu1 %v5183_v12 }
0x1afb   : > { %5294 = vrot.lane.b32.xlu1 %v4857_v35, %s9291_s2 }
0x1b00   : > { %5218 = vrot.lane.b32.xlu0 %v4852_v45, %s9291_s2 }
0x1b08   : > { %v5176_v3 = vpop.xlane.xlu1 %5175 }
0x1b09   : > { %v5186_v10 = vsub.f32 %v5170_v52, %v5176_v3  ;;  %v6283_v3 = vld [vmem:[#allocation10 + $0x1] ss:$0 sm:$0xff] }
0x1b0b   : > { %v5190_v11 = vmul.f32 1.442695, %v5186_v10  ;;  %v6313_v10 = vld [vmem:[%s9192_s13 + $0x3] ss:$0 sm:$0xff] }
0x1b0d   : > { %7479 = vpow2.f32 %v5190_v11 }
0x1b17   : > { %v7480_v13 = vpop.eup %7479 }
0x1b18   : > { %v5198_v14 = vsel %vm1112_vm1, %v7480_v13, 0.0 }
0x1b1f   : > { %5199 = vadd.xlane.f32.xlu0 %v5198_v14 }
0x1b73   : > { %v5179_v15 = vpop.xlane.xlu0 %5178 }
0x1b74   : > { %v5187_v17 = vsub.f32 %v5171_v63, %v5179_v15 }
0x1b76   : > { %v5192_v20 = vmul.f32 1.442695, %v5187_v17 }
0x1b77   : > { %v5182_v22 = vpop.xlane.xlu0 %5181  ;;  %v5185_v23 = vpop.xlane.xlu1 %5184 }
0x1b78   : > { %7481 = vpow2.f32 %v5192_v20  ;;  %v5188_v24 = vsub.f32 %v5172_v2, %v5182_v22  ;;  %v5189_v48 = vsub.f32 %v5173_v8, %v5185_v23  ;;  %v4711_v20 = vadd.f32 %v8945_v5, %v6283_v3 }
0x1b7a   : > { %v5194_v32 = vmul.f32 1.442695, %v5188_v24  ;;  %v5196_v18 = vmul.f32 1.442695, %v5189_v48 }
0x1b7b   : > { %v5219_v1 = vpop.permute.xlu0 %5218  ;;  %v5295_v19 = vpop.permute.xlu1 %5294 }
0x1b7c   : > { %7483 = vpow2.f32 %v5194_v32  ;;  %6885 = vmatpush3.msra.mxu0 %v5219_v1  ;;  %6890 = vmatpush3.msra.mxu1 %v5295_v19 }
0x1b7d   : > { %7485 = vpow2.f32 %v5196_v18  ;;  %6894 = vmatprep.subr.mxu0 %v7833_v42  ;;  %6899 = vmatprep.subr.mxu1 %v7833_v42 }
0x1b82   : > { %v7482_v26 = vpop.eup %7481 }
0x1b83   : > { %v5201_v27 = vsel %vm1112_vm1, %v7482_v26, 0.0 }
0x1b84   : > { %5202 = vadd.xlane.f32.xlu1 %v5201_v27  ;;  %v6317_v27 = vld [vmem:[%s9195_s16 + $0x60] sm:$0xff] }
0x1b86   : > { %v7484_v50 = vpop.eup %7483 }
0x1b87   : > { %v7486_v28 = vpop.eup %7485  ;;  %v5204_v47 = vsel %vm1112_vm1, %v7484_v50, 0.0 }
0x1b88   : > { %5205 = vadd.xlane.f32.xlu0 %v5204_v47  ;;  %v5207_v29 = vsel %vm1112_vm1, %v7486_v28, 0.0  ;;  %v6319_v47 = vld [vmem:[%s9195_s16 + $0x70] sm:$0xff] }
0x1b89   : > { %5208 = vadd.xlane.f32.xlu1 %v5207_v29  ;;  %v6320_v29 = vld [vmem:[%s9195_s16 + $0x78] sm:$0xff] }
0x1b9a   : > { %5370 = vrot.lane.b32.xlu1 %v8931_v34, %s9291_s2 }
0x1b9e   : > { %5446 = vrot.lane.b32.xlu0 %v8936_v38, %s9291_s2  ;;  %s9079_s2 = scalar_lea.vmem [#allocation14], %s6124_s0  ;;  %s7834_s0 = smov [#allocation14]  }
0x1b9f   : > { %s5876_s7 = sshll.u32 %s9079_s2, 4  ;;  %s7705_s4 = sshll.u32 %s7834_s0, 4  ;;  %s9103_s7 = int_to_ptr.vmem [resolvable:$true] %s5876_s7  ;;  %s7706_s4 = int_to_ptr.vmem [resolvable:$false] %s7705_s4 }
0x1ba0   : > { %s7701_s26 = scalar_lea.vmem %s9103_s7, 256  ;;  %s7707_s24 = scalar_lea.vmem %s7706_s4, 512 }
0x1ba1   : > { %p7702_p13 = scmp.ne.s32.totalorder %s9103_s7, %s7701_s26  ;;  %p7708_p5 = scmp.lt.s32.totalorder %s9103_s7, %s7706_s4 }
0x1ba2   : > { %p7709_p0 = scmp.lt.s32.totalorder %s7707_s24, %s7701_s26 }
0x1ba4   : > { %p7710_p10 = por %p7709_p0, %p7708_p5 }
0x1bac   : > { %v5200_v30 = vpop.xlane.xlu0 %5199 }
0x1bad   : > { %7487 = vrcp.f32 %v5200_v30  ;;  %v7151_v30 = vpack.c.bf16 %v6320_v29, %v6319_v47 }
0x1bb7   : > { %v7488_v43 = vpop.eup %7487 }
0x1bb8   : > { %v5214_v53 = vmul.f32 %v7488_v43, %v7480_v13  ;;  %v4706_v13 = vadd.f32 %v6283_v3, %v8947_v33  ;;  %v6321_v43 = vld [vmem:[%s9197_s18 + $0xc0] sm:$0xff] }
0x1bba   : > { %6887 = vmatmul.mubr.msk.f32.vlgmr.msra.gmra.mrb[32].mxu0 %vm1112_vm1, %v5214_v53  ;;  %v4714_v22 = vadd.f32 %v4706_v13, %v8888_v16  ;;  %v6322_v53 = vld [vmem:[%s9197_s18 + $0xc8] sm:$0xff] }
0x1bbb   : > { %6896 = vmatprep.mubr.msk.f32.mxu0 %vm7832_vm5, %v7833_v42  ;;  %v6331_v13 = vld [vmem:[#allocation10 + $0x3] ss:$0 sm:$0xff] }
0x1bbc   : > { %v4716_v24 = vsel %vm908_vm0, %v4714_v22, 0.0 }
0x1c11   : > { %v5203_v31 = vpop.xlane.xlu1 %5202 }
0x1c12   : > { %7489 = vrcp.f32 %v5203_v31  ;;  %v6323_v31 = vld [vmem:[%s9197_s18 + $0xd0] sm:$0xff] }
0x1c15   : > { %v5206_v45 = vpop.xlane.xlu0 %5205 }
0x1c16   : > { %7491 = vrcp.f32 %v5206_v45  ;;  %v5209_v59 = vpop.xlane.xlu1 %5208  ;;  %v7154_v45 = vpack.c.bf16 %v6322_v53, %v6321_v43 }
0x1c17   : > { %7493 = vrcp.f32 %v5209_v59  ;;  %v6324_v59 = vld [vmem:[%s9197_s18 + $0xd8] sm:$0xff] }
0x1c19   : > { %v5447_v6 = vpop.permute.xlu0 %5446 }
0x1c1a   : > { %v5371_v35 = vpop.permute.xlu1 %5370 }
0x1c1b   : > { %6895 = vmatpush3.msra.mxu0 %v5371_v35  ;;  %v7157_v35 = vpack.c.bf16 %v6324_v59, %v6323_v31 }
0x1c1c   : > { %v7490_v34 = vpop.eup %7489  ;;  %7141 = vmatprep.subr.bf16.mxu0 %v7831_v51 }
0x1c1d   : > { %v5215_v38 = vmul.f32 %v7490_v34, %v7482_v26  ;;  %v6325_v34 = vld [vmem:[%s9197_s18 + $0xe0] sm:$0xff] }
0x1c1f   : > { %6892 = vmatmul.mubr.msk.f32.vlgmr.msra.gmra.mrb[50].mxu1 %vm1112_vm1, %v5215_v38  ;;  %v6326_v38 = vld [vmem:[%s9197_s18 + $0xe8] sm:$0xff] }
0x1c20   : > { %v7492_v37 = vpop.eup %7491  ;;  %6900 = vmatpush3.msra.mxu1 %v5447_v6  ;;  %6901 = vmatprep.mubr.msk.f32.mxu1 %vm7832_vm5, %v7833_v42  ;;  %v7160_v6 = vpack.c.bf16 %v6326_v38, %v6325_v34 }
0x1c21   : > { %v7494_v56 = vpop.eup %7493  ;;  %v5216_v41 = vmul.f32 %v7492_v37, %v7484_v50  ;;  %7147 = vmatprep.subr.bf16.mxu1 %v7831_v51  ;;  %v6318_v50 = vld [vmem:[%s9195_s16 + $0x68] sm:$0xff] }
0x1c22   : > { %v5217_v39 = vmul.f32 %v7494_v56, %v7486_v28  ;;  %v7148_v28 = vpack.c.bf16 %v6318_v50, %v6317_v27 }
0x1c23   : > { %6897 = vmatmul.mubr.msk.f32.vlgmr.msra.gmra.mrb[34].mxu0 %vm1112_vm1, %v5216_v41 }
0x1c24   : > { %6902 = vmatmul.mubr.msk.f32.vlgmr.msra.gmra.mrb[52].mxu1 %vm1112_vm1, %v5217_v39  ;;  %6912 = vmatprep.mubr.msk.f32.mxu0 %vm7832_vm5, %v7833_v42 }
0x1c25   : > { %6923 = vmatprep.mubr.msk.f32.mxu1 %vm7832_vm5, %v7833_v42  ;;  %7143 = vmatpush3.bf16.msra.mxu0 %v7142_v49 }
0x1c26   : > { %7144 = vmatprep.subr.bf16.mxu0 %v7831_v51  ;;  %7149 = vmatpush3.bf16.msra.mxu1 %v7148_v28 }
0x1c27   : > { %7150 = vmatprep.subr.bf16.mxu1 %v7831_v51 }
0x1c29   : > { %7146 = vmatpush3.bf16.msra.mxu0 %v7145_v58 }
0x1c2a   : > { %7153 = vmatprep.subr.bf16.mxu0 %v7831_v51  ;;  %7152 = vmatpush3.bf16.msra.mxu1 %v7151_v30 }
0x1c8d   : > { %v5290_v52 = vpop.f32.mrb[32].mxu0 }
0x1c8e   : > { %v6888_v54 = vpop.f32.mrb[33].mxu0 }
0x1c8f   : > { %v6315_v54 = vld [vmem:[%s9281_s28 + $0x3] ss:$0 sm:$0xff] }
0x1cf2   : > { %v5366_v60 = vpop.f32.mrb[50].mxu1 }
0x1cf3   : > { %5523 = vrot.lane.b32.xlu1 %v5366_v60, %s9284_s23  ;;  %v6893_v61 = vpop.f32.mrb[51].mxu1  ;;  %v6286_v60 = vld [vmem:[#allocation11 + $0x1] ss:$0 sm:$0xff] }
0x1cf6   : > { %v5442_v62 = vpop.f32.mrb[34].mxu0 }
0x1cf7   : > { %v5518_v63 = vpop.f32.mrb[52].mxu1  ;;  %5527 = vrot.lane.b32.xlu0 %v5442_v62, %s9285_s3  ;;  %v6898_v0 = vpop.f32.mrb[35].mxu0  ;;  %s9295_s3 = sld [smem:[#allocation29_spill]] }
0x1cf8   : > { %5531 = vrot.lane.b32.xlu1 %v5518_v63, %s9286_s1  ;;  %v6903_v2 = vpop.f32.mrb[53].mxu1  ;;  %v6287_v63 = vld [vmem:[#allocation13 + $0x1] ss:$0 sm:$0xff] }
0x1cfd   : > { %p9297_p1 = scmp.ne.s32.totalorder %s9295_s3, 0 }
0x1cff   : > { %p7703_p6 = pnand %p7702_p13, %p9297_p1 }
0x1d01   : > { %p7704_p9 = pneg %p7703_p6 }
0x1d03   : > { %p7711_p2 = pnand %p7710_p10, %p7704_p9 }
0x1d65   : > { %v5524_v44 = vpop.permute.xlu1 %5523 }
0x1d66   : > { %v5534_v4 = vsel %vm1112_vm1, %v5290_v52, %v5524_v44 }
0x1d69   : > { %v5528_v7 = vpop.permute.xlu0 %5527 }
0x1d6a   : > { %v5535_v8 = vsel %vm1479_vm3, %v5534_v4, %v5528_v7  ;;  %v5532_v9 = vpop.permute.xlu1 %5531  ;;  %v6327_v4 = vld [vmem:[%s9197_s18 + $0xf0] sm:$0xff]  ;;  %v6328_v7 = vld [vmem:[%s9197_s18 + $0xf8] sm:$0xff] }
0x1d6b   : > { %v5536_v12 = vsel %vm1944_vm4, %v5535_v8, %v5532_v9  ;;  %v7163_v8 = vpack.c.bf16 %v6328_v7, %v6327_v4  ;;  %v6329_v9 = vld [vmem:[#allocation8 + $0x3] ss:$0 sm:$0xff] }
0x1d6c   : > { %6913 = vmatmul.mubr.msk.f32.vlgmr.msra.gmra.mrb[36].mxu0 %vm908_vm0, %v5536_v12 }
0x1d6d   : > { %6942 = vmatprep.mubr.msk.f32.mxu0 %vm7832_vm5, %v7833_v42  ;;  %v9029_v42 = vadd.f32 %v4711_v20, %v8891_v21  ;;  %7155 = vmatpush3.bf16.msra.mxu0 %v7154_v45 }
0x1d6e   : > { %7156 = vmatprep.subr.bf16.mxu0 %v7831_v51 }
0x1d6f   : > { %v4719_v33 = vsel %vm908_vm0, %v9029_v42, 0.0 }
0x1d71   : > { %7158 = vmatpush3.bf16.msra.mxu0 %v7157_v35 }
0x1d72   : > { %7159 = vmatprep.subr.bf16.mxu0 %v7831_v51 }
0x1d75   : > { %7161 = vmatpush3.bf16.msra.mxu0 %v7160_v6 }
0x1d76   : > { %7162 = vmatprep.subr.bf16.mxu0 %v7831_v51 }
0x1d79   : > { %7164 = vmatpush3.bf16.msra.mxu0 %v7163_v8 }
0x1e3f   : > { %v5612_v11 = vpop.f32.mrb[36].mxu0 }
0x1e40   : > { %v5613_v14 = vadd.f32 %v6313_v10, %v5612_v11  ;;  %v6914_v15 = vpop.f32.mrb[37].mxu0 }
0x1e42   : > { %v5616_v17 = vadd.f32 %v5613_v14, %v8906_v25 }
0x1e44   : > { %v5617_v23 = vsel %vm908_vm0, %v5616_v17, 0.0 }
0x1e45   : > { %5618 = vadd.xlane.f32.xlu0 %v5617_v23 }
0x1e49   : > { %4717 = vadd.xlane.f32.xlu0 %v4716_v24 }
0x1e4d   : > { %4720 = vadd.xlane.f32.xlu0 %v4719_v33 }
0x1ed2   : > { %v5619_v48 = vpop.xlane.xlu0 %5618 }
0x1ed3   : > { %v5620_v32 = vmul.f32 0.03125, %v5619_v48 }
0x1ed5   : > { %v5621_v25 = vsub.f32 %v5616_v17, %v5620_v32 }
0x1ed6   : > { %v4718_v18 = vpop.xlane.xlu0 %4717 }
0x1ed7   : > { %v4722_v5 = vmul.f32 0.03125, %v4718_v18  ;;  %v5622_v1 = vmul.f32 %v5621_v25, %v5621_v25 }
0x1ed9   : > { %v4724_v16 = vsub.f32 %v4714_v22, %v4722_v5  ;;  %v5623_v19 = vsel %vm908_vm0, %v5622_v1, 0.0 }
0x1eda   : > { %5624 = vadd.xlane.f32.xlu1 %v5623_v19  ;;  %v4721_v37 = vpop.xlane.xlu0 %4720 }
0x1edb   : > { %v4726_v26 = vmul.f32 %v4724_v16, %v4724_v16  ;;  %v4723_v11 = vmul.f32 0.03125, %v4721_v37 }
0x1edd   : > { %v4728_v21 = vsel %vm908_vm0, %v4726_v26, 0.0  ;;  %v4725_v15 = vsub.f32 %v9029_v42, %v4723_v11 }
0x1ede   : > { %4729 = vadd.xlane.f32.xlu0 %v4728_v21 }
0x1edf   : > { %v4727_v24 = vmul.f32 %v4725_v15, %v4725_v15 }
0x1ee1   : > { %v4731_v33 = vsel %vm908_vm0, %v4727_v24, 0.0 }
0x1f67   : > { %v5625_v56 = vpop.xlane.xlu1 %5624 }
0x1f68   : > { %v5626_v41 = vmul.f32 0.03125, %v5625_v56 }
0x1f6a   : > { %v5627_v39 = vadd.f32 1e-05, %v5626_v41 }
0x1f6b   : > { %v4730_v40 = vpop.xlane.xlu0 %4729 }
0x1f6c   : > { %7495 = vrsqrt.f32 %v5627_v39  ;;  %v4734_v46 = vmul.f32 0.03125, %v4730_v40 }
0x1f6e   : > { %v4736_v49 = vadd.f32 1e-05, %v4734_v46 }
0x1f70   : > { %7497 = vrsqrt.f32 %v4736_v49 }
0x1f76   : > { %v7496_v52 = vpop.eup %7495 }
0x1f77   : > { %v5629_v55 = vmul.f32 %v7496_v52, %v5621_v25 }
0x1f79   : > { %v5636_v51 = vmul.f32 %v6315_v54, %v5629_v55 }
0x1f7a   : > { %v7498_v58 = vpop.eup %7497 }
0x1f7b   : > { %v4740_v61 = vmul.f32 %v7498_v58, %v4724_v16  ;;  %v5643_v62 = vadd.f32 %v6316_v57, %v5636_v51 }
0x1f7d   : > { %v4748_v0 = vmul.f32 %v6286_v60, %v4740_v61  ;;  %v5644_v2 = vmul.f32 %v5643_v62, %v8685_v36 }
0x1f7f   : > { %v4756_v44 = vadd.f32 %v6287_v63, %v4748_v0  ;;  %6924 = vmatmul.mubr.msk.f32.vlgmr.msra.gmra.mrb[54].mxu1 %vm908_vm0, %v5644_v2 }
0x1f81   : > { %5854 = vst.msk [vmem:[%s9079_s2] sm:$0xff] %vm908_vm0, %v4756_v44 }
0x2052   : > { %v5742_v36 = vpop.f32.mrb[54].mxu1 }
0x2053   : > { %v5743_v12 = vadd.f32 %v6329_v9, %v5742_v36  ;;  %v6925_v3 = vpop.f32.mrb[55].mxu1 }
0x2055   : > { %v5746_v10 = vmax.f32 %v5743_v12, 0.0 }
0x2057   : > { %6943 = vmatmul.mubr.msk.f32.vlgmr.msra.gmra.mrb[38].mxu0 %vm2201_vm6, %v5746_v10 }
0x212a   : > { %v5822_v14 = vpop.f32.mrb[38].mxu0 }
0x212b   : > { %v5823_v17 = vadd.f32 %v6331_v13, %v5822_v14  ;;  %v6944_v20 = vpop.f32.mrb[39].mxu0 }
0x212d   : > { %v5826_v22 = vadd.f32 %v5823_v17, %v5644_v2 }
0x212f   : > { %v5827_v23 = vsel %vm908_vm0, %v5826_v22, 0.0 }
0x2130   : > { %5828 = vadd.xlane.f32.xlu1 %v5827_v23 }
0x2134   : > { %4732 = vadd.xlane.f32.xlu1 %v4731_v33 }
0x21bd   : > { %v5829_v48 = vpop.xlane.xlu1 %5828 }
0x21be   : > { %v5830_v32 = vmul.f32 0.03125, %v5829_v48 }
0x21c0   : > { %v5831_v25 = vsub.f32 %v5826_v22, %v5830_v32 }
0x21c1   : > { %v4733_v18 = vpop.xlane.xlu1 %4732 }
0x21c2   : > { %v4735_v5 = vmul.f32 0.03125, %v4733_v18  ;;  %v5832_v42 = vmul.f32 %v5831_v25, %v5831_v25 }
0x21c4   : > { %v4737_v1 = vadd.f32 1e-05, %v4735_v5  ;;  %v5833_v16 = vsel %vm908_vm0, %v5832_v42, 0.0 }
0x21c5   : > { %5834 = vadd.xlane.f32.xlu0 %v5833_v16 }
0x21c6   : > { %7499 = vrsqrt.f32 %v4737_v1 }
0x21d0   : > { %v7500_v19 = vpop.eup %7499 }
0x21d1   : > { %v4741_v26 = vmul.f32 %v7500_v19, %v4725_v15 }
0x21d3   : > { %v4749_v21 = vmul.f32 %v6286_v60, %v4741_v26 }
0x21d5   : > { %v4757_v27 = vadd.f32 %v6287_v63, %v4749_v21 }
0x21d7   : > { %5855 = vst.msk [vmem:[%s9079_s2 + $0x8] sm:$0xff] %vm908_vm0, %v4757_v27 }
0x21d8   : > { %7714 = shalt.err (!%p7711_p2)
}
0x21d9   : > { %s7715_s2 = scalar_lea.hbm %s9100_s6, 256  ;;  %s7719_s17 = scalar_lea.hbm %s9296_s29, 512 }
0x21da   : > { %p7716_p3 = scmp.ne.s32.totalorder %s9100_s6, %s7715_s2  ;;  %p7720_p7 = scmp.lt.u32.totalorder %s9100_s6, %s9296_s29 }
0x21db   : > { %p7721_p8 = scmp.lt.u32.totalorder %s7719_s17, %s7715_s2  ;;  %p7723_p13 = scmp.lt.u32.totalorder %s7715_s2, %s9100_s6 }
0x21dc   : > { %p7717_p4 = pnand %p7716_p3, %p9297_p1 }
0x21dd   : > { %p7722_p11 = por %p7721_p8, %p7720_p7 }
0x21de   : > { %p7718_p12 = pneg %p7717_p4 }
0x21df   : > { %p7724_p6 = por %p7723_p13, %p7722_p11 }
0x21e1   : > { %p7725_p9 = pnand %p7724_p6, %p7718_p12 }
0x21e3   : > { %7728 = shalt.err (!%p7725_p9)
}
0x21e4   : > { %s7835_s26 = smov 128   ;;  %s6125_s0 = sshll.u32 %s9074_s30, 3  ;;  %v6333_v30 = vld [vmem:[#allocation11 + $0x3] ss:$0 sm:$0xff]  ;;  %v6334_v53 = vld [vmem:[#allocation13 + $0x3] ss:$0 sm:$0xff] }
0x21e5   : > { %7193 = dma.vmem_to_hbm [thread:$0]  (%p9297_p1), %s9103_s7, 256, %s9100_s6, %s5858_s22, %s7835_s26, %s7835_s26, %s9284_s23  }
0x21e6   : > { %s6339_s4 = sshll.u32 %s7978_s5, 7  ;;  %s879_s24 = scalar_lea.vmem [#allocation15], %s6125_s0 }
0x21e7   : > { %s5892_s2 = sshll.u32 %s879_s24, 4  ;;  %s9298_s17 = sld [smem:[#allocation43_spill]]  ;;  %s9137_s2 = int_to_ptr.vmem [resolvable:$true] %s5892_s2 }
0x21e8   : > { %s5863_s6 = scalar_lea.sflag [#allocation16], %s9074_s30  ;;  %s7729_s7 = scalar_lea.vmem %s9137_s2, 128 }
0x21e9   : > { %p7730_p5 = scmp.ne.s32.totalorder %s9137_s2, %s7729_s7  ;;  %s7836_s5 = smov [#allocation15]  }
0x21ea   : > { %s7733_s22 = sshll.u32 %s7836_s5, 4  ;;  %s7734_s22 = int_to_ptr.vmem [resolvable:$false] %s7733_s22 }
0x21eb   : > { %p7731_p0 = pnand %p7730_p5, %p9297_p1  ;;  %s7735_s1 = scalar_lea.vmem %s7734_s22, 256 }
0x21ec   : > { %p7736_p2 = scmp.lt.s32.totalorder %s9137_s2, %s7734_s22  ;;  %p7737_p3 = scmp.lt.s32.totalorder %s7735_s1, %s7729_s7 }
0x21ed   : > { %s9135_s23 = scalar_lea.hbm %s9298_s17, %s6339_s4  ;;  %p7732_p10 = pneg %p7731_p0 }
0x21ee   : > { %p7738_p4 = por %p7737_p3, %p7736_p2 }
0x21f0   : > { %p7739_p12 = pnand %p7738_p4, %p7732_p10 }
0x2252   : > { %v5835_v50 = vpop.xlane.xlu0 %5834 }
0x2253   : > { %v5836_v28 = vmul.f32 0.03125, %v5835_v50 }
0x2255   : > { %v5837_v47 = vadd.f32 1e-05, %v5836_v28 }
0x2257   : > { %7501 = vrsqrt.f32 %v5837_v47 }
0x2261   : > { %v7502_v29 = vpop.eup %7501 }
0x2262   : > { %v5839_v43 = vmul.f32 %v7502_v29, %v5831_v25 }
0x2264   : > { %v5846_v31 = vmul.f32 %v6333_v30, %v5839_v43 }
0x2266   : > { %v5853_v45 = vadd.f32 %v6334_v53, %v5846_v31 }
0x2268   : > { %5856 = vst.msk [vmem:[%s879_s24] sm:$0xff] %vm908_vm0, %v5853_v45 }
0x2269   : > { %7742 = shalt.err (!%p7739_p12)
}
0x226a   : > { %s7743_s30 = scalar_lea.hbm %s9135_s23, 128  ;;  %s7747_s0 = scalar_lea.hbm %s9298_s17, 256 }
0x226b   : > { %p7744_p7 = scmp.ne.s32.totalorder %s9135_s23, %s7743_s30  ;;  %p7748_p13 = scmp.lt.u32.totalorder %s9135_s23, %s9298_s17 }
0x226c   : > { %p7749_p6 = scmp.lt.u32.totalorder %s7747_s0, %s7743_s30  ;;  %p7751_p5 = scmp.lt.u32.totalorder %s7743_s30, %s9135_s23 }
0x226d   : > { %p7745_p8 = pnand %p7744_p7, %p9297_p1 }
0x226e   : > { %p7750_p9 = por %p7749_p6, %p7748_p13 }
0x226f   : > { %p7746_p11 = pneg %p7745_p8 }
0x2270   : > { %p7752_p0 = por %p7751_p5, %p7750_p9 }
0x2272   : > { %p7753_p10 = pnand %p7752_p0, %p7746_p11 }
0x2274   : > { %7756 = shalt.err (!%p7753_p10)
}
0x2275   : > { %7194 = dma.vmem_to_hbm [thread:$0]  (%p9297_p1), %s9137_s2, 128, %s9135_s23, %s5863_s6  }
0x2276 PF: > { %s9299_s25 = sld [smem:[#allocation26_spill]]  ;;  %s9300_s14 = sld [smem:[#allocation23_spill]] }
0x2277   : > { %s9301_s7 = sld [smem:[#allocation30_spill]] }
0x227c   : > { %p7240_p2 = scmp.ge.s32.totalorder %s9299_s25, 2  ;;  %s5904_s5 = sand.u32 1, %s9300_s14  }
0x227d   : > { %p9302_p3 = scmp.ne.s32.totalorder %s9301_s7, 0  ;;  %s5905_s22 = scalar_lea.sflag [#allocation4], %s5904_s5 }
0x227f   : > { %p7220_p4 = pnand %p7240_p2, %p9302_p3 }
0x2281   : > { %7790 = dma.done.wait (!%p7220_p4), %s5905_s22, 256  }
0x2282   : > { %7792 = vsyncadd (!%p7220_p4), %s5905_s22, 4294967040  ;;  %s5914_s1 = scalar_lea.sflag [#allocation16], %s5904_s5 }
0x2283   : > { %7794 = dma.done.wait (!%p7220_p4), %s5914_s1, 128  }
0x2284   : > { %7796 = vsyncadd (!%p7220_p4), %s5914_s1, 4294967168  ;;  %s9303_s25 = sld [smem:[#allocation27_spill]]  ;;  %s9304_s4 = sld [smem:[#allocation24_spill]] }
0x2285   : > { %s9305_s30 = sld [smem:[#allocation25_spill]]  ;;  %s9306_s24 = sld [smem:[#allocation28_spill]] }
0x228a   : > { %p41_p1 = scmp.ge.s32.totalorder %s9303_s25, 4  }
0x228c   :  { %43 = sbr.rel (!%p41_p1) target bundleno = 23 (0x17), region = 242 }
0x2293   :  { %5919 = vsyncpa [#allocation3], 1 }
0x2294   :  { %5921 = vsyncpa [#allocation3 + $0x1], 1 }
0x2295   :  { %5922 = vsyncpa [#allocation6], 1 }
0x2296   :  { %5923 = vsyncpa [#allocation9], 1 }
0x2297   :  { %5924 = vsyncpa [#allocation12], 1 }
0x2298   :  { %5925 = vsyncpa [#allocation4], 1 }
0x2299   :  { %5927 = vsyncpa [#allocation4 + $0x1], 1 }
0x229a   :  { %5928 = vsyncpa [#allocation16], 1 }
0x229b   :  { %5930 = vsyncpa [#allocation16 + $0x1], 1 }

</bundles_post_ra>
